<compile_context>
chip_gen: v6e
topology: v6e:2x2x1
jax: 0.10.0
libtpu: 0.0.40
codegen_flags: <defaults>
</compile_context>

<pallas_src>
import math

import jax
import jax.numpy as jnp
from jax.experimental import pallas as pl
from jax.experimental.pallas import tpu as pltpu

BN_EPS = 1e-5
LEAKY_SLOPE = 0.2
OUT_LANES = 128                      # final output padded to one full vreg lane width

# 2x2 taps (qi, qj) of the space-to-depth ("s2d") view of a k=4/s=2 conv.
_TAPS = ((0, 0), (0, 1), (1, 0), (1, 1))


# ---------------------------------------------------------------------------
# In-kernel building blocks (all loop bounds / indices are static Python ints)
# ---------------------------------------------------------------------------
def _build_patches(a_ref, p_ref, B, Ho, Wo, C4):
    """im2col on the padded s2d activation ref -> bf16 patches ref (B*Ho*Wo, 4*C4).

    Every copy is a contiguous (Wo, C4) ref slice (no gathers, no strides);
    the f32 -> bf16 cast happens per small slice at store time.
    """
    for t, (qi, qj) in enumerate(_TAPS):
        col = t * C4
        for b in range(B):
            for ho in range(Ho):
                row = (b * Ho + ho) * Wo
                p_ref[row:row + Wo, col:col + C4] = (
                    a_ref[b, ho + qi, qj:qj + Wo, :].astype(p_ref.dtype))


def _bn_leakyrelu(y, gamma, beta, m_rows):
    """Train-mode BatchNorm (batch stats, biased var) + LeakyReLU(0.2), f32.

    Two-pass variance (mean first, then E[(x-mean)^2]) for numerical safety;
    folded scale/shift so normalize is one mul + one add; rsqrt -> EUP.
    NOTE: train-mode only — eval-mode (running stats) is not implemented.
    """
    inv_m = 1.0 / float(m_rows)
    mean = jnp.sum(y, axis=0, keepdims=True) * inv_m
    d = y - mean
    var = jnp.sum(d * d, axis=0, keepdims=True) * inv_m
    y = d * (gamma * jax.lax.rsqrt(var + BN_EPS)) + beta
    return jnp.maximum(y, LEAKY_SLOPE * y)


def _repack_s2d(o_ref, a_next_ref, B, Ho, Wo, C):
    """Scatter the activated flat output (B*Ho*Wo, C) into the next layer's
    zero-padded space-to-depth buffer (B, Ho//2 + 1, Wo//2 + 1, 4*C).

    Destination writes are contiguous; the stride-2 decimation of a stride-2
    conv shows up only as sublane-strided reads (`ref[pl.ds(start, n, stride=2)]`).
    The buffer zero-fill is tiny (<= a few KB) and covers the padding border.
    """
    a_next_ref[...] = jnp.zeros(a_next_ref.shape, a_next_ref.dtype)
    half = Wo // 2
    for b in range(B):
        for ho in range(Ho):
            row = (b * Ho + ho) * Wo
            ph = (ho + 1) % 2            # h-phase in the padded next-layer input
            h2 = (ho + 1) // 2
            for pw in (0, 1):
                wo0 = 1 - pw             # first source column of this parity
                w20 = 1 - pw             # first destination w2
                pb = ph * 2 + pw         # phase block in the channel dim
                src = o_ref[pl.ds(row + wo0, half, stride=2), :]   # (half, C)
                a_next_ref[b, h2, w20:w20 + half, pb * C:(pb + 1) * C] = src


# ---------------------------------------------------------------------------
# Fused kernel factory (specialized to the 3-layer k=4 / s=2 / p=1 config)
# ---------------------------------------------------------------------------
def _make_cnn_kernel(B, in_channel, channels, H, W):
    assert len(channels) == 3, "fused kernel is specialized to 3 conv layers"
    assert H % 8 == 0 and W % 8 == 0
    C0 = in_channel
    C1, C2, C3 = channels
    assert max(C1, C2, C3) <= OUT_LANES
    H1, W1 = H // 2, W // 2            # layer-1 output spatial dims
    H2, W2 = H1 // 2, W1 // 2          # layer-2 output spatial dims
    H3, W3 = H2 // 2, W2 // 2          # layer-3 (final) output spatial dims
    M1, M2, M3 = B * H1 * W1, B * H2 * W2, B * H3 * W3

    def kernel(p1_ref, w1_ref, w2_ref, w3_ref, pp_ref, o_ref,
               o1_ref, a2_ref, p2_ref, o2_ref, a3_ref, p3_ref):
        # Packed affine params: one lane-dense (8, 128) input instead of five
        # separately padded (1, C) VMEM inputs.
        g1, be1 = pp_ref[0:1, 0:C1], pp_ref[1:2, 0:C1]
        g2, be2 = pp_ref[2:3, 0:C2], pp_ref[3:4, 0:C2]
        b3 = pp_ref[4:5, :]                                   # (1, 128), zero-padded

        # ---- layer 1: (host-built im2col) -> MXU -> BN -> LeakyReLU ---------
        y = jnp.dot(p1_ref[...], w1_ref[...], preferred_element_type=jnp.float32)
        o1_ref[...] = _bn_leakyrelu(y, g1, be1, M1)
        _repack_s2d(o1_ref, a2_ref, B, H1, W1, C1)

        # ---- layer 2: conv -> BN -> LeakyReLU --------------------------------
        _build_patches(a2_ref, p2_ref, B, H2, W2, 4 * C1)
        y = jnp.dot(p2_ref[...], w2_ref[...], preferred_element_type=jnp.float32)
        o2_ref[...] = _bn_leakyrelu(y, g2, be2, M2)
        _repack_s2d(o2_ref, a3_ref, B, H2, W2, C2)

        # ---- layer 3 (final): conv + bias -> Sigmoid -------------------------
        # Weight (and bias) are zero-padded to N=128 lanes so this matmul, the
        # bias add, the sigmoid and the output store are all unmasked.
        _build_patches(a3_ref, p3_ref, B, H3, W3, 4 * C2)
        y = jnp.dot(p3_ref[...], w3_ref[...], preferred_element_type=jnp.float32)
        y = y + b3
        o_ref[...] = 1.0 / (1.0 + jnp.exp(-y))

    scratch_shapes = [
        pltpu.VMEM((M1, C1), jnp.float32),                                # activated L1
        pltpu.VMEM((B, H1 // 2 + 1, W1 // 2 + 1, 4 * C1), jnp.float32),   # s2d input L2
        pltpu.VMEM((M2, 16 * C1), jnp.bfloat16),                          # patches L2 (bf16)
        pltpu.VMEM((M2, C2), jnp.float32),                                # activated L2
        pltpu.VMEM((B, H2 // 2 + 1, W2 // 2 + 1, 4 * C2), jnp.float32),   # s2d input L3
        pltpu.VMEM((M3, 16 * C2), jnp.bfloat16),                          # patches L3 (bf16)
    ]
    out_shape = jax.ShapeDtypeStruct((M3, OUT_LANES), jnp.float32)
    return kernel, scratch_shapes, out_shape, (H3, W3)


# ---------------------------------------------------------------------------
# Host-side (one-time, tiny) layout prep — plain XLA
# ---------------------------------------------------------------------------
def _space_to_depth_pad(x_nchw):
    """NCHW -> zero-padded (pad=1) space-to-depth layout
    (B, (H+2)//2, (W+2)//2, 4*C), channel blocks ordered by spatial phase."""
    B, C, H, W = x_nchw.shape
    xp = jnp.pad(x_nchw, ((0, 0), (0, 0), (1, 1), (1, 1)))
    xn = xp.transpose(0, 2, 3, 1)                          # (B, H+2, W+2, C)
    Hp, Wp = H + 2, W + 2
    a = xn.reshape(B, Hp // 2, 2, Wp // 2, 2, C)
    a = a.transpose(0, 1, 3, 2, 4, 5)                      # (b, h2, w2, ph, pw, c)
    return a.reshape(B, Hp // 2, Wp // 2, 4 * C)


def _host_im2col_l1(x_nchw):
    """Layer-1 im2col on the host: (B, C, H, W) -> bf16 (B*H1*W1, 16*C) patch
    matrix with rows ordered (b, h1, w1) and columns ordered
    (tap qi,qj major; then phase ri,rj; then cin) — matching _s2d_weight."""
    B, C, H, W = x_nchw.shape
    H1, W1 = H // 2, W // 2
    a1 = _space_to_depth_pad(x_nchw)                       # (B, H1+1, W1+1, 4*C)
    blocks = [a1[:, qi:qi + H1, qj:qj + W1, :].reshape(B * H1 * W1, 4 * C)
              for (qi, qj) in _TAPS]
    return jnp.concatenate(blocks, axis=1).astype(jnp.bfloat16)


def _s2d_weight(w):
    """PyTorch conv weight (Cout, Cin, 4, 4) -> im2col matrix (16*Cin, Cout)
    in bf16, row order matching the patch column layout:
    tap (qi, qj) major, then phase (ri, rj), then cin."""
    cout, cin, k, _ = w.shape
    assert k == 4
    w6 = w.reshape(cout, cin, 2, 2, 2, 2)                  # (co, c, qi, ri, qj, rj)
    wt = w6.transpose(2, 4, 3, 5, 1, 0)                    # (qi, qj, ri, rj, c, co)
    return wt.reshape(16 * cin, cout).astype(jnp.bfloat16)


def cnn_forward(x, params, in_channel, channels):
    B, _, H, W = x.shape
    C1, C2, C3 = channels
    kernel, scratch_shapes, out_shape, (H3, W3) = _make_cnn_kernel(
        B, in_channel, channels, H, W)

    # Layer-1 patches built on the host (bf16), not inside the kernel.
    p1 = _host_im2col_l1(x)
    w1 = _s2d_weight(params[0]["w"])
    w2 = _s2d_weight(params[1]["w"])
    # Final weight padded to 128 output lanes -> unmasked final matmul/store.
    w3 = jnp.zeros((16 * C2, OUT_LANES), jnp.bfloat16).at[:, :C3].set(
        _s2d_weight(params[2]["w"]))

    # All per-channel affine params packed into one lane-dense (8, 128) input.
    pp = jnp.zeros((8, OUT_LANES), jnp.float32)
    pp = pp.at[0, :C1].set(params[0]["gamma"])
    pp = pp.at[1, :C1].set(params[0]["beta"])
    pp = pp.at[2, :C2].set(params[1]["gamma"])
    pp = pp.at[3, :C2].set(params[1]["beta"])
    pp = pp.at[4, :C3].set(params[2]["b"])
    # NOTE: conv biases of the BN layers are deliberately NOT passed in: a bias
    # immediately followed by train-mode BatchNorm is cancelled exactly by the
    # mean subtraction.  (Eval-mode / running-stat BN is not supported here.)

    vmem = pl.BlockSpec(memory_space=pltpu.MemorySpace.VMEM)
    out_flat = pl.pallas_call(
        kernel,
        out_shape=out_shape,
        in_specs=[vmem] * 5,
        out_specs=vmem,
        scratch_shapes=scratch_shapes,
    )(p1, w1, w2, w3, pp)

    # (B*H3*W3, 128) rows ordered (b, ho, wo): slice real channels -> NCHW.
    return out_flat[:, :C3].reshape(B, H3, W3, C3).transpose(0, 3, 1, 2)


# ---------------------------------------------------------------------------
# Parameters (PyTorch-style init) and a pure-JAX reference for validation
# ---------------------------------------------------------------------------
def init_cnn_params(key, in_channel, channels, kernel_size):
    params = []
    cins = [in_channel] + list(channels[:-1])
    for layer_idx, (cin, cout) in enumerate(zip(cins, channels)):
        key, kw, kb = jax.random.split(key, 3)
        fan_in = cin * kernel_size * kernel_size
        bound = 1.0 / math.sqrt(fan_in)
        w = jax.random.uniform(kw, (cout, cin, kernel_size, kernel_size),
                               jnp.float32, -bound, bound)
        b = jax.random.uniform(kb, (cout,), jnp.float32, -bound, bound)
        if layer_idx == len(channels) - 1:
            params.append({"w": w, "b": b})
        else:
            params.append({"w": w, "b": b,
                           "gamma": jnp.ones((cout,), jnp.float32),
                           "beta": jnp.zeros((cout,), jnp.float32)})
    return params


def reference_forward(x, params):
    """Plain-JAX reference: conv -> BN(batch stats) -> LeakyReLU, final conv -> sigmoid."""
    def conv(h, w):
        return jax.lax.conv_general_dilated(
            h, w, window_strides=(2, 2), padding=((1, 1), (1, 1)),
            dimension_numbers=("NCHW", "OIHW", "NCHW"))

    out = x
    for layer in params[:-1]:
        out = conv(out, layer["w"]) + layer["b"].reshape(1, -1, 1, 1)
        mean = out.mean(axis=(0, 2, 3), keepdims=True)
        var = ((out - mean) ** 2).mean(axis=(0, 2, 3), keepdims=True)
        out = (out - mean) * jax.lax.rsqrt(var + BN_EPS)
        out = out * layer["gamma"].reshape(1, -1, 1, 1) + layer["beta"].reshape(1, -1, 1, 1)
        out = jnp.where(out > 0, out, LEAKY_SLOPE * out)
    out = conv(out, params[-1]["w"]) + params[-1]["b"].reshape(1, -1, 1, 1)
    return jax.nn.sigmoid(out)


# ---------------------------------------------------------------------------
if __name__ == "__main__":
    in_channel = 4
    channels = [8, 16, 4]
    kernel_size, stride, padding = 4, 2, 1

    key = jax.random.PRNGKey(0)
    key, kx = jax.random.split(key)
    x = jax.random.normal(kx, (2, in_channel, 16, 16), jnp.float32)  # NCHW

    params = init_cnn_params(key, in_channel, channels, kernel_size)

    out = cnn_forward(x, params, in_channel, channels)
    out = jax.block_until_ready(out)

    assert out.shape == (2, channels[-1], 2, 2), out.shape
    assert bool(jnp.all(jnp.isfinite(out)))
    assert bool(jnp.all((out >= 0.0) & (out <= 1.0)))  # sigmoid range

    ref = jax.block_until_ready(reference_forward(x, params))
    max_err = float(jnp.max(jnp.abs(out - ref)))
    # bf16 MXU operands are the dominant error source; tolerance reflects that.
    assert max_err < 5e-2, f"mismatch vs reference: {max_err}"

    print("KERNEL_OK")
</pallas_src>

<mosaic_0001>
module attributes {stable_mosaic.version = 11 : i64} {
  func.func @kernel(%arg0: memref<128x64xbf16, #tpu.memory_space<vmem>>, %arg1: memref<64x8xbf16, #tpu.memory_space<vmem>>, %arg2: memref<128x16xbf16, #tpu.memory_space<vmem>>, %arg3: memref<256x128xbf16, #tpu.memory_space<vmem>>, %arg4: memref<8x128xf32, #tpu.memory_space<vmem>>, %arg5: memref<8x128xf32, #tpu.memory_space<vmem>>, %arg6: memref<128x8xf32, #tpu.memory_space<vmem>>, %arg7: memref<2x5x5x32xf32, #tpu.memory_space<vmem>>, %arg8: memref<32x128xbf16, #tpu.memory_space<vmem>>, %arg9: memref<32x16xf32, #tpu.memory_space<vmem>>, %arg10: memref<2x3x3x64xf32, #tpu.memory_space<vmem>>, %arg11: memref<8x256xbf16, #tpu.memory_space<vmem>>) attributes {dimension_semantics = [], scalar_prefetch = 0 : i64, scratch_operands = 6 : i64, tpu.core_type = #tpu.core_type<tc>} {
    %c0 = arith.constant 0 : index
    %c0_0 = arith.constant 0 : index
    %0 = vector.load %arg4[%c0, %c0_0] : memref<8x128xf32, #tpu.memory_space<vmem>>, vector<1x8xf32>
    %c1 = arith.constant 1 : index
    %c0_1 = arith.constant 0 : index
    %1 = vector.load %arg4[%c1, %c0_1] : memref<8x128xf32, #tpu.memory_space<vmem>>, vector<1x8xf32>
    %c2 = arith.constant 2 : index
    %c0_2 = arith.constant 0 : index
    %2 = vector.load %arg4[%c2, %c0_2] : memref<8x128xf32, #tpu.memory_space<vmem>>, vector<1x16xf32>
    %c3 = arith.constant 3 : index
    %c0_3 = arith.constant 0 : index
    %3 = vector.load %arg4[%c3, %c0_3] : memref<8x128xf32, #tpu.memory_space<vmem>>, vector<1x16xf32>
    %c4 = arith.constant 4 : index
    %c0_4 = arith.constant 0 : index
    %4 = vector.load %arg4[%c4, %c0_4] : memref<8x128xf32, #tpu.memory_space<vmem>>, vector<1x128xf32>
    %c0_5 = arith.constant 0 : index
    %c0_6 = arith.constant 0 : index
    %5 = vector.load %arg0[%c0_5, %c0_6] : memref<128x64xbf16, #tpu.memory_space<vmem>>, vector<128x64xbf16>
    %c0_7 = arith.constant 0 : index
    %c0_8 = arith.constant 0 : index
    %6 = vector.load %arg1[%c0_7, %c0_8] : memref<64x8xbf16, #tpu.memory_space<vmem>>, vector<64x8xbf16>
    %cst = arith.constant dense<0.000000e+00> : vector<128x8xf32>
    %7 = tpu.matmul %5, %6, %cst {dimension_numbers = #tpu.dot_dimension_numbers<[1], [0], [0], [1], [0, 0, 1, 1], [], []>} : vector<128x64xbf16>, vector<64x8xbf16>, vector<128x8xf32> -> vector<128x8xf32>
    %cst_9 = arith.constant dense<0.000000e+00> : vector<8xf32>
    %8 = vector.multi_reduction <add>, %7, %cst_9 [0] : vector<128x8xf32> to vector<8xf32>
    %9 = vector.shape_cast %8 : vector<8xf32> to vector<1x8xf32>
    %cst_10 = arith.constant 7.812500e-03 : f32
    %10 = vector.broadcast %cst_10 : f32 to vector<1x8xf32>
    %11 = arith.mulf %9, %10 : vector<1x8xf32>
    %12 = vector.broadcast %11 : vector<1x8xf32> to vector<128x8xf32>
    %13 = arith.subf %7, %12 : vector<128x8xf32>
    %14 = arith.mulf %13, %13 : vector<128x8xf32>
    %cst_11 = arith.constant dense<0.000000e+00> : vector<8xf32>
    %15 = vector.multi_reduction <add>, %14, %cst_11 [0] : vector<128x8xf32> to vector<8xf32>
    %16 = vector.shape_cast %15 : vector<8xf32> to vector<1x8xf32>
    %cst_12 = arith.constant 7.812500e-03 : f32
    %17 = vector.broadcast %cst_12 : f32 to vector<1x8xf32>
    %18 = arith.mulf %16, %17 : vector<1x8xf32>
    %cst_13 = arith.constant 9.99999974E-6 : f32
    %19 = vector.broadcast %cst_13 : f32 to vector<1x8xf32>
    %20 = arith.addf %18, %19 : vector<1x8xf32>
    %21 = math.rsqrt %20 : vector<1x8xf32>
    %22 = arith.mulf %0, %21 : vector<1x8xf32>
    %23 = vector.broadcast %22 : vector<1x8xf32> to vector<128x8xf32>
    %24 = arith.mulf %13, %23 : vector<128x8xf32>
    %25 = vector.broadcast %1 : vector<1x8xf32> to vector<128x8xf32>
    %26 = arith.addf %24, %25 : vector<128x8xf32>
    %cst_14 = arith.constant 2.000000e-01 : f32
    %27 = vector.broadcast %cst_14 : f32 to vector<128x8xf32>
    %28 = arith.mulf %27, %26 : vector<128x8xf32>
    %29 = arith.maximumf %26, %28 : vector<128x8xf32>
    %c0_15 = arith.constant 0 : index
    %c0_16 = arith.constant 0 : index
    %30 = vector.load %arg6[%c0_15, %c0_16] : memref<128x8xf32, #tpu.memory_space<vmem>>, vector<128x8xf32>
    tpu.vector_store %arg6[%c0_15, %c0_16], %29 {strides = array<i32>} : memref<128x8xf32, #tpu.memory_space<vmem>>, vector<128x8xf32>,
    %cst_17 = arith.constant 0.000000e+00 : f32
    %31 = vector.broadcast %cst_17 : f32 to vector<2x5x5x32xf32>
    %c0_18 = arith.constant 0 : index
    %c0_19 = arith.constant 0 : index
    %c0_20 = arith.constant 0 : index
    %c0_21 = arith.constant 0 : index
    %32 = vector.load %arg7[%c0_18, %c0_19, %c0_20, %c0_21] : memref<2x5x5x32xf32, #tpu.memory_space<vmem>>, vector<2x5x5x32xf32>
    tpu.vector_store %arg7[%c0_18, %c0_19, %c0_20, %c0_21], %31 {strides = array<i32>} : memref<2x5x5x32xf32, #tpu.memory_space<vmem>>, vector<2x5x5x32xf32>,
    %c1_22 = arith.constant 1 : index
    %c0_23 = arith.constant 0 : index
    %33 = tpu.strided_load %arg6[%c1_22, %c0_23] {strides = array<i32: 2, 1>} : memref<128x8xf32, #tpu.memory_space<vmem>>, vector<4x8xf32>
    %c0_24 = arith.constant 0 : index
    %c0_25 = arith.constant 0 : index
    %c1_26 = arith.constant 1 : index
    %c16 = arith.constant 16 : index
    %34 = vector.load %arg7[%c0_24, %c0_25, %c1_26, %c16] : memref<2x5x5x32xf32, #tpu.memory_space<vmem>>, vector<1x1x4x8xf32>
    %35 = vector.shape_cast %34 : vector<1x1x4x8xf32> to vector<4x8xf32>
    %36 = vector.shape_cast %33 : vector<4x8xf32> to vector<1x1x4x8xf32>
    tpu.vector_store %arg7[%c0_24, %c0_25, %c1_26, %c16], %36 {strides = array<i32>} : memref<2x5x5x32xf32, #tpu.memory_space<vmem>>, vector<1x1x4x8xf32>,
    %c0_27 = arith.constant 0 : index
    %c0_28 = arith.constant 0 : index
    %37 = tpu.strided_load %arg6[%c0_27, %c0_28] {strides = array<i32: 2, 1>} : memref<128x8xf32, #tpu.memory_space<vmem>>, vector<4x8xf32>
    %c0_29 = arith.constant 0 : index
    %c0_30 = arith.constant 0 : index
    %c0_31 = arith.constant 0 : index
    %c24 = arith.constant 24 : index
    %38 = vector.load %arg7[%c0_29, %c0_30, %c0_31, %c24] : memref<2x5x5x32xf32, #tpu.memory_space<vmem>>, vector<1x1x4x8xf32>
    %39 = vector.shape_cast %38 : vector<1x1x4x8xf32> to vector<4x8xf32>
    %40 = vector.shape_cast %37 : vector<4x8xf32> to vector<1x1x4x8xf32>
    tpu.vector_store %arg7[%c0_29, %c0_30, %c0_31, %c24], %40 {strides = array<i32>} : memref<2x5x5x32xf32, #tpu.memory_space<vmem>>, vector<1x1x4x8xf32>,
    %c9 = arith.constant 9 : index
    %c0_32 = arith.constant 0 : index
    %41 = tpu.strided_load %arg6[%c9, %c0_32] {strides = array<i32: 2, 1>} : memref<128x8xf32, #tpu.memory_space<vmem>>, vector<4x8xf32>
    %c0_33 = arith.constant 0 : index
    %c1_34 = arith.constant 1 : index
    %c1_35 = arith.constant 1 : index
    %c0_36 = arith.constant 0 : index
    %42 = vector.load %arg7[%c0_33, %c1_34, %c1_35, %c0_36] : memref<2x5x5x32xf32, #tpu.memory_space<vmem>>, vector<1x1x4x8xf32>
    %43 = vector.shape_cast %42 : vector<1x1x4x8xf32> to vector<4x8xf32>
    %44 = vector.shape_cast %41 : vector<4x8xf32> to vector<1x1x4x8xf32>
    tpu.vector_store %arg7[%c0_33, %c1_34, %c1_35, %c0_36], %44 {strides = array<i32>} : memref<2x5x5x32xf32, #tpu.memory_space<vmem>>, vector<1x1x4x8xf32>,
    %c8 = arith.constant 8 : index
    %c0_37 = arith.constant 0 : index
    %45 = tpu.strided_load %arg6[%c8, %c0_37] {strides = array<i32: 2, 1>} : memref<128x8xf32, #tpu.memory_space<vmem>>, vector<4x8xf32>
    %c0_38 = arith.constant 0 : index
    %c1_39 = arith.constant 1 : index
    %c0_40 = arith.constant 0 : index
    %c8_41 = arith.constant 8 : index
    %46 = vector.load %arg7[%c0_38, %c1_39, %c0_40, %c8_41] : memref<2x5x5x32xf32, #tpu.memory_space<vmem>>, vector<1x1x4x8xf32>
    %47 = vector.shape_cast %46 : vector<1x1x4x8xf32> to vector<4x8xf32>
    %48 = vector.shape_cast %45 : vector<4x8xf32> to vector<1x1x4x8xf32>
    tpu.vector_store %arg7[%c0_38, %c1_39, %c0_40, %c8_41], %48 {strides = array<i32>} : memref<2x5x5x32xf32, #tpu.memory_space<vmem>>, vector<1x1x4x8xf32>,
    %c17 = arith.constant 17 : index
    %c0_42 = arith.constant 0 : index
    %49 = tpu.strided_load %arg6[%c17, %c0_42] {strides = array<i32: 2, 1>} : memref<128x8xf32, #tpu.memory_space<vmem>>, vector<4x8xf32>
    %c0_43 = arith.constant 0 : index
    %c1_44 = arith.constant 1 : index
    %c1_45 = arith.constant 1 : index
    %c16_46 = arith.constant 16 : index
    %50 = vector.load %arg7[%c0_43, %c1_44, %c1_45, %c16_46] : memref<2x5x5x32xf32, #tpu.memory_space<vmem>>, vector<1x1x4x8xf32>
    %51 = vector.shape_cast %50 : vector<1x1x4x8xf32> to vector<4x8xf32>
    %52 = vector.shape_cast %49 : vector<4x8xf32> to vector<1x1x4x8xf32>
    tpu.vector_store %arg7[%c0_43, %c1_44, %c1_45, %c16_46], %52 {strides = array<i32>} : memref<2x5x5x32xf32, #tpu.memory_space<vmem>>, vector<1x1x4x8xf32>,
    %c16_47 = arith.constant 16 : index
    %c0_48 = arith.constant 0 : index
    %53 = tpu.strided_load %arg6[%c16_47, %c0_48] {strides = array<i32: 2, 1>} : memref<128x8xf32, #tpu.memory_space<vmem>>, vector<4x8xf32>
    %c0_49 = arith.constant 0 : index
    %c1_50 = arith.constant 1 : index
    %c0_51 = arith.constant 0 : index
    %c24_52 = arith.constant 24 : index
    %54 = vector.load %arg7[%c0_49, %c1_50, %c0_51, %c24_52] : memref<2x5x5x32xf32, #tpu.memory_space<vmem>>, vector<1x1x4x8xf32>
    %55 = vector.shape_cast %54 : vector<1x1x4x8xf32> to vector<4x8xf32>
    %56 = vector.shape_cast %53 : vector<4x8xf32> to vector<1x1x4x8xf32>
    tpu.vector_store %arg7[%c0_49, %c1_50, %c0_51, %c24_52], %56 {strides = array<i32>} : memref<2x5x5x32xf32, #tpu.memory_space<vmem>>, vector<1x1x4x8xf32>,
    %c25 = arith.constant 25 : index
    %c0_53 = arith.constant 0 : index
    %57 = tpu.strided_load %arg6[%c25, %c0_53] {strides = array<i32: 2, 1>} : memref<128x8xf32, #tpu.memory_space<vmem>>, vector<4x8xf32>
    %c0_54 = arith.constant 0 : index
    %c2_55 = arith.constant 2 : index
    %c1_56 = arith.constant 1 : index
    %c0_57 = arith.constant 0 : index
    %58 = vector.load %arg7[%c0_54, %c2_55, %c1_56, %c0_57] : memref<2x5x5x32xf32, #tpu.memory_space<vmem>>, vector<1x1x4x8xf32>
    %59 = vector.shape_cast %58 : vector<1x1x4x8xf32> to vector<4x8xf32>
    %60 = vector.shape_cast %57 : vector<4x8xf32> to vector<1x1x4x8xf32>
    tpu.vector_store %arg7[%c0_54, %c2_55, %c1_56, %c0_57], %60 {strides = array<i32>} : memref<2x5x5x32xf32, #tpu.memory_space<vmem>>, vector<1x1x4x8xf32>,
    %c24_58 = arith.constant 24 : index
    %c0_59 = arith.constant 0 : index
    %61 = tpu.strided_load %arg6[%c24_58, %c0_59] {strides = array<i32: 2, 1>} : memref<128x8xf32, #tpu.memory_space<vmem>>, vector<4x8xf32>
    %c0_60 = arith.constant 0 : index
    %c2_61 = arith.constant 2 : index
    %c0_62 = arith.constant 0 : index
    %c8_63 = arith.constant 8 : index
    %62 = vector.load %arg7[%c0_60, %c2_61, %c0_62, %c8_63] : memref<2x5x5x32xf32, #tpu.memory_space<vmem>>, vector<1x1x4x8xf32>
    %63 = vector.shape_cast %62 : vector<1x1x4x8xf32> to vector<4x8xf32>
    %64 = vector.shape_cast %61 : vector<4x8xf32> to vector<1x1x4x8xf32>
    tpu.vector_store %arg7[%c0_60, %c2_61, %c0_62, %c8_63], %64 {strides = array<i32>} : memref<2x5x5x32xf32, #tpu.memory_space<vmem>>, vector<1x1x4x8xf32>,
    %c33 = arith.constant 33 : index
    %c0_64 = arith.constant 0 : index
    %65 = tpu.strided_load %arg6[%c33, %c0_64] {strides = array<i32: 2, 1>} : memref<128x8xf32, #tpu.memory_space<vmem>>, vector<4x8xf32>
    %c0_65 = arith.constant 0 : index
    %c2_66 = arith.constant 2 : index
    %c1_67 = arith.constant 1 : index
    %c16_68 = arith.constant 16 : index
    %66 = vector.load %arg7[%c0_65, %c2_66, %c1_67, %c16_68] : memref<2x5x5x32xf32, #tpu.memory_space<vmem>>, vector<1x1x4x8xf32>
    %67 = vector.shape_cast %66 : vector<1x1x4x8xf32> to vector<4x8xf32>
    %68 = vector.shape_cast %65 : vector<4x8xf32> to vector<1x1x4x8xf32>
    tpu.vector_store %arg7[%c0_65, %c2_66, %c1_67, %c16_68], %68 {strides = array<i32>} : memref<2x5x5x32xf32, #tpu.memory_space<vmem>>, vector<1x1x4x8xf32>,
    %c32 = arith.constant 32 : index
    %c0_69 = arith.constant 0 : index
    %69 = tpu.strided_load %arg6[%c32, %c0_69] {strides = array<i32: 2, 1>} : memref<128x8xf32, #tpu.memory_space<vmem>>, vector<4x8xf32>
    %c0_70 = arith.constant 0 : index
    %c2_71 = arith.constant 2 : index
    %c0_72 = arith.constant 0 : index
    %c24_73 = arith.constant 24 : index
    %70 = vector.load %arg7[%c0_70, %c2_71, %c0_72, %c24_73] : memref<2x5x5x32xf32, #tpu.memory_space<vmem>>, vector<1x1x4x8xf32>
    %71 = vector.shape_cast %70 : vector<1x1x4x8xf32> to vector<4x8xf32>
    %72 = vector.shape_cast %69 : vector<4x8xf32> to vector<1x1x4x8xf32>
    tpu.vector_store %arg7[%c0_70, %c2_71, %c0_72, %c24_73], %72 {strides = array<i32>} : memref<2x5x5x32xf32, #tpu.memory_space<vmem>>, vector<1x1x4x8xf32>,
    %c41 = arith.constant 41 : index
    %c0_74 = arith.constant 0 : index
    %73 = tpu.strided_load %arg6[%c41, %c0_74] {strides = array<i32: 2, 1>} : memref<128x8xf32, #tpu.memory_space<vmem>>, vector<4x8xf32>
    %c0_75 = arith.constant 0 : index
    %c3_76 = arith.constant 3 : index
    %c1_77 = arith.constant 1 : index
    %c0_78 = arith.constant 0 : index
    %74 = vector.load %arg7[%c0_75, %c3_76, %c1_77, %c0_78] : memref<2x5x5x32xf32, #tpu.memory_space<vmem>>, vector<1x1x4x8xf32>
    %75 = vector.shape_cast %74 : vector<1x1x4x8xf32> to vector<4x8xf32>
    %76 = vector.shape_cast %73 : vector<4x8xf32> to vector<1x1x4x8xf32>
    tpu.vector_store %arg7[%c0_75, %c3_76, %c1_77, %c0_78], %76 {strides = array<i32>} : memref<2x5x5x32xf32, #tpu.memory_space<vmem>>, vector<1x1x4x8xf32>,
    %c40 = arith.constant 40 : index
    %c0_79 = arith.constant 0 : index
    %77 = tpu.strided_load %arg6[%c40, %c0_79] {strides = array<i32: 2, 1>} : memref<128x8xf32, #tpu.memory_space<vmem>>, vector<4x8xf32>
    %c0_80 = arith.constant 0 : index
    %c3_81 = arith.constant 3 : index
    %c0_82 = arith.constant 0 : index
    %c8_83 = arith.constant 8 : index
    %78 = vector.load %arg7[%c0_80, %c3_81, %c0_82, %c8_83] : memref<2x5x5x32xf32, #tpu.memory_space<vmem>>, vector<1x1x4x8xf32>
    %79 = vector.shape_cast %78 : vector<1x1x4x8xf32> to vector<4x8xf32>
    %80 = vector.shape_cast %77 : vector<4x8xf32> to vector<1x1x4x8xf32>
    tpu.vector_store %arg7[%c0_80, %c3_81, %c0_82, %c8_83], %80 {strides = array<i32>} : memref<2x5x5x32xf32, #tpu.memory_space<vmem>>, vector<1x1x4x8xf32>,
    %c49 = arith.constant 49 : index
    %c0_84 = arith.constant 0 : index
    %81 = tpu.strided_load %arg6[%c49, %c0_84] {strides = array<i32: 2, 1>} : memref<128x8xf32, #tpu.memory_space<vmem>>, vector<4x8xf32>
    %c0_85 = arith.constant 0 : index
    %c3_86 = arith.constant 3 : index
    %c1_87 = arith.constant 1 : index
    %c16_88 = arith.constant 16 : index
    %82 = vector.load %arg7[%c0_85, %c3_86, %c1_87, %c16_88] : memref<2x5x5x32xf32, #tpu.memory_space<vmem>>, vector<1x1x4x8xf32>
    %83 = vector.shape_cast %82 : vector<1x1x4x8xf32> to vector<4x8xf32>
    %84 = vector.shape_cast %81 : vector<4x8xf32> to vector<1x1x4x8xf32>
    tpu.vector_store %arg7[%c0_85, %c3_86, %c1_87, %c16_88], %84 {strides = array<i32>} : memref<2x5x5x32xf32, #tpu.memory_space<vmem>>, vector<1x1x4x8xf32>,
    %c48 = arith.constant 48 : index
    %c0_89 = arith.constant 0 : index
    %85 = tpu.strided_load %arg6[%c48, %c0_89] {strides = array<i32: 2, 1>} : memref<128x8xf32, #tpu.memory_space<vmem>>, vector<4x8xf32>
    %c0_90 = arith.constant 0 : index
    %c3_91 = arith.constant 3 : index
    %c0_92 = arith.constant 0 : index
    %c24_93 = arith.constant 24 : index
    %86 = vector.load %arg7[%c0_90, %c3_91, %c0_92, %c24_93] : memref<2x5x5x32xf32, #tpu.memory_space<vmem>>, vector<1x1x4x8xf32>
    %87 = vector.shape_cast %86 : vector<1x1x4x8xf32> to vector<4x8xf32>
    %88 = vector.shape_cast %85 : vector<4x8xf32> to vector<1x1x4x8xf32>
    tpu.vector_store %arg7[%c0_90, %c3_91, %c0_92, %c24_93], %88 {strides = array<i32>} : memref<2x5x5x32xf32, #tpu.memory_space<vmem>>, vector<1x1x4x8xf32>,
    %c57 = arith.constant 57 : index
    %c0_94 = arith.constant 0 : index
    %89 = tpu.strided_load %arg6[%c57, %c0_94] {strides = array<i32: 2, 1>} : memref<128x8xf32, #tpu.memory_space<vmem>>, vector<4x8xf32>
    %c0_95 = arith.constant 0 : index
    %c4_96 = arith.constant 4 : index
    %c1_97 = arith.constant 1 : index
    %c0_98 = arith.constant 0 : index
    %90 = vector.load %arg7[%c0_95, %c4_96, %c1_97, %c0_98] : memref<2x5x5x32xf32, #tpu.memory_space<vmem>>, vector<1x1x4x8xf32>
    %91 = vector.shape_cast %90 : vector<1x1x4x8xf32> to vector<4x8xf32>
    %92 = vector.shape_cast %89 : vector<4x8xf32> to vector<1x1x4x8xf32>
    tpu.vector_store %arg7[%c0_95, %c4_96, %c1_97, %c0_98], %92 {strides = array<i32>} : memref<2x5x5x32xf32, #tpu.memory_space<vmem>>, vector<1x1x4x8xf32>,
    %c56 = arith.constant 56 : index
    %c0_99 = arith.constant 0 : index
    %93 = tpu.strided_load %arg6[%c56, %c0_99] {strides = array<i32: 2, 1>} : memref<128x8xf32, #tpu.memory_space<vmem>>, vector<4x8xf32>
    %c0_100 = arith.constant 0 : index
    %c4_101 = arith.constant 4 : index
    %c0_102 = arith.constant 0 : index
    %c8_103 = arith.constant 8 : index
    %94 = vector.load %arg7[%c0_100, %c4_101, %c0_102, %c8_103] : memref<2x5x5x32xf32, #tpu.memory_space<vmem>>, vector<1x1x4x8xf32>
    %95 = vector.shape_cast %94 : vector<1x1x4x8xf32> to vector<4x8xf32>
    %96 = vector.shape_cast %93 : vector<4x8xf32> to vector<1x1x4x8xf32>
    tpu.vector_store %arg7[%c0_100, %c4_101, %c0_102, %c8_103], %96 {strides = array<i32>} : memref<2x5x5x32xf32, #tpu.memory_space<vmem>>, vector<1x1x4x8xf32>,
    %c65 = arith.constant 65 : index
    %c0_104 = arith.constant 0 : index
    %97 = tpu.strided_load %arg6[%c65, %c0_104] {strides = array<i32: 2, 1>} : memref<128x8xf32, #tpu.memory_space<vmem>>, vector<4x8xf32>
    %c1_105 = arith.constant 1 : index
    %c0_106 = arith.constant 0 : index
    %c1_107 = arith.constant 1 : index
    %c16_108 = arith.constant 16 : index
    %98 = vector.load %arg7[%c1_105, %c0_106, %c1_107, %c16_108] : memref<2x5x5x32xf32, #tpu.memory_space<vmem>>, vector<1x1x4x8xf32>
    %99 = vector.shape_cast %98 : vector<1x1x4x8xf32> to vector<4x8xf32>
    %100 = vector.shape_cast %97 : vector<4x8xf32> to vector<1x1x4x8xf32>
    tpu.vector_store %arg7[%c1_105, %c0_106, %c1_107, %c16_108], %100 {strides = array<i32>} : memref<2x5x5x32xf32, #tpu.memory_space<vmem>>, vector<1x1x4x8xf32>,
    %c64 = arith.constant 64 : index
    %c0_109 = arith.constant 0 : index
    %101 = tpu.strided_load %arg6[%c64, %c0_109] {strides = array<i32: 2, 1>} : memref<128x8xf32, #tpu.memory_space<vmem>>, vector<4x8xf32>
    %c1_110 = arith.constant 1 : index
    %c0_111 = arith.constant 0 : index
    %c0_112 = arith.constant 0 : index
    %c24_113 = arith.constant 24 : index
    %102 = vector.load %arg7[%c1_110, %c0_111, %c0_112, %c24_113] : memref<2x5x5x32xf32, #tpu.memory_space<vmem>>, vector<1x1x4x8xf32>
    %103 = vector.shape_cast %102 : vector<1x1x4x8xf32> to vector<4x8xf32>
    %104 = vector.shape_cast %101 : vector<4x8xf32> to vector<1x1x4x8xf32>
    tpu.vector_store %arg7[%c1_110, %c0_111, %c0_112, %c24_113], %104 {strides = array<i32>} : memref<2x5x5x32xf32, #tpu.memory_space<vmem>>, vector<1x1x4x8xf32>,
    %c73 = arith.constant 73 : index
    %c0_114 = arith.constant 0 : index
    %105 = tpu.strided_load %arg6[%c73, %c0_114] {strides = array<i32: 2, 1>} : memref<128x8xf32, #tpu.memory_space<vmem>>, vector<4x8xf32>
    %c1_115 = arith.constant 1 : index
    %c1_116 = arith.constant 1 : index
    %c1_117 = arith.constant 1 : index
    %c0_118 = arith.constant 0 : index
    %106 = vector.load %arg7[%c1_115, %c1_116, %c1_117, %c0_118] : memref<2x5x5x32xf32, #tpu.memory_space<vmem>>, vector<1x1x4x8xf32>
    %107 = vector.shape_cast %106 : vector<1x1x4x8xf32> to vector<4x8xf32>
    %108 = vector.shape_cast %105 : vector<4x8xf32> to vector<1x1x4x8xf32>
    tpu.vector_store %arg7[%c1_115, %c1_116, %c1_117, %c0_118], %108 {strides = array<i32>} : memref<2x5x5x32xf32, #tpu.memory_space<vmem>>, vector<1x1x4x8xf32>,
    %c72 = arith.constant 72 : index
    %c0_119 = arith.constant 0 : index
    %109 = tpu.strided_load %arg6[%c72, %c0_119] {strides = array<i32: 2, 1>} : memref<128x8xf32, #tpu.memory_space<vmem>>, vector<4x8xf32>
    %c1_120 = arith.constant 1 : index
    %c1_121 = arith.constant 1 : index
    %c0_122 = arith.constant 0 : index
    %c8_123 = arith.constant 8 : index
    %110 = vector.load %arg7[%c1_120, %c1_121, %c0_122, %c8_123] : memref<2x5x5x32xf32, #tpu.memory_space<vmem>>, vector<1x1x4x8xf32>
    %111 = vector.shape_cast %110 : vector<1x1x4x8xf32> to vector<4x8xf32>
    %112 = vector.shape_cast %109 : vector<4x8xf32> to vector<1x1x4x8xf32>
    tpu.vector_store %arg7[%c1_120, %c1_121, %c0_122, %c8_123], %112 {strides = array<i32>} : memref<2x5x5x32xf32, #tpu.memory_space<vmem>>, vector<1x1x4x8xf32>,
    %c81 = arith.constant 81 : index
    %c0_124 = arith.constant 0 : index
    %113 = tpu.strided_load %arg6[%c81, %c0_124] {strides = array<i32: 2, 1>} : memref<128x8xf32, #tpu.memory_space<vmem>>, vector<4x8xf32>
    %c1_125 = arith.constant 1 : index
    %c1_126 = arith.constant 1 : index
    %c1_127 = arith.constant 1 : index
    %c16_128 = arith.constant 16 : index
    %114 = vector.load %arg7[%c1_125, %c1_126, %c1_127, %c16_128] : memref<2x5x5x32xf32, #tpu.memory_space<vmem>>, vector<1x1x4x8xf32>
    %115 = vector.shape_cast %114 : vector<1x1x4x8xf32> to vector<4x8xf32>
    %116 = vector.shape_cast %113 : vector<4x8xf32> to vector<1x1x4x8xf32>
    tpu.vector_store %arg7[%c1_125, %c1_126, %c1_127, %c16_128], %116 {strides = array<i32>} : memref<2x5x5x32xf32, #tpu.memory_space<vmem>>, vector<1x1x4x8xf32>,
    %c80 = arith.constant 80 : index
    %c0_129 = arith.constant 0 : index
    %117 = tpu.strided_load %arg6[%c80, %c0_129] {strides = array<i32: 2, 1>} : memref<128x8xf32, #tpu.memory_space<vmem>>, vector<4x8xf32>
    %c1_130 = arith.constant 1 : index
    %c1_131 = arith.constant 1 : index
    %c0_132 = arith.constant 0 : index
    %c24_133 = arith.constant 24 : index
    %118 = vector.load %arg7[%c1_130, %c1_131, %c0_132, %c24_133] : memref<2x5x5x32xf32, #tpu.memory_space<vmem>>, vector<1x1x4x8xf32>
    %119 = vector.shape_cast %118 : vector<1x1x4x8xf32> to vector<4x8xf32>
    %120 = vector.shape_cast %117 : vector<4x8xf32> to vector<1x1x4x8xf32>
    tpu.vector_store %arg7[%c1_130, %c1_131, %c0_132, %c24_133], %120 {strides = array<i32>} : memref<2x5x5x32xf32, #tpu.memory_space<vmem>>, vector<1x1x4x8xf32>,
    %c89 = arith.constant 89 : index
    %c0_134 = arith.constant 0 : index
    %121 = tpu.strided_load %arg6[%c89, %c0_134] {strides = array<i32: 2, 1>} : memref<128x8xf32, #tpu.memory_space<vmem>>, vector<4x8xf32>
    %c1_135 = arith.constant 1 : index
    %c2_136 = arith.constant 2 : index
    %c1_137 = arith.constant 1 : index
    %c0_138 = arith.constant 0 : index
    %122 = vector.load %arg7[%c1_135, %c2_136, %c1_137, %c0_138] : memref<2x5x5x32xf32, #tpu.memory_space<vmem>>, vector<1x1x4x8xf32>
    %123 = vector.shape_cast %122 : vector<1x1x4x8xf32> to vector<4x8xf32>
    %124 = vector.shape_cast %121 : vector<4x8xf32> to vector<1x1x4x8xf32>
    tpu.vector_store %arg7[%c1_135, %c2_136, %c1_137, %c0_138], %124 {strides = array<i32>} : memref<2x5x5x32xf32, #tpu.memory_space<vmem>>, vector<1x1x4x8xf32>,
    %c88 = arith.constant 88 : index
    %c0_139 = arith.constant 0 : index
    %125 = tpu.strided_load %arg6[%c88, %c0_139] {strides = array<i32: 2, 1>} : memref<128x8xf32, #tpu.memory_space<vmem>>, vector<4x8xf32>
    %c1_140 = arith.constant 1 : index
    %c2_141 = arith.constant 2 : index
    %c0_142 = arith.constant 0 : index
    %c8_143 = arith.constant 8 : index
    %126 = vector.load %arg7[%c1_140, %c2_141, %c0_142, %c8_143] : memref<2x5x5x32xf32, #tpu.memory_space<vmem>>, vector<1x1x4x8xf32>
    %127 = vector.shape_cast %126 : vector<1x1x4x8xf32> to vector<4x8xf32>
    %128 = vector.shape_cast %125 : vector<4x8xf32> to vector<1x1x4x8xf32>
    tpu.vector_store %arg7[%c1_140, %c2_141, %c0_142, %c8_143], %128 {strides = array<i32>} : memref<2x5x5x32xf32, #tpu.memory_space<vmem>>, vector<1x1x4x8xf32>,
    %c97 = arith.constant 97 : index
    %c0_144 = arith.constant 0 : index
    %129 = tpu.strided_load %arg6[%c97, %c0_144] {strides = array<i32: 2, 1>} : memref<128x8xf32, #tpu.memory_space<vmem>>, vector<4x8xf32>
    %c1_145 = arith.constant 1 : index
    %c2_146 = arith.constant 2 : index
    %c1_147 = arith.constant 1 : index
    %c16_148 = arith.constant 16 : index
    %130 = vector.load %arg7[%c1_145, %c2_146, %c1_147, %c16_148] : memref<2x5x5x32xf32, #tpu.memory_space<vmem>>, vector<1x1x4x8xf32>
    %131 = vector.shape_cast %130 : vector<1x1x4x8xf32> to vector<4x8xf32>
    %132 = vector.shape_cast %129 : vector<4x8xf32> to vector<1x1x4x8xf32>
    tpu.vector_store %arg7[%c1_145, %c2_146, %c1_147, %c16_148], %132 {strides = array<i32>} : memref<2x5x5x32xf32, #tpu.memory_space<vmem>>, vector<1x1x4x8xf32>,
    %c96 = arith.constant 96 : index
    %c0_149 = arith.constant 0 : index
    %133 = tpu.strided_load %arg6[%c96, %c0_149] {strides = array<i32: 2, 1>} : memref<128x8xf32, #tpu.memory_space<vmem>>, vector<4x8xf32>
    %c1_150 = arith.constant 1 : index
    %c2_151 = arith.constant 2 : index
    %c0_152 = arith.constant 0 : index
    %c24_153 = arith.constant 24 : index
    %134 = vector.load %arg7[%c1_150, %c2_151, %c0_152, %c24_153] : memref<2x5x5x32xf32, #tpu.memory_space<vmem>>, vector<1x1x4x8xf32>
    %135 = vector.shape_cast %134 : vector<1x1x4x8xf32> to vector<4x8xf32>
    %136 = vector.shape_cast %133 : vector<4x8xf32> to vector<1x1x4x8xf32>
    tpu.vector_store %arg7[%c1_150, %c2_151, %c0_152, %c24_153], %136 {strides = array<i32>} : memref<2x5x5x32xf32, #tpu.memory_space<vmem>>, vector<1x1x4x8xf32>,
    %c105 = arith.constant 105 : index
    %c0_154 = arith.constant 0 : index
    %137 = tpu.strided_load %arg6[%c105, %c0_154] {strides = array<i32: 2, 1>} : memref<128x8xf32, #tpu.memory_space<vmem>>, vector<4x8xf32>
    %c1_155 = arith.constant 1 : index
    %c3_156 = arith.constant 3 : index
    %c1_157 = arith.constant 1 : index
    %c0_158 = arith.constant 0 : index
    %138 = vector.load %arg7[%c1_155, %c3_156, %c1_157, %c0_158] : memref<2x5x5x32xf32, #tpu.memory_space<vmem>>, vector<1x1x4x8xf32>
    %139 = vector.shape_cast %138 : vector<1x1x4x8xf32> to vector<4x8xf32>
    %140 = vector.shape_cast %137 : vector<4x8xf32> to vector<1x1x4x8xf32>
    tpu.vector_store %arg7[%c1_155, %c3_156, %c1_157, %c0_158], %140 {strides = array<i32>} : memref<2x5x5x32xf32, #tpu.memory_space<vmem>>, vector<1x1x4x8xf32>,
    %c104 = arith.constant 104 : index
    %c0_159 = arith.constant 0 : index
    %141 = tpu.strided_load %arg6[%c104, %c0_159] {strides = array<i32: 2, 1>} : memref<128x8xf32, #tpu.memory_space<vmem>>, vector<4x8xf32>
    %c1_160 = arith.constant 1 : index
    %c3_161 = arith.constant 3 : index
    %c0_162 = arith.constant 0 : index
    %c8_163 = arith.constant 8 : index
    %142 = vector.load %arg7[%c1_160, %c3_161, %c0_162, %c8_163] : memref<2x5x5x32xf32, #tpu.memory_space<vmem>>, vector<1x1x4x8xf32>
    %143 = vector.shape_cast %142 : vector<1x1x4x8xf32> to vector<4x8xf32>
    %144 = vector.shape_cast %141 : vector<4x8xf32> to vector<1x1x4x8xf32>
    tpu.vector_store %arg7[%c1_160, %c3_161, %c0_162, %c8_163], %144 {strides = array<i32>} : memref<2x5x5x32xf32, #tpu.memory_space<vmem>>, vector<1x1x4x8xf32>,
    %c113 = arith.constant 113 : index
    %c0_164 = arith.constant 0 : index
    %145 = tpu.strided_load %arg6[%c113, %c0_164] {strides = array<i32: 2, 1>} : memref<128x8xf32, #tpu.memory_space<vmem>>, vector<4x8xf32>
    %c1_165 = arith.constant 1 : index
    %c3_166 = arith.constant 3 : index
    %c1_167 = arith.constant 1 : index
    %c16_168 = arith.constant 16 : index
    %146 = vector.load %arg7[%c1_165, %c3_166, %c1_167, %c16_168] : memref<2x5x5x32xf32, #tpu.memory_space<vmem>>, vector<1x1x4x8xf32>
    %147 = vector.shape_cast %146 : vector<1x1x4x8xf32> to vector<4x8xf32>
    %148 = vector.shape_cast %145 : vector<4x8xf32> to vector<1x1x4x8xf32>
    tpu.vector_store %arg7[%c1_165, %c3_166, %c1_167, %c16_168], %148 {strides = array<i32>} : memref<2x5x5x32xf32, #tpu.memory_space<vmem>>, vector<1x1x4x8xf32>,
    %c112 = arith.constant 112 : index
    %c0_169 = arith.constant 0 : index
    %149 = tpu.strided_load %arg6[%c112, %c0_169] {strides = array<i32: 2, 1>} : memref<128x8xf32, #tpu.memory_space<vmem>>, vector<4x8xf32>
    %c1_170 = arith.constant 1 : index
    %c3_171 = arith.constant 3 : index
    %c0_172 = arith.constant 0 : index
    %c24_173 = arith.constant 24 : index
    %150 = vector.load %arg7[%c1_170, %c3_171, %c0_172, %c24_173] : memref<2x5x5x32xf32, #tpu.memory_space<vmem>>, vector<1x1x4x8xf32>
    %151 = vector.shape_cast %150 : vector<1x1x4x8xf32> to vector<4x8xf32>
    %152 = vector.shape_cast %149 : vector<4x8xf32> to vector<1x1x4x8xf32>
    tpu.vector_store %arg7[%c1_170, %c3_171, %c0_172, %c24_173], %152 {strides = array<i32>} : memref<2x5x5x32xf32, #tpu.memory_space<vmem>>, vector<1x1x4x8xf32>,
    %c121 = arith.constant 121 : index
    %c0_174 = arith.constant 0 : index
    %153 = tpu.strided_load %arg6[%c121, %c0_174] {strides = array<i32: 2, 1>} : memref<128x8xf32, #tpu.memory_space<vmem>>, vector<4x8xf32>
    %c1_175 = arith.constant 1 : index
    %c4_176 = arith.constant 4 : index
    %c1_177 = arith.constant 1 : index
    %c0_178 = arith.constant 0 : index
    %154 = vector.load %arg7[%c1_175, %c4_176, %c1_177, %c0_178] : memref<2x5x5x32xf32, #tpu.memory_space<vmem>>, vector<1x1x4x8xf32>
    %155 = vector.shape_cast %154 : vector<1x1x4x8xf32> to vector<4x8xf32>
    %156 = vector.shape_cast %153 : vector<4x8xf32> to vector<1x1x4x8xf32>
    tpu.vector_store %arg7[%c1_175, %c4_176, %c1_177, %c0_178], %156 {strides = array<i32>} : memref<2x5x5x32xf32, #tpu.memory_space<vmem>>, vector<1x1x4x8xf32>,
    %c120 = arith.constant 120 : index
    %c0_179 = arith.constant 0 : index
    %157 = tpu.strided_load %arg6[%c120, %c0_179] {strides = array<i32: 2, 1>} : memref<128x8xf32, #tpu.memory_space<vmem>>, vector<4x8xf32>
    %c1_180 = arith.constant 1 : index
    %c4_181 = arith.constant 4 : index
    %c0_182 = arith.constant 0 : index
    %c8_183 = arith.constant 8 : index
    %158 = vector.load %arg7[%c1_180, %c4_181, %c0_182, %c8_183] : memref<2x5x5x32xf32, #tpu.memory_space<vmem>>, vector<1x1x4x8xf32>
    %159 = vector.shape_cast %158 : vector<1x1x4x8xf32> to vector<4x8xf32>
    %160 = vector.shape_cast %157 : vector<4x8xf32> to vector<1x1x4x8xf32>
    tpu.vector_store %arg7[%c1_180, %c4_181, %c0_182, %c8_183], %160 {strides = array<i32>} : memref<2x5x5x32xf32, #tpu.memory_space<vmem>>, vector<1x1x4x8xf32>,
    %c0_184 = arith.constant 0 : index
    %c0_185 = arith.constant 0 : index
    %c0_186 = arith.constant 0 : index
    %c0_187 = arith.constant 0 : index
    %161 = vector.load %arg7[%c0_184, %c0_185, %c0_186, %c0_187] : memref<2x5x5x32xf32, #tpu.memory_space<vmem>>, vector<1x1x4x32xf32>
    %162 = vector.shape_cast %161 : vector<1x1x4x32xf32> to vector<4x32xf32>
    %163 = arith.truncf %162 : vector<4x32xf32> to vector<4x32xbf16>
    %c0_188 = arith.constant 0 : index
    %c0_189 = arith.constant 0 : index
    %164 = vector.load %arg8[%c0_188, %c0_189] : memref<32x128xbf16, #tpu.memory_space<vmem>>, vector<4x32xbf16>
    tpu.vector_store %arg8[%c0_188, %c0_189], %163 {strides = array<i32>} : memref<32x128xbf16, #tpu.memory_space<vmem>>, vector<4x32xbf16>,
    %c0_190 = arith.constant 0 : index
    %c1_191 = arith.constant 1 : index
    %c0_192 = arith.constant 0 : index
    %c0_193 = arith.constant 0 : index
    %165 = vector.load %arg7[%c0_190, %c1_191, %c0_192, %c0_193] : memref<2x5x5x32xf32, #tpu.memory_space<vmem>>, vector<1x1x4x32xf32>
    %166 = vector.shape_cast %165 : vector<1x1x4x32xf32> to vector<4x32xf32>
    %167 = arith.truncf %166 : vector<4x32xf32> to vector<4x32xbf16>
    %c4_194 = arith.constant 4 : index
    %c0_195 = arith.constant 0 : index
    %168 = vector.load %arg8[%c4_194, %c0_195] : memref<32x128xbf16, #tpu.memory_space<vmem>>, vector<4x32xbf16>
    tpu.vector_store %arg8[%c4_194, %c0_195], %167 {strides = array<i32>} : memref<32x128xbf16, #tpu.memory_space<vmem>>, vector<4x32xbf16>,
    %c0_196 = arith.constant 0 : index
    %c2_197 = arith.constant 2 : index
    %c0_198 = arith.constant 0 : index
    %c0_199 = arith.constant 0 : index
    %169 = vector.load %arg7[%c0_196, %c2_197, %c0_198, %c0_199] : memref<2x5x5x32xf32, #tpu.memory_space<vmem>>, vector<1x1x4x32xf32>
    %170 = vector.shape_cast %169 : vector<1x1x4x32xf32> to vector<4x32xf32>
    %171 = arith.truncf %170 : vector<4x32xf32> to vector<4x32xbf16>
    %c8_200 = arith.constant 8 : index
    %c0_201 = arith.constant 0 : index
    %172 = vector.load %arg8[%c8_200, %c0_201] : memref<32x128xbf16, #tpu.memory_space<vmem>>, vector<4x32xbf16>
    tpu.vector_store %arg8[%c8_200, %c0_201], %171 {strides = array<i32>} : memref<32x128xbf16, #tpu.memory_space<vmem>>, vector<4x32xbf16>,
    %c0_202 = arith.constant 0 : index
    %c3_203 = arith.constant 3 : index
    %c0_204 = arith.constant 0 : index
    %c0_205 = arith.constant 0 : index
    %173 = vector.load %arg7[%c0_202, %c3_203, %c0_204, %c0_205] : memref<2x5x5x32xf32, #tpu.memory_space<vmem>>, vector<1x1x4x32xf32>
    %174 = vector.shape_cast %173 : vector<1x1x4x32xf32> to vector<4x32xf32>
    %175 = arith.truncf %174 : vector<4x32xf32> to vector<4x32xbf16>
    %c12 = arith.constant 12 : index
    %c0_206 = arith.constant 0 : index
    %176 = vector.load %arg8[%c12, %c0_206] : memref<32x128xbf16, #tpu.memory_space<vmem>>, vector<4x32xbf16>
    tpu.vector_store %arg8[%c12, %c0_206], %175 {strides = array<i32>} : memref<32x128xbf16, #tpu.memory_space<vmem>>, vector<4x32xbf16>,
    %c1_207 = arith.constant 1 : index
    %c0_208 = arith.constant 0 : index
    %c0_209 = arith.constant 0 : index
    %c0_210 = arith.constant 0 : index
    %177 = vector.load %arg7[%c1_207, %c0_208, %c0_209, %c0_210] : memref<2x5x5x32xf32, #tpu.memory_space<vmem>>, vector<1x1x4x32xf32>
    %178 = vector.shape_cast %177 : vector<1x1x4x32xf32> to vector<4x32xf32>
    %179 = arith.truncf %178 : vector<4x32xf32> to vector<4x32xbf16>
    %c16_211 = arith.constant 16 : index
    %c0_212 = arith.constant 0 : index
    %180 = vector.load %arg8[%c16_211, %c0_212] : memref<32x128xbf16, #tpu.memory_space<vmem>>, vector<4x32xbf16>
    tpu.vector_store %arg8[%c16_211, %c0_212], %179 {strides = array<i32>} : memref<32x128xbf16, #tpu.memory_space<vmem>>, vector<4x32xbf16>,
    %c1_213 = arith.constant 1 : index
    %c1_214 = arith.constant 1 : index
    %c0_215 = arith.constant 0 : index
    %c0_216 = arith.constant 0 : index
    %181 = vector.load %arg7[%c1_213, %c1_214, %c0_215, %c0_216] : memref<2x5x5x32xf32, #tpu.memory_space<vmem>>, vector<1x1x4x32xf32>
    %182 = vector.shape_cast %181 : vector<1x1x4x32xf32> to vector<4x32xf32>
    %183 = arith.truncf %182 : vector<4x32xf32> to vector<4x32xbf16>
    %c20 = arith.constant 20 : index
    %c0_217 = arith.constant 0 : index
    %184 = vector.load %arg8[%c20, %c0_217] : memref<32x128xbf16, #tpu.memory_space<vmem>>, vector<4x32xbf16>
    tpu.vector_store %arg8[%c20, %c0_217], %183 {strides = array<i32>} : memref<32x128xbf16, #tpu.memory_space<vmem>>, vector<4x32xbf16>,
    %c1_218 = arith.constant 1 : index
    %c2_219 = arith.constant 2 : index
    %c0_220 = arith.constant 0 : index
    %c0_221 = arith.constant 0 : index
    %185 = vector.load %arg7[%c1_218, %c2_219, %c0_220, %c0_221] : memref<2x5x5x32xf32, #tpu.memory_space<vmem>>, vector<1x1x4x32xf32>
    %186 = vector.shape_cast %185 : vector<1x1x4x32xf32> to vector<4x32xf32>
    %187 = arith.truncf %186 : vector<4x32xf32> to vector<4x32xbf16>
    %c24_222 = arith.constant 24 : index
    %c0_223 = arith.constant 0 : index
    %188 = vector.load %arg8[%c24_222, %c0_223] : memref<32x128xbf16, #tpu.memory_space<vmem>>, vector<4x32xbf16>
    tpu.vector_store %arg8[%c24_222, %c0_223], %187 {strides = array<i32>} : memref<32x128xbf16, #tpu.memory_space<vmem>>, vector<4x32xbf16>,
    %c1_224 = arith.constant 1 : index
    %c3_225 = arith.constant 3 : index
    %c0_226 = arith.constant 0 : index
    %c0_227 = arith.constant 0 : index
    %189 = vector.load %arg7[%c1_224, %c3_225, %c0_226, %c0_227] : memref<2x5x5x32xf32, #tpu.memory_space<vmem>>, vector<1x1x4x32xf32>
    %190 = vector.shape_cast %189 : vector<1x1x4x32xf32> to vector<4x32xf32>
    %191 = arith.truncf %190 : vector<4x32xf32> to vector<4x32xbf16>
    %c28 = arith.constant 28 : index
    %c0_228 = arith.constant 0 : index
    %192 = vector.load %arg8[%c28, %c0_228] : memref<32x128xbf16, #tpu.memory_space<vmem>>, vector<4x32xbf16>
    tpu.vector_store %arg8[%c28, %c0_228], %191 {strides = array<i32>} : memref<32x128xbf16, #tpu.memory_space<vmem>>, vector<4x32xbf16>,
    %c0_229 = arith.constant 0 : index
    %c0_230 = arith.constant 0 : index
    %c1_231 = arith.constant 1 : index
    %c0_232 = arith.constant 0 : index
    %193 = vector.load %arg7[%c0_229, %c0_230, %c1_231, %c0_232] : memref<2x5x5x32xf32, #tpu.memory_space<vmem>>, vector<1x1x4x32xf32>
    %194 = vector.shape_cast %193 : vector<1x1x4x32xf32> to vector<4x32xf32>
    %195 = arith.truncf %194 : vector<4x32xf32> to vector<4x32xbf16>
    %c0_233 = arith.constant 0 : index
    %c32_234 = arith.constant 32 : index
    %196 = vector.load %arg8[%c0_233, %c32_234] : memref<32x128xbf16, #tpu.memory_space<vmem>>, vector<4x32xbf16>
    tpu.vector_store %arg8[%c0_233, %c32_234], %195 {strides = array<i32>} : memref<32x128xbf16, #tpu.memory_space<vmem>>, vector<4x32xbf16>,
    %c0_235 = arith.constant 0 : index
    %c1_236 = arith.constant 1 : index
    %c1_237 = arith.constant 1 : index
    %c0_238 = arith.constant 0 : index
    %197 = vector.load %arg7[%c0_235, %c1_236, %c1_237, %c0_238] : memref<2x5x5x32xf32, #tpu.memory_space<vmem>>, vector<1x1x4x32xf32>
    %198 = vector.shape_cast %197 : vector<1x1x4x32xf32> to vector<4x32xf32>
    %199 = arith.truncf %198 : vector<4x32xf32> to vector<4x32xbf16>
    %c4_239 = arith.constant 4 : index
    %c32_240 = arith.constant 32 : index
    %200 = vector.load %arg8[%c4_239, %c32_240] : memref<32x128xbf16, #tpu.memory_space<vmem>>, vector<4x32xbf16>
    tpu.vector_store %arg8[%c4_239, %c32_240], %199 {strides = array<i32>} : memref<32x128xbf16, #tpu.memory_space<vmem>>, vector<4x32xbf16>,
    %c0_241 = arith.constant 0 : index
    %c2_242 = arith.constant 2 : index
    %c1_243 = arith.constant 1 : index
    %c0_244 = arith.constant 0 : index
    %201 = vector.load %arg7[%c0_241, %c2_242, %c1_243, %c0_244] : memref<2x5x5x32xf32, #tpu.memory_space<vmem>>, vector<1x1x4x32xf32>
    %202 = vector.shape_cast %201 : vector<1x1x4x32xf32> to vector<4x32xf32>
    %203 = arith.truncf %202 : vector<4x32xf32> to vector<4x32xbf16>
    %c8_245 = arith.constant 8 : index
    %c32_246 = arith.constant 32 : index
    %204 = vector.load %arg8[%c8_245, %c32_246] : memref<32x128xbf16, #tpu.memory_space<vmem>>, vector<4x32xbf16>
    tpu.vector_store %arg8[%c8_245, %c32_246], %203 {strides = array<i32>} : memref<32x128xbf16, #tpu.memory_space<vmem>>, vector<4x32xbf16>,
    %c0_247 = arith.constant 0 : index
    %c3_248 = arith.constant 3 : index
    %c1_249 = arith.constant 1 : index
    %c0_250 = arith.constant 0 : index
    %205 = vector.load %arg7[%c0_247, %c3_248, %c1_249, %c0_250] : memref<2x5x5x32xf32, #tpu.memory_space<vmem>>, vector<1x1x4x32xf32>
    %206 = vector.shape_cast %205 : vector<1x1x4x32xf32> to vector<4x32xf32>
    %207 = arith.truncf %206 : vector<4x32xf32> to vector<4x32xbf16>
    %c12_251 = arith.constant 12 : index
    %c32_252 = arith.constant 32 : index
    %208 = vector.load %arg8[%c12_251, %c32_252] : memref<32x128xbf16, #tpu.memory_space<vmem>>, vector<4x32xbf16>
    tpu.vector_store %arg8[%c12_251, %c32_252], %207 {strides = array<i32>} : memref<32x128xbf16, #tpu.memory_space<vmem>>, vector<4x32xbf16>,
    %c1_253 = arith.constant 1 : index
    %c0_254 = arith.constant 0 : index
    %c1_255 = arith.constant 1 : index
    %c0_256 = arith.constant 0 : index
    %209 = vector.load %arg7[%c1_253, %c0_254, %c1_255, %c0_256] : memref<2x5x5x32xf32, #tpu.memory_space<vmem>>, vector<1x1x4x32xf32>
    %210 = vector.shape_cast %209 : vector<1x1x4x32xf32> to vector<4x32xf32>
    %211 = arith.truncf %210 : vector<4x32xf32> to vector<4x32xbf16>
    %c16_257 = arith.constant 16 : index
    %c32_258 = arith.constant 32 : index
    %212 = vector.load %arg8[%c16_257, %c32_258] : memref<32x128xbf16, #tpu.memory_space<vmem>>, vector<4x32xbf16>
    tpu.vector_store %arg8[%c16_257, %c32_258], %211 {strides = array<i32>} : memref<32x128xbf16, #tpu.memory_space<vmem>>, vector<4x32xbf16>,
    %c1_259 = arith.constant 1 : index
    %c1_260 = arith.constant 1 : index
    %c1_261 = arith.constant 1 : index
    %c0_262 = arith.constant 0 : index
    %213 = vector.load %arg7[%c1_259, %c1_260, %c1_261, %c0_262] : memref<2x5x5x32xf32, #tpu.memory_space<vmem>>, vector<1x1x4x32xf32>
    %214 = vector.shape_cast %213 : vector<1x1x4x32xf32> to vector<4x32xf32>
    %215 = arith.truncf %214 : vector<4x32xf32> to vector<4x32xbf16>
    %c20_263 = arith.constant 20 : index
    %c32_264 = arith.constant 32 : index
    %216 = vector.load %arg8[%c20_263, %c32_264] : memref<32x128xbf16, #tpu.memory_space<vmem>>, vector<4x32xbf16>
    tpu.vector_store %arg8[%c20_263, %c32_264], %215 {strides = array<i32>} : memref<32x128xbf16, #tpu.memory_space<vmem>>, vector<4x32xbf16>,
    %c1_265 = arith.constant 1 : index
    %c2_266 = arith.constant 2 : index
    %c1_267 = arith.constant 1 : index
    %c0_268 = arith.constant 0 : index
    %217 = vector.load %arg7[%c1_265, %c2_266, %c1_267, %c0_268] : memref<2x5x5x32xf32, #tpu.memory_space<vmem>>, vector<1x1x4x32xf32>
    %218 = vector.shape_cast %217 : vector<1x1x4x32xf32> to vector<4x32xf32>
    %219 = arith.truncf %218 : vector<4x32xf32> to vector<4x32xbf16>
    %c24_269 = arith.constant 24 : index
    %c32_270 = arith.constant 32 : index
    %220 = vector.load %arg8[%c24_269, %c32_270] : memref<32x128xbf16, #tpu.memory_space<vmem>>, vector<4x32xbf16>
    tpu.vector_store %arg8[%c24_269, %c32_270], %219 {strides = array<i32>} : memref<32x128xbf16, #tpu.memory_space<vmem>>, vector<4x32xbf16>,
    %c1_271 = arith.constant 1 : index
    %c3_272 = arith.constant 3 : index
    %c1_273 = arith.constant 1 : index
    %c0_274 = arith.constant 0 : index
    %221 = vector.load %arg7[%c1_271, %c3_272, %c1_273, %c0_274] : memref<2x5x5x32xf32, #tpu.memory_space<vmem>>, vector<1x1x4x32xf32>
    %222 = vector.shape_cast %221 : vector<1x1x4x32xf32> to vector<4x32xf32>
    %223 = arith.truncf %222 : vector<4x32xf32> to vector<4x32xbf16>
    %c28_275 = arith.constant 28 : index
    %c32_276 = arith.constant 32 : index
    %224 = vector.load %arg8[%c28_275, %c32_276] : memref<32x128xbf16, #tpu.memory_space<vmem>>, vector<4x32xbf16>
    tpu.vector_store %arg8[%c28_275, %c32_276], %223 {strides = array<i32>} : memref<32x128xbf16, #tpu.memory_space<vmem>>, vector<4x32xbf16>,
    %c0_277 = arith.constant 0 : index
    %c1_278 = arith.constant 1 : index
    %c0_279 = arith.constant 0 : index
    %c0_280 = arith.constant 0 : index
    %225 = vector.load %arg7[%c0_277, %c1_278, %c0_279, %c0_280] : memref<2x5x5x32xf32, #tpu.memory_space<vmem>>, vector<1x1x4x32xf32>
    %226 = vector.shape_cast %225 : vector<1x1x4x32xf32> to vector<4x32xf32>
    %227 = arith.truncf %226 : vector<4x32xf32> to vector<4x32xbf16>
    %c0_281 = arith.constant 0 : index
    %c64_282 = arith.constant 64 : index
    %228 = vector.load %arg8[%c0_281, %c64_282] : memref<32x128xbf16, #tpu.memory_space<vmem>>, vector<4x32xbf16>
    tpu.vector_store %arg8[%c0_281, %c64_282], %227 {strides = array<i32>} : memref<32x128xbf16, #tpu.memory_space<vmem>>, vector<4x32xbf16>,
    %c0_283 = arith.constant 0 : index
    %c2_284 = arith.constant 2 : index
    %c0_285 = arith.constant 0 : index
    %c0_286 = arith.constant 0 : index
    %229 = vector.load %arg7[%c0_283, %c2_284, %c0_285, %c0_286] : memref<2x5x5x32xf32, #tpu.memory_space<vmem>>, vector<1x1x4x32xf32>
    %230 = vector.shape_cast %229 : vector<1x1x4x32xf32> to vector<4x32xf32>
    %231 = arith.truncf %230 : vector<4x32xf32> to vector<4x32xbf16>
    %c4_287 = arith.constant 4 : index
    %c64_288 = arith.constant 64 : index
    %232 = vector.load %arg8[%c4_287, %c64_288] : memref<32x128xbf16, #tpu.memory_space<vmem>>, vector<4x32xbf16>
    tpu.vector_store %arg8[%c4_287, %c64_288], %231 {strides = array<i32>} : memref<32x128xbf16, #tpu.memory_space<vmem>>, vector<4x32xbf16>,
    %c0_289 = arith.constant 0 : index
    %c3_290 = arith.constant 3 : index
    %c0_291 = arith.constant 0 : index
    %c0_292 = arith.constant 0 : index
    %233 = vector.load %arg7[%c0_289, %c3_290, %c0_291, %c0_292] : memref<2x5x5x32xf32, #tpu.memory_space<vmem>>, vector<1x1x4x32xf32>
    %234 = vector.shape_cast %233 : vector<1x1x4x32xf32> to vector<4x32xf32>
    %235 = arith.truncf %234 : vector<4x32xf32> to vector<4x32xbf16>
    %c8_293 = arith.constant 8 : index
    %c64_294 = arith.constant 64 : index
    %236 = vector.load %arg8[%c8_293, %c64_294] : memref<32x128xbf16, #tpu.memory_space<vmem>>, vector<4x32xbf16>
    tpu.vector_store %arg8[%c8_293, %c64_294], %235 {strides = array<i32>} : memref<32x128xbf16, #tpu.memory_space<vmem>>, vector<4x32xbf16>,
    %c0_295 = arith.constant 0 : index
    %c4_296 = arith.constant 4 : index
    %c0_297 = arith.constant 0 : index
    %c0_298 = arith.constant 0 : index
    %237 = vector.load %arg7[%c0_295, %c4_296, %c0_297, %c0_298] : memref<2x5x5x32xf32, #tpu.memory_space<vmem>>, vector<1x1x4x32xf32>
    %238 = vector.shape_cast %237 : vector<1x1x4x32xf32> to vector<4x32xf32>
    %239 = arith.truncf %238 : vector<4x32xf32> to vector<4x32xbf16>
    %c12_299 = arith.constant 12 : index
    %c64_300 = arith.constant 64 : index
    %240 = vector.load %arg8[%c12_299, %c64_300] : memref<32x128xbf16, #tpu.memory_space<vmem>>, vector<4x32xbf16>
    tpu.vector_store %arg8[%c12_299, %c64_300], %239 {strides = array<i32>} : memref<32x128xbf16, #tpu.memory_space<vmem>>, vector<4x32xbf16>,
    %c1_301 = arith.constant 1 : index
    %c1_302 = arith.constant 1 : index
    %c0_303 = arith.constant 0 : index
    %c0_304 = arith.constant 0 : index
    %241 = vector.load %arg7[%c1_301, %c1_302, %c0_303, %c0_304] : memref<2x5x5x32xf32, #tpu.memory_space<vmem>>, vector<1x1x4x32xf32>
    %242 = vector.shape_cast %241 : vector<1x1x4x32xf32> to vector<4x32xf32>
    %243 = arith.truncf %242 : vector<4x32xf32> to vector<4x32xbf16>
    %c16_305 = arith.constant 16 : index
    %c64_306 = arith.constant 64 : index
    %244 = vector.load %arg8[%c16_305, %c64_306] : memref<32x128xbf16, #tpu.memory_space<vmem>>, vector<4x32xbf16>
    tpu.vector_store %arg8[%c16_305, %c64_306], %243 {strides = array<i32>} : memref<32x128xbf16, #tpu.memory_space<vmem>>, vector<4x32xbf16>,
    %c1_307 = arith.constant 1 : index
    %c2_308 = arith.constant 2 : index
    %c0_309 = arith.constant 0 : index
    %c0_310 = arith.constant 0 : index
    %245 = vector.load %arg7[%c1_307, %c2_308, %c0_309, %c0_310] : memref<2x5x5x32xf32, #tpu.memory_space<vmem>>, vector<1x1x4x32xf32>
    %246 = vector.shape_cast %245 : vector<1x1x4x32xf32> to vector<4x32xf32>
    %247 = arith.truncf %246 : vector<4x32xf32> to vector<4x32xbf16>
    %c20_311 = arith.constant 20 : index
    %c64_312 = arith.constant 64 : index
    %248 = vector.load %arg8[%c20_311, %c64_312] : memref<32x128xbf16, #tpu.memory_space<vmem>>, vector<4x32xbf16>
    tpu.vector_store %arg8[%c20_311, %c64_312], %247 {strides = array<i32>} : memref<32x128xbf16, #tpu.memory_space<vmem>>, vector<4x32xbf16>,
    %c1_313 = arith.constant 1 : index
    %c3_314 = arith.constant 3 : index
    %c0_315 = arith.constant 0 : index
    %c0_316 = arith.constant 0 : index
    %249 = vector.load %arg7[%c1_313, %c3_314, %c0_315, %c0_316] : memref<2x5x5x32xf32, #tpu.memory_space<vmem>>, vector<1x1x4x32xf32>
    %250 = vector.shape_cast %249 : vector<1x1x4x32xf32> to vector<4x32xf32>
    %251 = arith.truncf %250 : vector<4x32xf32> to vector<4x32xbf16>
    %c24_317 = arith.constant 24 : index
    %c64_318 = arith.constant 64 : index
    %252 = vector.load %arg8[%c24_317, %c64_318] : memref<32x128xbf16, #tpu.memory_space<vmem>>, vector<4x32xbf16>
    tpu.vector_store %arg8[%c24_317, %c64_318], %251 {strides = array<i32>} : memref<32x128xbf16, #tpu.memory_space<vmem>>, vector<4x32xbf16>,
    %c1_319 = arith.constant 1 : index
    %c4_320 = arith.constant 4 : index
    %c0_321 = arith.constant 0 : index
    %c0_322 = arith.constant 0 : index
    %253 = vector.load %arg7[%c1_319, %c4_320, %c0_321, %c0_322] : memref<2x5x5x32xf32, #tpu.memory_space<vmem>>, vector<1x1x4x32xf32>
    %254 = vector.shape_cast %253 : vector<1x1x4x32xf32> to vector<4x32xf32>
    %255 = arith.truncf %254 : vector<4x32xf32> to vector<4x32xbf16>
    %c28_323 = arith.constant 28 : index
    %c64_324 = arith.constant 64 : index
    %256 = vector.load %arg8[%c28_323, %c64_324] : memref<32x128xbf16, #tpu.memory_space<vmem>>, vector<4x32xbf16>
    tpu.vector_store %arg8[%c28_323, %c64_324], %255 {strides = array<i32>} : memref<32x128xbf16, #tpu.memory_space<vmem>>, vector<4x32xbf16>,
    %c0_325 = arith.constant 0 : index
    %c1_326 = arith.constant 1 : index
    %c1_327 = arith.constant 1 : index
    %c0_328 = arith.constant 0 : index
    %257 = vector.load %arg7[%c0_325, %c1_326, %c1_327, %c0_328] : memref<2x5x5x32xf32, #tpu.memory_space<vmem>>, vector<1x1x4x32xf32>
    %258 = vector.shape_cast %257 : vector<1x1x4x32xf32> to vector<4x32xf32>
    %259 = arith.truncf %258 : vector<4x32xf32> to vector<4x32xbf16>
    %c0_329 = arith.constant 0 : index
    %c96_330 = arith.constant 96 : index
    %260 = vector.load %arg8[%c0_329, %c96_330] : memref<32x128xbf16, #tpu.memory_space<vmem>>, vector<4x32xbf16>
    tpu.vector_store %arg8[%c0_329, %c96_330], %259 {strides = array<i32>} : memref<32x128xbf16, #tpu.memory_space<vmem>>, vector<4x32xbf16>,
    %c0_331 = arith.constant 0 : index
    %c2_332 = arith.constant 2 : index
    %c1_333 = arith.constant 1 : index
    %c0_334 = arith.constant 0 : index
    %261 = vector.load %arg7[%c0_331, %c2_332, %c1_333, %c0_334] : memref<2x5x5x32xf32, #tpu.memory_space<vmem>>, vector<1x1x4x32xf32>
    %262 = vector.shape_cast %261 : vector<1x1x4x32xf32> to vector<4x32xf32>
    %263 = arith.truncf %262 : vector<4x32xf32> to vector<4x32xbf16>
    %c4_335 = arith.constant 4 : index
    %c96_336 = arith.constant 96 : index
    %264 = vector.load %arg8[%c4_335, %c96_336] : memref<32x128xbf16, #tpu.memory_space<vmem>>, vector<4x32xbf16>
    tpu.vector_store %arg8[%c4_335, %c96_336], %263 {strides = array<i32>} : memref<32x128xbf16, #tpu.memory_space<vmem>>, vector<4x32xbf16>,
    %c0_337 = arith.constant 0 : index
    %c3_338 = arith.constant 3 : index
    %c1_339 = arith.constant 1 : index
    %c0_340 = arith.constant 0 : index
    %265 = vector.load %arg7[%c0_337, %c3_338, %c1_339, %c0_340] : memref<2x5x5x32xf32, #tpu.memory_space<vmem>>, vector<1x1x4x32xf32>
    %266 = vector.shape_cast %265 : vector<1x1x4x32xf32> to vector<4x32xf32>
    %267 = arith.truncf %266 : vector<4x32xf32> to vector<4x32xbf16>
    %c8_341 = arith.constant 8 : index
    %c96_342 = arith.constant 96 : index
    %268 = vector.load %arg8[%c8_341, %c96_342] : memref<32x128xbf16, #tpu.memory_space<vmem>>, vector<4x32xbf16>
    tpu.vector_store %arg8[%c8_341, %c96_342], %267 {strides = array<i32>} : memref<32x128xbf16, #tpu.memory_space<vmem>>, vector<4x32xbf16>,
    %c0_343 = arith.constant 0 : index
    %c4_344 = arith.constant 4 : index
    %c1_345 = arith.constant 1 : index
    %c0_346 = arith.constant 0 : index
    %269 = vector.load %arg7[%c0_343, %c4_344, %c1_345, %c0_346] : memref<2x5x5x32xf32, #tpu.memory_space<vmem>>, vector<1x1x4x32xf32>
    %270 = vector.shape_cast %269 : vector<1x1x4x32xf32> to vector<4x32xf32>
    %271 = arith.truncf %270 : vector<4x32xf32> to vector<4x32xbf16>
    %c12_347 = arith.constant 12 : index
    %c96_348 = arith.constant 96 : index
    %272 = vector.load %arg8[%c12_347, %c96_348] : memref<32x128xbf16, #tpu.memory_space<vmem>>, vector<4x32xbf16>
    tpu.vector_store %arg8[%c12_347, %c96_348], %271 {strides = array<i32>} : memref<32x128xbf16, #tpu.memory_space<vmem>>, vector<4x32xbf16>,
    %c1_349 = arith.constant 1 : index
    %c1_350 = arith.constant 1 : index
    %c1_351 = arith.constant 1 : index
    %c0_352 = arith.constant 0 : index
    %273 = vector.load %arg7[%c1_349, %c1_350, %c1_351, %c0_352] : memref<2x5x5x32xf32, #tpu.memory_space<vmem>>, vector<1x1x4x32xf32>
    %274 = vector.shape_cast %273 : vector<1x1x4x32xf32> to vector<4x32xf32>
    %275 = arith.truncf %274 : vector<4x32xf32> to vector<4x32xbf16>
    %c16_353 = arith.constant 16 : index
    %c96_354 = arith.constant 96 : index
    %276 = vector.load %arg8[%c16_353, %c96_354] : memref<32x128xbf16, #tpu.memory_space<vmem>>, vector<4x32xbf16>
    tpu.vector_store %arg8[%c16_353, %c96_354], %275 {strides = array<i32>} : memref<32x128xbf16, #tpu.memory_space<vmem>>, vector<4x32xbf16>,
    %c1_355 = arith.constant 1 : index
    %c2_356 = arith.constant 2 : index
    %c1_357 = arith.constant 1 : index
    %c0_358 = arith.constant 0 : index
    %277 = vector.load %arg7[%c1_355, %c2_356, %c1_357, %c0_358] : memref<2x5x5x32xf32, #tpu.memory_space<vmem>>, vector<1x1x4x32xf32>
    %278 = vector.shape_cast %277 : vector<1x1x4x32xf32> to vector<4x32xf32>
    %279 = arith.truncf %278 : vector<4x32xf32> to vector<4x32xbf16>
    %c20_359 = arith.constant 20 : index
    %c96_360 = arith.constant 96 : index
    %280 = vector.load %arg8[%c20_359, %c96_360] : memref<32x128xbf16, #tpu.memory_space<vmem>>, vector<4x32xbf16>
    tpu.vector_store %arg8[%c20_359, %c96_360], %279 {strides = array<i32>} : memref<32x128xbf16, #tpu.memory_space<vmem>>, vector<4x32xbf16>,
    %c1_361 = arith.constant 1 : index
    %c3_362 = arith.constant 3 : index
    %c1_363 = arith.constant 1 : index
    %c0_364 = arith.constant 0 : index
    %281 = vector.load %arg7[%c1_361, %c3_362, %c1_363, %c0_364] : memref<2x5x5x32xf32, #tpu.memory_space<vmem>>, vector<1x1x4x32xf32>
    %282 = vector.shape_cast %281 : vector<1x1x4x32xf32> to vector<4x32xf32>
    %283 = arith.truncf %282 : vector<4x32xf32> to vector<4x32xbf16>
    %c24_365 = arith.constant 24 : index
    %c96_366 = arith.constant 96 : index
    %284 = vector.load %arg8[%c24_365, %c96_366] : memref<32x128xbf16, #tpu.memory_space<vmem>>, vector<4x32xbf16>
    tpu.vector_store %arg8[%c24_365, %c96_366], %283 {strides = array<i32>} : memref<32x128xbf16, #tpu.memory_space<vmem>>, vector<4x32xbf16>,
    %c1_367 = arith.constant 1 : index
    %c4_368 = arith.constant 4 : index
    %c1_369 = arith.constant 1 : index
    %c0_370 = arith.constant 0 : index
    %285 = vector.load %arg7[%c1_367, %c4_368, %c1_369, %c0_370] : memref<2x5x5x32xf32, #tpu.memory_space<vmem>>, vector<1x1x4x32xf32>
    %286 = vector.shape_cast %285 : vector<1x1x4x32xf32> to vector<4x32xf32>
    %287 = arith.truncf %286 : vector<4x32xf32> to vector<4x32xbf16>
    %c28_371 = arith.constant 28 : index
    %c96_372 = arith.constant 96 : index
    %288 = vector.load %arg8[%c28_371, %c96_372] : memref<32x128xbf16, #tpu.memory_space<vmem>>, vector<4x32xbf16>
    tpu.vector_store %arg8[%c28_371, %c96_372], %287 {strides = array<i32>} : memref<32x128xbf16, #tpu.memory_space<vmem>>, vector<4x32xbf16>,
    %c0_373 = arith.constant 0 : index
    %c0_374 = arith.constant 0 : index
    %289 = vector.load %arg8[%c0_373, %c0_374] : memref<32x128xbf16, #tpu.memory_space<vmem>>, vector<32x128xbf16>
    %c0_375 = arith.constant 0 : index
    %c0_376 = arith.constant 0 : index
    %290 = vector.load %arg2[%c0_375, %c0_376] : memref<128x16xbf16, #tpu.memory_space<vmem>>, vector<128x16xbf16>
    %cst_377 = arith.constant dense<0.000000e+00> : vector<32x16xf32>
    %291 = tpu.matmul %289, %290, %cst_377 {dimension_numbers = #tpu.dot_dimension_numbers<[1], [0], [0], [1], [0, 0, 1, 1], [], []>} : vector<32x128xbf16>, vector<128x16xbf16>, vector<32x16xf32> -> vector<32x16xf32>
    %cst_378 = arith.constant dense<0.000000e+00> : vector<16xf32>
    %292 = vector.multi_reduction <add>, %291, %cst_378 [0] : vector<32x16xf32> to vector<16xf32>
    %293 = vector.shape_cast %292 : vector<16xf32> to vector<1x16xf32>
    %cst_379 = arith.constant 3.125000e-02 : f32
    %294 = vector.broadcast %cst_379 : f32 to vector<1x16xf32>
    %295 = arith.mulf %293, %294 : vector<1x16xf32>
    %296 = vector.broadcast %295 : vector<1x16xf32> to vector<32x16xf32>
    %297 = arith.subf %291, %296 : vector<32x16xf32>
    %298 = arith.mulf %297, %297 : vector<32x16xf32>
    %cst_380 = arith.constant dense<0.000000e+00> : vector<16xf32>
    %299 = vector.multi_reduction <add>, %298, %cst_380 [0] : vector<32x16xf32> to vector<16xf32>
    %300 = vector.shape_cast %299 : vector<16xf32> to vector<1x16xf32>
    %cst_381 = arith.constant 3.125000e-02 : f32
    %301 = vector.broadcast %cst_381 : f32 to vector<1x16xf32>
    %302 = arith.mulf %300, %301 : vector<1x16xf32>
    %cst_382 = arith.constant 9.99999974E-6 : f32
    %303 = vector.broadcast %cst_382 : f32 to vector<1x16xf32>
    %304 = arith.addf %302, %303 : vector<1x16xf32>
    %305 = math.rsqrt %304 : vector<1x16xf32>
    %306 = arith.mulf %2, %305 : vector<1x16xf32>
    %307 = vector.broadcast %306 : vector<1x16xf32> to vector<32x16xf32>
    %308 = arith.mulf %297, %307 : vector<32x16xf32>
    %309 = vector.broadcast %3 : vector<1x16xf32> to vector<32x16xf32>
    %310 = arith.addf %308, %309 : vector<32x16xf32>
    %cst_383 = arith.constant 2.000000e-01 : f32
    %311 = vector.broadcast %cst_383 : f32 to vector<32x16xf32>
    %312 = arith.mulf %311, %310 : vector<32x16xf32>
    %313 = arith.maximumf %310, %312 : vector<32x16xf32>
    %c0_384 = arith.constant 0 : index
    %c0_385 = arith.constant 0 : index
    %314 = vector.load %arg9[%c0_384, %c0_385] : memref<32x16xf32, #tpu.memory_space<vmem>>, vector<32x16xf32>
    tpu.vector_store %arg9[%c0_384, %c0_385], %313 {strides = array<i32>} : memref<32x16xf32, #tpu.memory_space<vmem>>, vector<32x16xf32>,
    %cst_386 = arith.constant 0.000000e+00 : f32
    %315 = vector.broadcast %cst_386 : f32 to vector<2x3x3x64xf32>
    %c0_387 = arith.constant 0 : index
    %c0_388 = arith.constant 0 : index
    %c0_389 = arith.constant 0 : index
    %c0_390 = arith.constant 0 : index
    %316 = vector.load %arg10[%c0_387, %c0_388, %c0_389, %c0_390] : memref<2x3x3x64xf32, #tpu.memory_space<vmem>>, vector<2x3x3x64xf32>
    tpu.vector_store %arg10[%c0_387, %c0_388, %c0_389, %c0_390], %315 {strides = array<i32>} : memref<2x3x3x64xf32, #tpu.memory_space<vmem>>, vector<2x3x3x64xf32>,
    %c1_391 = arith.constant 1 : index
    %c0_392 = arith.constant 0 : index
    %317 = tpu.strided_load %arg9[%c1_391, %c0_392] {strides = array<i32: 2, 1>} : memref<32x16xf32, #tpu.memory_space<vmem>>, vector<2x16xf32>
    %c0_393 = arith.constant 0 : index
    %c0_394 = arith.constant 0 : index
    %c1_395 = arith.constant 1 : index
    %c32_396 = arith.constant 32 : index
    %318 = vector.load %arg10[%c0_393, %c0_394, %c1_395, %c32_396] : memref<2x3x3x64xf32, #tpu.memory_space<vmem>>, vector<1x1x2x16xf32>
    %319 = vector.shape_cast %318 : vector<1x1x2x16xf32> to vector<2x16xf32>
    %320 = vector.shape_cast %317 : vector<2x16xf32> to vector<1x1x2x16xf32>
    tpu.vector_store %arg10[%c0_393, %c0_394, %c1_395, %c32_396], %320 {strides = array<i32>} : memref<2x3x3x64xf32, #tpu.memory_space<vmem>>, vector<1x1x2x16xf32>,
    %c0_397 = arith.constant 0 : index
    %c0_398 = arith.constant 0 : index
    %321 = tpu.strided_load %arg9[%c0_397, %c0_398] {strides = array<i32: 2, 1>} : memref<32x16xf32, #tpu.memory_space<vmem>>, vector<2x16xf32>
    %c0_399 = arith.constant 0 : index
    %c0_400 = arith.constant 0 : index
    %c0_401 = arith.constant 0 : index
    %c48_402 = arith.constant 48 : index
    %322 = vector.load %arg10[%c0_399, %c0_400, %c0_401, %c48_402] : memref<2x3x3x64xf32, #tpu.memory_space<vmem>>, vector<1x1x2x16xf32>
    %323 = vector.shape_cast %322 : vector<1x1x2x16xf32> to vector<2x16xf32>
    %324 = vector.shape_cast %321 : vector<2x16xf32> to vector<1x1x2x16xf32>
    tpu.vector_store %arg10[%c0_399, %c0_400, %c0_401, %c48_402], %324 {strides = array<i32>} : memref<2x3x3x64xf32, #tpu.memory_space<vmem>>, vector<1x1x2x16xf32>,
    %c5 = arith.constant 5 : index
    %c0_403 = arith.constant 0 : index
    %325 = tpu.strided_load %arg9[%c5, %c0_403] {strides = array<i32: 2, 1>} : memref<32x16xf32, #tpu.memory_space<vmem>>, vector<2x16xf32>
    %c0_404 = arith.constant 0 : index
    %c1_405 = arith.constant 1 : index
    %c1_406 = arith.constant 1 : index
    %c0_407 = arith.constant 0 : index
    %326 = vector.load %arg10[%c0_404, %c1_405, %c1_406, %c0_407] : memref<2x3x3x64xf32, #tpu.memory_space<vmem>>, vector<1x1x2x16xf32>
    %327 = vector.shape_cast %326 : vector<1x1x2x16xf32> to vector<2x16xf32>
    %328 = vector.shape_cast %325 : vector<2x16xf32> to vector<1x1x2x16xf32>
    tpu.vector_store %arg10[%c0_404, %c1_405, %c1_406, %c0_407], %328 {strides = array<i32>} : memref<2x3x3x64xf32, #tpu.memory_space<vmem>>, vector<1x1x2x16xf32>,
    %c4_408 = arith.constant 4 : index
    %c0_409 = arith.constant 0 : index
    %329 = tpu.strided_load %arg9[%c4_408, %c0_409] {strides = array<i32: 2, 1>} : memref<32x16xf32, #tpu.memory_space<vmem>>, vector<2x16xf32>
    %c0_410 = arith.constant 0 : index
    %c1_411 = arith.constant 1 : index
    %c0_412 = arith.constant 0 : index
    %c16_413 = arith.constant 16 : index
    %330 = vector.load %arg10[%c0_410, %c1_411, %c0_412, %c16_413] : memref<2x3x3x64xf32, #tpu.memory_space<vmem>>, vector<1x1x2x16xf32>
    %331 = vector.shape_cast %330 : vector<1x1x2x16xf32> to vector<2x16xf32>
    %332 = vector.shape_cast %329 : vector<2x16xf32> to vector<1x1x2x16xf32>
    tpu.vector_store %arg10[%c0_410, %c1_411, %c0_412, %c16_413], %332 {strides = array<i32>} : memref<2x3x3x64xf32, #tpu.memory_space<vmem>>, vector<1x1x2x16xf32>,
    %c9_414 = arith.constant 9 : index
    %c0_415 = arith.constant 0 : index
    %333 = tpu.strided_load %arg9[%c9_414, %c0_415] {strides = array<i32: 2, 1>} : memref<32x16xf32, #tpu.memory_space<vmem>>, vector<2x16xf32>
    %c0_416 = arith.constant 0 : index
    %c1_417 = arith.constant 1 : index
    %c1_418 = arith.constant 1 : index
    %c32_419 = arith.constant 32 : index
    %334 = vector.load %arg10[%c0_416, %c1_417, %c1_418, %c32_419] : memref<2x3x3x64xf32, #tpu.memory_space<vmem>>, vector<1x1x2x16xf32>
    %335 = vector.shape_cast %334 : vector<1x1x2x16xf32> to vector<2x16xf32>
    %336 = vector.shape_cast %333 : vector<2x16xf32> to vector<1x1x2x16xf32>
    tpu.vector_store %arg10[%c0_416, %c1_417, %c1_418, %c32_419], %336 {strides = array<i32>} : memref<2x3x3x64xf32, #tpu.memory_space<vmem>>, vector<1x1x2x16xf32>,
    %c8_420 = arith.constant 8 : index
    %c0_421 = arith.constant 0 : index
    %337 = tpu.strided_load %arg9[%c8_420, %c0_421] {strides = array<i32: 2, 1>} : memref<32x16xf32, #tpu.memory_space<vmem>>, vector<2x16xf32>
    %c0_422 = arith.constant 0 : index
    %c1_423 = arith.constant 1 : index
    %c0_424 = arith.constant 0 : index
    %c48_425 = arith.constant 48 : index
    %338 = vector.load %arg10[%c0_422, %c1_423, %c0_424, %c48_425] : memref<2x3x3x64xf32, #tpu.memory_space<vmem>>, vector<1x1x2x16xf32>
    %339 = vector.shape_cast %338 : vector<1x1x2x16xf32> to vector<2x16xf32>
    %340 = vector.shape_cast %337 : vector<2x16xf32> to vector<1x1x2x16xf32>
    tpu.vector_store %arg10[%c0_422, %c1_423, %c0_424, %c48_425], %340 {strides = array<i32>} : memref<2x3x3x64xf32, #tpu.memory_space<vmem>>, vector<1x1x2x16xf32>,
    %c13 = arith.constant 13 : index
    %c0_426 = arith.constant 0 : index
    %341 = tpu.strided_load %arg9[%c13, %c0_426] {strides = array<i32: 2, 1>} : memref<32x16xf32, #tpu.memory_space<vmem>>, vector<2x16xf32>
    %c0_427 = arith.constant 0 : index
    %c2_428 = arith.constant 2 : index
    %c1_429 = arith.constant 1 : index
    %c0_430 = arith.constant 0 : index
    %342 = vector.load %arg10[%c0_427, %c2_428, %c1_429, %c0_430] : memref<2x3x3x64xf32, #tpu.memory_space<vmem>>, vector<1x1x2x16xf32>
    %343 = vector.shape_cast %342 : vector<1x1x2x16xf32> to vector<2x16xf32>
    %344 = vector.shape_cast %341 : vector<2x16xf32> to vector<1x1x2x16xf32>
    tpu.vector_store %arg10[%c0_427, %c2_428, %c1_429, %c0_430], %344 {strides = array<i32>} : memref<2x3x3x64xf32, #tpu.memory_space<vmem>>, vector<1x1x2x16xf32>,
    %c12_431 = arith.constant 12 : index
    %c0_432 = arith.constant 0 : index
    %345 = tpu.strided_load %arg9[%c12_431, %c0_432] {strides = array<i32: 2, 1>} : memref<32x16xf32, #tpu.memory_space<vmem>>, vector<2x16xf32>
    %c0_433 = arith.constant 0 : index
    %c2_434 = arith.constant 2 : index
    %c0_435 = arith.constant 0 : index
    %c16_436 = arith.constant 16 : index
    %346 = vector.load %arg10[%c0_433, %c2_434, %c0_435, %c16_436] : memref<2x3x3x64xf32, #tpu.memory_space<vmem>>, vector<1x1x2x16xf32>
    %347 = vector.shape_cast %346 : vector<1x1x2x16xf32> to vector<2x16xf32>
    %348 = vector.shape_cast %345 : vector<2x16xf32> to vector<1x1x2x16xf32>
    tpu.vector_store %arg10[%c0_433, %c2_434, %c0_435, %c16_436], %348 {strides = array<i32>} : memref<2x3x3x64xf32, #tpu.memory_space<vmem>>, vector<1x1x2x16xf32>,
    %c17_437 = arith.constant 17 : index
    %c0_438 = arith.constant 0 : index
    %349 = tpu.strided_load %arg9[%c17_437, %c0_438] {strides = array<i32: 2, 1>} : memref<32x16xf32, #tpu.memory_space<vmem>>, vector<2x16xf32>
    %c1_439 = arith.constant 1 : index
    %c0_440 = arith.constant 0 : index
    %c1_441 = arith.constant 1 : index
    %c32_442 = arith.constant 32 : index
    %350 = vector.load %arg10[%c1_439, %c0_440, %c1_441, %c32_442] : memref<2x3x3x64xf32, #tpu.memory_space<vmem>>, vector<1x1x2x16xf32>
    %351 = vector.shape_cast %350 : vector<1x1x2x16xf32> to vector<2x16xf32>
    %352 = vector.shape_cast %349 : vector<2x16xf32> to vector<1x1x2x16xf32>
    tpu.vector_store %arg10[%c1_439, %c0_440, %c1_441, %c32_442], %352 {strides = array<i32>} : memref<2x3x3x64xf32, #tpu.memory_space<vmem>>, vector<1x1x2x16xf32>,
    %c16_443 = arith.constant 16 : index
    %c0_444 = arith.constant 0 : index
    %353 = tpu.strided_load %arg9[%c16_443, %c0_444] {strides = array<i32: 2, 1>} : memref<32x16xf32, #tpu.memory_space<vmem>>, vector<2x16xf32>
    %c1_445 = arith.constant 1 : index
    %c0_446 = arith.constant 0 : index
    %c0_447 = arith.constant 0 : index
    %c48_448 = arith.constant 48 : index
    %354 = vector.load %arg10[%c1_445, %c0_446, %c0_447, %c48_448] : memref<2x3x3x64xf32, #tpu.memory_space<vmem>>, vector<1x1x2x16xf32>
    %355 = vector.shape_cast %354 : vector<1x1x2x16xf32> to vector<2x16xf32>
    %356 = vector.shape_cast %353 : vector<2x16xf32> to vector<1x1x2x16xf32>
    tpu.vector_store %arg10[%c1_445, %c0_446, %c0_447, %c48_448], %356 {strides = array<i32>} : memref<2x3x3x64xf32, #tpu.memory_space<vmem>>, vector<1x1x2x16xf32>,
    %c21 = arith.constant 21 : index
    %c0_449 = arith.constant 0 : index
    %357 = tpu.strided_load %arg9[%c21, %c0_449] {strides = array<i32: 2, 1>} : memref<32x16xf32, #tpu.memory_space<vmem>>, vector<2x16xf32>
    %c1_450 = arith.constant 1 : index
    %c1_451 = arith.constant 1 : index
    %c1_452 = arith.constant 1 : index
    %c0_453 = arith.constant 0 : index
    %358 = vector.load %arg10[%c1_450, %c1_451, %c1_452, %c0_453] : memref<2x3x3x64xf32, #tpu.memory_space<vmem>>, vector<1x1x2x16xf32>
    %359 = vector.shape_cast %358 : vector<1x1x2x16xf32> to vector<2x16xf32>
    %360 = vector.shape_cast %357 : vector<2x16xf32> to vector<1x1x2x16xf32>
    tpu.vector_store %arg10[%c1_450, %c1_451, %c1_452, %c0_453], %360 {strides = array<i32>} : memref<2x3x3x64xf32, #tpu.memory_space<vmem>>, vector<1x1x2x16xf32>,
    %c20_454 = arith.constant 20 : index
    %c0_455 = arith.constant 0 : index
    %361 = tpu.strided_load %arg9[%c20_454, %c0_455] {strides = array<i32: 2, 1>} : memref<32x16xf32, #tpu.memory_space<vmem>>, vector<2x16xf32>
    %c1_456 = arith.constant 1 : index
    %c1_457 = arith.constant 1 : index
    %c0_458 = arith.constant 0 : index
    %c16_459 = arith.constant 16 : index
    %362 = vector.load %arg10[%c1_456, %c1_457, %c0_458, %c16_459] : memref<2x3x3x64xf32, #tpu.memory_space<vmem>>, vector<1x1x2x16xf32>
    %363 = vector.shape_cast %362 : vector<1x1x2x16xf32> to vector<2x16xf32>
    %364 = vector.shape_cast %361 : vector<2x16xf32> to vector<1x1x2x16xf32>
    tpu.vector_store %arg10[%c1_456, %c1_457, %c0_458, %c16_459], %364 {strides = array<i32>} : memref<2x3x3x64xf32, #tpu.memory_space<vmem>>, vector<1x1x2x16xf32>,
    %c25_460 = arith.constant 25 : index
    %c0_461 = arith.constant 0 : index
    %365 = tpu.strided_load %arg9[%c25_460, %c0_461] {strides = array<i32: 2, 1>} : memref<32x16xf32, #tpu.memory_space<vmem>>, vector<2x16xf32>
    %c1_462 = arith.constant 1 : index
    %c1_463 = arith.constant 1 : index
    %c1_464 = arith.constant 1 : index
    %c32_465 = arith.constant 32 : index
    %366 = vector.load %arg10[%c1_462, %c1_463, %c1_464, %c32_465] : memref<2x3x3x64xf32, #tpu.memory_space<vmem>>, vector<1x1x2x16xf32>
    %367 = vector.shape_cast %366 : vector<1x1x2x16xf32> to vector<2x16xf32>
    %368 = vector.shape_cast %365 : vector<2x16xf32> to vector<1x1x2x16xf32>
    tpu.vector_store %arg10[%c1_462, %c1_463, %c1_464, %c32_465], %368 {strides = array<i32>} : memref<2x3x3x64xf32, #tpu.memory_space<vmem>>, vector<1x1x2x16xf32>,
    %c24_466 = arith.constant 24 : index
    %c0_467 = arith.constant 0 : index
    %369 = tpu.strided_load %arg9[%c24_466, %c0_467] {strides = array<i32: 2, 1>} : memref<32x16xf32, #tpu.memory_space<vmem>>, vector<2x16xf32>
    %c1_468 = arith.constant 1 : index
    %c1_469 = arith.constant 1 : index
    %c0_470 = arith.constant 0 : index
    %c48_471 = arith.constant 48 : index
    %370 = vector.load %arg10[%c1_468, %c1_469, %c0_470, %c48_471] : memref<2x3x3x64xf32, #tpu.memory_space<vmem>>, vector<1x1x2x16xf32>
    %371 = vector.shape_cast %370 : vector<1x1x2x16xf32> to vector<2x16xf32>
    %372 = vector.shape_cast %369 : vector<2x16xf32> to vector<1x1x2x16xf32>
    tpu.vector_store %arg10[%c1_468, %c1_469, %c0_470, %c48_471], %372 {strides = array<i32>} : memref<2x3x3x64xf32, #tpu.memory_space<vmem>>, vector<1x1x2x16xf32>,
    %c29 = arith.constant 29 : index
    %c0_472 = arith.constant 0 : index
    %373 = tpu.strided_load %arg9[%c29, %c0_472] {strides = array<i32: 2, 1>} : memref<32x16xf32, #tpu.memory_space<vmem>>, vector<2x16xf32>
    %c1_473 = arith.constant 1 : index
    %c2_474 = arith.constant 2 : index
    %c1_475 = arith.constant 1 : index
    %c0_476 = arith.constant 0 : index
    %374 = vector.load %arg10[%c1_473, %c2_474, %c1_475, %c0_476] : memref<2x3x3x64xf32, #tpu.memory_space<vmem>>, vector<1x1x2x16xf32>
    %375 = vector.shape_cast %374 : vector<1x1x2x16xf32> to vector<2x16xf32>
    %376 = vector.shape_cast %373 : vector<2x16xf32> to vector<1x1x2x16xf32>
    tpu.vector_store %arg10[%c1_473, %c2_474, %c1_475, %c0_476], %376 {strides = array<i32>} : memref<2x3x3x64xf32, #tpu.memory_space<vmem>>, vector<1x1x2x16xf32>,
    %c28_477 = arith.constant 28 : index
    %c0_478 = arith.constant 0 : index
    %377 = tpu.strided_load %arg9[%c28_477, %c0_478] {strides = array<i32: 2, 1>} : memref<32x16xf32, #tpu.memory_space<vmem>>, vector<2x16xf32>
    %c1_479 = arith.constant 1 : index
    %c2_480 = arith.constant 2 : index
    %c0_481 = arith.constant 0 : index
    %c16_482 = arith.constant 16 : index
    %378 = vector.load %arg10[%c1_479, %c2_480, %c0_481, %c16_482] : memref<2x3x3x64xf32, #tpu.memory_space<vmem>>, vector<1x1x2x16xf32>
    %379 = vector.shape_cast %378 : vector<1x1x2x16xf32> to vector<2x16xf32>
    %380 = vector.shape_cast %377 : vector<2x16xf32> to vector<1x1x2x16xf32>
    tpu.vector_store %arg10[%c1_479, %c2_480, %c0_481, %c16_482], %380 {strides = array<i32>} : memref<2x3x3x64xf32, #tpu.memory_space<vmem>>, vector<1x1x2x16xf32>,
    %c0_483 = arith.constant 0 : index
    %c0_484 = arith.constant 0 : index
    %c0_485 = arith.constant 0 : index
    %c0_486 = arith.constant 0 : index
    %381 = vector.load %arg10[%c0_483, %c0_484, %c0_485, %c0_486] : memref<2x3x3x64xf32, #tpu.memory_space<vmem>>, vector<1x1x2x64xf32>
    %382 = vector.shape_cast %381 : vector<1x1x2x64xf32> to vector<2x64xf32>
    %383 = arith.truncf %382 : vector<2x64xf32> to vector<2x64xbf16>
    %c0_487 = arith.constant 0 : index
    %c0_488 = arith.constant 0 : index
    %384 = vector.load %arg11[%c0_487, %c0_488] : memref<8x256xbf16, #tpu.memory_space<vmem>>, vector<2x64xbf16>
    tpu.vector_store %arg11[%c0_487, %c0_488], %383 {strides = array<i32>} : memref<8x256xbf16, #tpu.memory_space<vmem>>, vector<2x64xbf16>,
    %c0_489 = arith.constant 0 : index
    %c1_490 = arith.constant 1 : index
    %c0_491 = arith.constant 0 : index
    %c0_492 = arith.constant 0 : index
    %385 = vector.load %arg10[%c0_489, %c1_490, %c0_491, %c0_492] : memref<2x3x3x64xf32, #tpu.memory_space<vmem>>, vector<1x1x2x64xf32>
    %386 = vector.shape_cast %385 : vector<1x1x2x64xf32> to vector<2x64xf32>
    %387 = arith.truncf %386 : vector<2x64xf32> to vector<2x64xbf16>
    %c2_493 = arith.constant 2 : index
    %c0_494 = arith.constant 0 : index
    %388 = vector.load %arg11[%c2_493, %c0_494] : memref<8x256xbf16, #tpu.memory_space<vmem>>, vector<2x64xbf16>
    tpu.vector_store %arg11[%c2_493, %c0_494], %387 {strides = array<i32>} : memref<8x256xbf16, #tpu.memory_space<vmem>>, vector<2x64xbf16>,
    %c1_495 = arith.constant 1 : index
    %c0_496 = arith.constant 0 : index
    %c0_497 = arith.constant 0 : index
    %c0_498 = arith.constant 0 : index
    %389 = vector.load %arg10[%c1_495, %c0_496, %c0_497, %c0_498] : memref<2x3x3x64xf32, #tpu.memory_space<vmem>>, vector<1x1x2x64xf32>
    %390 = vector.shape_cast %389 : vector<1x1x2x64xf32> to vector<2x64xf32>
    %391 = arith.truncf %390 : vector<2x64xf32> to vector<2x64xbf16>
    %c4_499 = arith.constant 4 : index
    %c0_500 = arith.constant 0 : index
    %392 = vector.load %arg11[%c4_499, %c0_500] : memref<8x256xbf16, #tpu.memory_space<vmem>>, vector<2x64xbf16>
    tpu.vector_store %arg11[%c4_499, %c0_500], %391 {strides = array<i32>} : memref<8x256xbf16, #tpu.memory_space<vmem>>, vector<2x64xbf16>,
    %c1_501 = arith.constant 1 : index
    %c1_502 = arith.constant 1 : index
    %c0_503 = arith.constant 0 : index
    %c0_504 = arith.constant 0 : index
    %393 = vector.load %arg10[%c1_501, %c1_502, %c0_503, %c0_504] : memref<2x3x3x64xf32, #tpu.memory_space<vmem>>, vector<1x1x2x64xf32>
    %394 = vector.shape_cast %393 : vector<1x1x2x64xf32> to vector<2x64xf32>
    %395 = arith.truncf %394 : vector<2x64xf32> to vector<2x64xbf16>
    %c6 = arith.constant 6 : index
    %c0_505 = arith.constant 0 : index
    %396 = vector.load %arg11[%c6, %c0_505] : memref<8x256xbf16, #tpu.memory_space<vmem>>, vector<2x64xbf16>
    tpu.vector_store %arg11[%c6, %c0_505], %395 {strides = array<i32>} : memref<8x256xbf16, #tpu.memory_space<vmem>>, vector<2x64xbf16>,
    %c0_506 = arith.constant 0 : index
    %c0_507 = arith.constant 0 : index
    %c1_508 = arith.constant 1 : index
    %c0_509 = arith.constant 0 : index
    %397 = vector.load %arg10[%c0_506, %c0_507, %c1_508, %c0_509] : memref<2x3x3x64xf32, #tpu.memory_space<vmem>>, vector<1x1x2x64xf32>
    %398 = vector.shape_cast %397 : vector<1x1x2x64xf32> to vector<2x64xf32>
    %399 = arith.truncf %398 : vector<2x64xf32> to vector<2x64xbf16>
    %c0_510 = arith.constant 0 : index
    %c64_511 = arith.constant 64 : index
    %400 = vector.load %arg11[%c0_510, %c64_511] : memref<8x256xbf16, #tpu.memory_space<vmem>>, vector<2x64xbf16>
    tpu.vector_store %arg11[%c0_510, %c64_511], %399 {strides = array<i32>} : memref<8x256xbf16, #tpu.memory_space<vmem>>, vector<2x64xbf16>,
    %c0_512 = arith.constant 0 : index
    %c1_513 = arith.constant 1 : index
    %c1_514 = arith.constant 1 : index
    %c0_515 = arith.constant 0 : index
    %401 = vector.load %arg10[%c0_512, %c1_513, %c1_514, %c0_515] : memref<2x3x3x64xf32, #tpu.memory_space<vmem>>, vector<1x1x2x64xf32>
    %402 = vector.shape_cast %401 : vector<1x1x2x64xf32> to vector<2x64xf32>
    %403 = arith.truncf %402 : vector<2x64xf32> to vector<2x64xbf16>
    %c2_516 = arith.constant 2 : index
    %c64_517 = arith.constant 64 : index
    %404 = vector.load %arg11[%c2_516, %c64_517] : memref<8x256xbf16, #tpu.memory_space<vmem>>, vector<2x64xbf16>
    tpu.vector_store %arg11[%c2_516, %c64_517], %403 {strides = array<i32>} : memref<8x256xbf16, #tpu.memory_space<vmem>>, vector<2x64xbf16>,
    %c1_518 = arith.constant 1 : index
    %c0_519 = arith.constant 0 : index
    %c1_520 = arith.constant 1 : index
    %c0_521 = arith.constant 0 : index
    %405 = vector.load %arg10[%c1_518, %c0_519, %c1_520, %c0_521] : memref<2x3x3x64xf32, #tpu.memory_space<vmem>>, vector<1x1x2x64xf32>
    %406 = vector.shape_cast %405 : vector<1x1x2x64xf32> to vector<2x64xf32>
    %407 = arith.truncf %406 : vector<2x64xf32> to vector<2x64xbf16>
    %c4_522 = arith.constant 4 : index
    %c64_523 = arith.constant 64 : index
    %408 = vector.load %arg11[%c4_522, %c64_523] : memref<8x256xbf16, #tpu.memory_space<vmem>>, vector<2x64xbf16>
    tpu.vector_store %arg11[%c4_522, %c64_523], %407 {strides = array<i32>} : memref<8x256xbf16, #tpu.memory_space<vmem>>, vector<2x64xbf16>,
    %c1_524 = arith.constant 1 : index
    %c1_525 = arith.constant 1 : index
    %c1_526 = arith.constant 1 : index
    %c0_527 = arith.constant 0 : index
    %409 = vector.load %arg10[%c1_524, %c1_525, %c1_526, %c0_527] : memref<2x3x3x64xf32, #tpu.memory_space<vmem>>, vector<1x1x2x64xf32>
    %410 = vector.shape_cast %409 : vector<1x1x2x64xf32> to vector<2x64xf32>
    %411 = arith.truncf %410 : vector<2x64xf32> to vector<2x64xbf16>
    %c6_528 = arith.constant 6 : index
    %c64_529 = arith.constant 64 : index
    %412 = vector.load %arg11[%c6_528, %c64_529] : memref<8x256xbf16, #tpu.memory_space<vmem>>, vector<2x64xbf16>
    tpu.vector_store %arg11[%c6_528, %c64_529], %411 {strides = array<i32>} : memref<8x256xbf16, #tpu.memory_space<vmem>>, vector<2x64xbf16>,
    %c0_530 = arith.constant 0 : index
    %c1_531 = arith.constant 1 : index
    %c0_532 = arith.constant 0 : index
    %c0_533 = arith.constant 0 : index
    %413 = vector.load %arg10[%c0_530, %c1_531, %c0_532, %c0_533] : memref<2x3x3x64xf32, #tpu.memory_space<vmem>>, vector<1x1x2x64xf32>
    %414 = vector.shape_cast %413 : vector<1x1x2x64xf32> to vector<2x64xf32>
    %415 = arith.truncf %414 : vector<2x64xf32> to vector<2x64xbf16>
    %c0_534 = arith.constant 0 : index
    %c128 = arith.constant 128 : index
    %416 = vector.load %arg11[%c0_534, %c128] : memref<8x256xbf16, #tpu.memory_space<vmem>>, vector<2x64xbf16>
    tpu.vector_store %arg11[%c0_534, %c128], %415 {strides = array<i32>} : memref<8x256xbf16, #tpu.memory_space<vmem>>, vector<2x64xbf16>,
    %c0_535 = arith.constant 0 : index
    %c2_536 = arith.constant 2 : index
    %c0_537 = arith.constant 0 : index
    %c0_538 = arith.constant 0 : index
    %417 = vector.load %arg10[%c0_535, %c2_536, %c0_537, %c0_538] : memref<2x3x3x64xf32, #tpu.memory_space<vmem>>, vector<1x1x2x64xf32>
    %418 = vector.shape_cast %417 : vector<1x1x2x64xf32> to vector<2x64xf32>
    %419 = arith.truncf %418 : vector<2x64xf32> to vector<2x64xbf16>
    %c2_539 = arith.constant 2 : index
    %c128_540 = arith.constant 128 : index
    %420 = vector.load %arg11[%c2_539, %c128_540] : memref<8x256xbf16, #tpu.memory_space<vmem>>, vector<2x64xbf16>
    tpu.vector_store %arg11[%c2_539, %c128_540], %419 {strides = array<i32>} : memref<8x256xbf16, #tpu.memory_space<vmem>>, vector<2x64xbf16>,
    %c1_541 = arith.constant 1 : index
    %c1_542 = arith.constant 1 : index
    %c0_543 = arith.constant 0 : index
    %c0_544 = arith.constant 0 : index
    %421 = vector.load %arg10[%c1_541, %c1_542, %c0_543, %c0_544] : memref<2x3x3x64xf32, #tpu.memory_space<vmem>>, vector<1x1x2x64xf32>
    %422 = vector.shape_cast %421 : vector<1x1x2x64xf32> to vector<2x64xf32>
    %423 = arith.truncf %422 : vector<2x64xf32> to vector<2x64xbf16>
    %c4_545 = arith.constant 4 : index
    %c128_546 = arith.constant 128 : index
    %424 = vector.load %arg11[%c4_545, %c128_546] : memref<8x256xbf16, #tpu.memory_space<vmem>>, vector<2x64xbf16>
    tpu.vector_store %arg11[%c4_545, %c128_546], %423 {strides = array<i32>} : memref<8x256xbf16, #tpu.memory_space<vmem>>, vector<2x64xbf16>,
    %c1_547 = arith.constant 1 : index
    %c2_548 = arith.constant 2 : index
    %c0_549 = arith.constant 0 : index
    %c0_550 = arith.constant 0 : index
    %425 = vector.load %arg10[%c1_547, %c2_548, %c0_549, %c0_550] : memref<2x3x3x64xf32, #tpu.memory_space<vmem>>, vector<1x1x2x64xf32>
    %426 = vector.shape_cast %425 : vector<1x1x2x64xf32> to vector<2x64xf32>
    %427 = arith.truncf %426 : vector<2x64xf32> to vector<2x64xbf16>
    %c6_551 = arith.constant 6 : index
    %c128_552 = arith.constant 128 : index
    %428 = vector.load %arg11[%c6_551, %c128_552] : memref<8x256xbf16, #tpu.memory_space<vmem>>, vector<2x64xbf16>
    tpu.vector_store %arg11[%c6_551, %c128_552], %427 {strides = array<i32>} : memref<8x256xbf16, #tpu.memory_space<vmem>>, vector<2x64xbf16>,
    %c0_553 = arith.constant 0 : index
    %c1_554 = arith.constant 1 : index
    %c1_555 = arith.constant 1 : index
    %c0_556 = arith.constant 0 : index
    %429 = vector.load %arg10[%c0_553, %c1_554, %c1_555, %c0_556] : memref<2x3x3x64xf32, #tpu.memory_space<vmem>>, vector<1x1x2x64xf32>
    %430 = vector.shape_cast %429 : vector<1x1x2x64xf32> to vector<2x64xf32>
    %431 = arith.truncf %430 : vector<2x64xf32> to vector<2x64xbf16>
    %c0_557 = arith.constant 0 : index
    %c192 = arith.constant 192 : index
    %432 = vector.load %arg11[%c0_557, %c192] : memref<8x256xbf16, #tpu.memory_space<vmem>>, vector<2x64xbf16>
    tpu.vector_store %arg11[%c0_557, %c192], %431 {strides = array<i32>} : memref<8x256xbf16, #tpu.memory_space<vmem>>, vector<2x64xbf16>,
    %c0_558 = arith.constant 0 : index
    %c2_559 = arith.constant 2 : index
    %c1_560 = arith.constant 1 : index
    %c0_561 = arith.constant 0 : index
    %433 = vector.load %arg10[%c0_558, %c2_559, %c1_560, %c0_561] : memref<2x3x3x64xf32, #tpu.memory_space<vmem>>, vector<1x1x2x64xf32>
    %434 = vector.shape_cast %433 : vector<1x1x2x64xf32> to vector<2x64xf32>
    %435 = arith.truncf %434 : vector<2x64xf32> to vector<2x64xbf16>
    %c2_562 = arith.constant 2 : index
    %c192_563 = arith.constant 192 : index
    %436 = vector.load %arg11[%c2_562, %c192_563] : memref<8x256xbf16, #tpu.memory_space<vmem>>, vector<2x64xbf16>
    tpu.vector_store %arg11[%c2_562, %c192_563], %435 {strides = array<i32>} : memref<8x256xbf16, #tpu.memory_space<vmem>>, vector<2x64xbf16>,
    %c1_564 = arith.constant 1 : index
    %c1_565 = arith.constant 1 : index
    %c1_566 = arith.constant 1 : index
    %c0_567 = arith.constant 0 : index
    %437 = vector.load %arg10[%c1_564, %c1_565, %c1_566, %c0_567] : memref<2x3x3x64xf32, #tpu.memory_space<vmem>>, vector<1x1x2x64xf32>
    %438 = vector.shape_cast %437 : vector<1x1x2x64xf32> to vector<2x64xf32>
    %439 = arith.truncf %438 : vector<2x64xf32> to vector<2x64xbf16>
    %c4_568 = arith.constant 4 : index
    %c192_569 = arith.constant 192 : index
    %440 = vector.load %arg11[%c4_568, %c192_569] : memref<8x256xbf16, #tpu.memory_space<vmem>>, vector<2x64xbf16>
    tpu.vector_store %arg11[%c4_568, %c192_569], %439 {strides = array<i32>} : memref<8x256xbf16, #tpu.memory_space<vmem>>, vector<2x64xbf16>,
    %c1_570 = arith.constant 1 : index
    %c2_571 = arith.constant 2 : index
    %c1_572 = arith.constant 1 : index
    %c0_573 = arith.constant 0 : index
    %441 = vector.load %arg10[%c1_570, %c2_571, %c1_572, %c0_573] : memref<2x3x3x64xf32, #tpu.memory_space<vmem>>, vector<1x1x2x64xf32>
    %442 = vector.shape_cast %441 : vector<1x1x2x64xf32> to vector<2x64xf32>
    %443 = arith.truncf %442 : vector<2x64xf32> to vector<2x64xbf16>
    %c6_574 = arith.constant 6 : index
    %c192_575 = arith.constant 192 : index
    %444 = vector.load %arg11[%c6_574, %c192_575] : memref<8x256xbf16, #tpu.memory_space<vmem>>, vector<2x64xbf16>
    tpu.vector_store %arg11[%c6_574, %c192_575], %443 {strides = array<i32>} : memref<8x256xbf16, #tpu.memory_space<vmem>>, vector<2x64xbf16>,
    %c0_576 = arith.constant 0 : index
    %c0_577 = arith.constant 0 : index
    %445 = vector.load %arg11[%c0_576, %c0_577] : memref<8x256xbf16, #tpu.memory_space<vmem>>, vector<8x256xbf16>
    %c0_578 = arith.constant 0 : index
    %c0_579 = arith.constant 0 : index
    %446 = vector.load %arg3[%c0_578, %c0_579] : memref<256x128xbf16, #tpu.memory_space<vmem>>, vector<256x128xbf16>
    %cst_580 = arith.constant dense<0.000000e+00> : vector<8x128xf32>
    %447 = tpu.matmul %445, %446, %cst_580 {dimension_numbers = #tpu.dot_dimension_numbers<[1], [0], [0], [1], [0, 0, 1, 1], [], []>} : vector<8x256xbf16>, vector<256x128xbf16>, vector<8x128xf32> -> vector<8x128xf32>
    %448 = vector.broadcast %4 : vector<1x128xf32> to vector<8x128xf32>
    %449 = arith.addf %447, %448 : vector<8x128xf32>
    %cst_581 = arith.constant 0.000000e+00 : f32
    %450 = vector.broadcast %cst_581 : f32 to vector<8x128xf32>
    %451 = arith.subf %450, %449 : vector<8x128xf32>
    %452 = math.exp %451 : vector<8x128xf32>
    %cst_582 = arith.constant 1.000000e+00 : f32
    %453 = vector.broadcast %cst_582 : f32 to vector<8x128xf32>
    %454 = arith.addf %453, %452 : vector<8x128xf32>
    %cst_583 = arith.constant 1.000000e+00 : f32
    %455 = vector.broadcast %cst_583 : f32 to vector<8x128xf32>
    %456 = arith.divf %455, %454 : vector<8x128xf32>
    %c0_584 = arith.constant 0 : index
    %c0_585 = arith.constant 0 : index
    %457 = vector.load %arg5[%c0_584, %c0_585] : memref<8x128xf32, #tpu.memory_space<vmem>>, vector<8x128xf32>
    tpu.vector_store %arg5[%c0_584, %c0_585], %456 {strides = array<i32>} : memref<8x128xf32, #tpu.memory_space<vmem>>, vector<8x128xf32>,
    return
  }
}

</mosaic_0001>

<bundles_post_ra>
// kernel: tpu_custom_call.1
= control target key start
LH: loop header
LB: loop body
LE: loop exit
PB: predicated region body
PF: predicated region fallthrough
CT: control target
= control target key end

     0   :  { %vm115_vm0 = vcmask 523264   ;;  %s2406_s0 = inlined_call_operand.vmem [shape: bf16[128,64], index: 0, kind: input, shape index: {}]   ;;  %s2407_s1 = inlined_call_operand.vmem [shape: bf16[64,8], index: 1, kind: input, shape index: {}]   ;;  %s2408_s2 = inlined_call_operand.vmem [shape: bf16[128,16], index: 2, kind: input, shape index: {}]   ;;  %s2409_s3 = inlined_call_operand.vmem [shape: bf16[256,128], index: 3, kind: input, shape index: {}]   ;;  %s2410_s4 = inlined_call_operand.vmem [shape: f32[8,128], index: 4, kind: input, shape index: {}]   ;;  %s2411_s5 = inlined_call_operand.hbm [shape: f32[8,128], index: 5, kind: output, shape index: {}]  }
   0x1   :  { %v1813_v0 = vld [vmem:[%s2407_s1 + $0x18] sm:$0xff]   ;;  %v1814_v1 = vld [vmem:[%s2407_s1 + $0x10] sm:$0xff]   ;;  %v1815_v2 = vld [vmem:[%s2407_s1 + $0x8] sm:$0xff]  }
   0x2   :  { %1760 = vmatprep.subr.bf16.mxu0 %v1813_v0  ;;  %v1817_v3 = vld [vmem:[%s2406_s0] sm:$0xff]   ;;  %v1818_v5 = vld [vmem:[%s2406_s0 + $0x8] sm:$0xff]   ;;  %v1819_v6 = vld [vmem:[%s2406_s0 + $0x10] sm:$0xff]  }
   0x3   :  { %1761 = vmatpush3.bf16.msra.mxu0 %v1813_v0  ;;  %1768 = vmatprep.mubr.msk.bf16.mxu0 %vm115_vm0, %v1817_v3  ;;  %v1816_v4 = vld [vmem:[%s2407_s1] sm:$0xff]   ;;  %v1820_v7 = vld [vmem:[%s2406_s0 + $0x18] sm:$0xff]  }
   0x4   :  { %1762 = vmatprep.subr.bf16.mxu0 %v1814_v1  ;;  %v1821_v8 = vld [vmem:[%s2406_s0 + $0x20] sm:$0xff]  }
   0x7   :  { %1763 = vmatpush3.bf16.msra.mxu0 %v1814_v1 }
   0x8   :  { %1764 = vmatprep.subr.bf16.mxu0 %v1815_v2 }
   0xb   :  { %1765 = vmatpush3.bf16.msra.mxu0 %v1815_v2 }
   0xc   :  { %1766 = vmatprep.subr.bf16.mxu0 %v1816_v4 }
   0xf   :  { %1767 = vmatpush3.bf16.msra.mxu0 %v1816_v4 }
  0x12   :  { %1769 = vmatmul.mubr.msk.bf16.vlgmr.msra.gmra.mxu0 %vm115_vm0, %v1818_v5 }
  0x13   :  { %1772 = vmatprep.mubr.msk.bf16.mxu0 %vm115_vm0, %v1819_v6 }
  0x1a   :  { %1773 = vmatmul.mubr.msk.bf16.gmra.mxu0 %vm115_vm0, %v1820_v7 }
  0x1b   :  { %1776 = vmatprep.mubr.msk.bf16.mxu0 %vm115_vm0, %v1821_v8 }
  0x1c   :  { %10 = vsyncpa [#allocation9], 0  ;;  %v1822_v9 = vld [vmem:[%s2406_s0 + $0x28] sm:$0xff]   ;;  %v1823_v10 = vld [vmem:[%s2406_s0 + $0x30] sm:$0xff]   ;;  %vm237_vm1 = vcmask 64512   ;;  %vm437_vm2 = vcmask 258048  }
  0x1d   :  { %v1824_v11 = vld [vmem:[%s2406_s0 + $0x38] sm:$0xff]   ;;  %v1883_v48 = vmov 0.0   ;;  %vm466_vm3 = vcmask 60416   ;;  %s1884_s19 = smov 16   ;;  %s1885_s20 = smov 8   ;;  %vm474_vm4 = vcmask 126016  }
  0x1e   :  { %439 = vst.msk [vmem:[#allocation3 + $0x8] sm:$0x1f] %vm437_vm2, %v1883_v48  ;;  %438 = vst.msk [vmem:[#allocation3] sm:$0x1f] %vm437_vm2, %v1883_v48  ;;  %s1886_s21 = smov 24   ;;  %vm454_vm5 = vcmask 191616  }
  0x1f   :  { %440 = vst.msk [vmem:[#allocation3 + $0x10] sm:$0x1f] %vm437_vm2, %v1883_v48  ;;  %441 = vst.msk [vmem:[#allocation3 + $0x18] sm:$0x1f] %vm437_vm2, %v1883_v48  ;;  %vm461_vm6 = vcmask 257216   ;;  %vm663_vm7 = vcmask 257026  }
  0x20   :  { %442 = vst.msk [vmem:[#allocation3 + $0x20] sm:$0x1f] %vm437_vm2, %v1883_v48  ;;  %443 = vst.msk [vmem:[#allocation3 + $0x28] sm:$0x1f] %vm437_vm2, %v1883_v48  ;;  %vm654_vm8 = vcmask 254976   ;;  %s1887_s22 = smov 64  }
  0x21   :  { %444 = vst.msk [vmem:[#allocation3 + $0x30] sm:$0x1f] %vm437_vm2, %v1883_v48  ;;  %445 = vst.msk [vmem:[#allocation3 + $0x38] sm:$0x1f] %vm437_vm2, %v1883_v48  ;;  %s1888_s23 = smov 32   ;;  %s1889_s26 = smov 96  }
  0x22   :  { %1777 = vmatmul.mubr.msk.bf16.gmra.mxu0 %vm115_vm0, %v1822_v9  ;;  %446 = vst.msk [vmem:[#allocation3 + $0x40] sm:$0x1f] %vm437_vm2, %v1883_v48  ;;  %447 = vst.msk [vmem:[#allocation3 + $0x48] sm:$0x1f] %vm437_vm2, %v1883_v48  ;;  %vm706_vm9 = vcmask 517376   ;;  %vm717_vm10 = vcmask 519426  }
  0x23   :  { %1780 = vmatprep.mubr.msk.bf16.mxu0 %vm115_vm0, %v1823_v10  ;;  %vm784_vm11 = vcmask 779776   ;;  %vm795_vm12 = vcmask 781826   ;;  %vm873_vm13 = vcmask 1044226   ;;  %vm862_vm14 = vcmask 1042176   ;;  %s1890_s17 = smov 48  }
  0x24   :  { %vm1129_vm15 = vcmask 518144   ;;  %vm1162_vm2 = vcmask 255104  }
  0x25   :  { %1134 = vst.msk [vmem:[#allocation6 + $0x10] sm:$0x7] %vm1129_vm15, %v1883_v48  ;;  %1130 = vst.msk [vmem:[#allocation6] sm:$0x7] %vm1129_vm15, %v1883_v48 }
  0x26   :  { %1131 = vst.msk [vmem:[#allocation6 + $0x4] sm:$0x7] %vm1129_vm15, %v1883_v48  ;;  %1132 = vst.msk [vmem:[#allocation6 + $0x8] sm:$0x7] %vm1129_vm15, %v1883_v48 }
  0x27   :  { %1133 = vst.msk [vmem:[#allocation6 + $0xc] sm:$0x7] %vm1129_vm15, %v1883_v48  ;;  %1135 = vst.msk [vmem:[#allocation6 + $0x14] sm:$0x7] %vm1129_vm15, %v1883_v48 }
  0x2a   :  { %1781 = vmatmul.mubr.msk.bf16.gmra.mxu0 %vm115_vm0, %v1824_v11  ;;  %vm1061_vm0 = vcmask 130048  }
  0xd2   :  { %v1966_v12 = vpop.f32.mrf.mxu0 }
  0xd3   :  { %v241_v20 = vsel %vm237_vm1, %v1966_v12, 0.0 }
  0xd4   :  { %v1968_v13 = vpop.f32.mrf.mxu0 }
  0xd5   :  { %v238_v16 = vsel %vm237_vm1, %v1968_v13, 0.0 }
  0xd6   :  { %v1970_v14 = vpop.f32.mrf.mxu0 }
  0xd7   :  { %v243_v23 = vsel %vm237_vm1, %v1970_v14, 0.0 }
  0xd8   :  { %v1972_v15 = vpop.f32.mrf.mxu0 }
  0xd9   :  { %v239_v17 = vsel %vm237_vm1, %v1972_v15, 0.0 }
  0xda   :  { %v240_v18 = vadd.f32 %v239_v17, %v238_v16  ;;  %v1978_v19 = vpop.f32.mrf.mxu0 }
  0xdb   :  { %v249_v32 = vsel %vm237_vm1, %v1978_v19, 0.0 }
  0xdc   :  { %v242_v21 = vadd.f32 %v241_v20, %v240_v18  ;;  %v190_v22 = vpop.f32.mrf.mxu0 }
  0xdd   :  { %v245_v26 = vsel %vm237_vm1, %v190_v22, 0.0 }
  0xde   :  { %v244_v24 = vadd.f32 %v243_v23, %v242_v21  ;;  %v1984_v25 = vpop.f32.mrf.mxu0 }
  0xdf   :  { %v251_v35 = vsel %vm237_vm1, %v1984_v25, 0.0 }
  0xe0   :  { %v246_v27 = vadd.f32 %v245_v26, %v244_v24  ;;  %v193_v28 = vpop.f32.mrf.mxu0 }
  0xe1   :  { %v247_v29 = vsel %vm237_vm1, %v193_v28, 0.0 }
  0xe2   :  { %v248_v30 = vadd.f32 %v247_v29, %v246_v27  ;;  %v1988_v31 = vpop.f32.mrf.mxu0 }
  0xe3   :  { %v257_v44 = vsel %vm237_vm1, %v1988_v31, 0.0 }
  0xe4   :  { %v250_v33 = vadd.f32 %v249_v32, %v248_v30  ;;  %v1992_v34 = vpop.f32.mrf.mxu0 }
  0xe5   :  { %v253_v38 = vsel %vm237_vm1, %v1992_v34, 0.0 }
  0xe6   :  { %v252_v36 = vadd.f32 %v251_v35, %v250_v33  ;;  %v1996_v37 = vpop.f32.mrf.mxu0 }
  0xe7   :  { %v259_v47 = vsel %vm237_vm1, %v1996_v37, 0.0 }
  0xe8   :  { %v254_v39 = vadd.f32 %v253_v38, %v252_v36  ;;  %v2000_v40 = vpop.f32.mrf.mxu0 }
  0xe9   :  { %v255_v41 = vsel %vm237_vm1, %v2000_v40, 0.0 }
  0xea   :  { %v256_v42 = vadd.f32 %v255_v41, %v254_v39  ;;  %v2004_v43 = vpop.f32.mrf.mxu0 }
  0xeb   :  { %v265_v56 = vsel %vm237_vm1, %v2004_v43, 0.0 }
  0xec   :  { %v258_v45 = vadd.f32 %v257_v44, %v256_v42  ;;  %v2008_v46 = vpop.f32.mrf.mxu0 }
  0xed   :  { %v261_v51 = vsel %vm237_vm1, %v2008_v46, 0.0 }
  0xee   :  { %v260_v49 = vadd.f32 %v259_v47, %v258_v45  ;;  %v2022_v50 = vpop.f32.mrf.mxu0 }
  0xef   :  { %v267_v58 = vsel %vm237_vm1, %v2022_v50, 0.0 }
  0xf0   :  { %v262_v52 = vadd.f32 %v261_v51, %v260_v49  ;;  %v225_v53 = vpop.f32.mrf.mxu0 }
  0xf1   :  { %v263_v54 = vsel %vm237_vm1, %v225_v53, 0.0 }
  0xf2   :  { %v264_v55 = vadd.f32 %v263_v54, %v262_v52 }
  0xf4   :  { %v266_v57 = vadd.f32 %v265_v56, %v264_v55 }
  0xf6   :  { %v268_v59 = vadd.f32 %v267_v58, %v266_v57 }
  0xf8   :  { %v269_v60 = vrot.slane %v268_v59, 4 }
  0xfa   :  { %v270_v61 = vadd.f32 %v269_v60, %v268_v59 }
  0xfc   :  { %v271_v62 = vrot.slane %v270_v61, 2 }
  0xfe   :  { %v272_v63 = vadd.f32 %v271_v62, %v270_v61 }
 0x100   :  { %v273_v0 = vrot.slane %v272_v63, 1 }
 0x102   :  { %v274_v1 = vadd.f32 %v273_v0, %v272_v63 }
 0x104   :  { %v275_v2 = vmul.f32 0.0078125, %v274_v1 }
 0x106   :  { %v2032_v3 = vsub.f32 %v1968_v13, %v275_v2  ;;  %v2035_v4 = vsub.f32 %v1972_v15, %v275_v2  ;;  %v2038_v5 = vsub.f32 %v1966_v12, %v275_v2  ;;  %v2041_v6 = vsub.f32 %v1970_v14, %v275_v2 }
 0x107   :  { %v2047_v9 = vsub.f32 %v190_v22, %v275_v2  ;;  %v2051_v11 = vsub.f32 %v193_v28, %v275_v2  ;;  %v2058_v16 = vsub.f32 %v1978_v19, %v275_v2  ;;  %v2064_v21 = vsub.f32 %v1984_v25, %v275_v2 }
 0x108   :  { %v292_v7 = vmul.f32 %v2032_v3, %v2032_v3  ;;  %v293_v8 = vmul.f32 %v2035_v4, %v2035_v4  ;;  %v294_v10 = vmul.f32 %v2038_v5, %v2038_v5  ;;  %v295_v12 = vmul.f32 %v2041_v6, %v2041_v6 }
 0x109   :  { %v296_v17 = vmul.f32 %v2047_v9, %v2047_v9  ;;  %v297_v22 = vmul.f32 %v2051_v11, %v2051_v11  ;;  %v2070_v26 = vsub.f32 %v1992_v34, %v275_v2  ;;  %v298_v19 = vmul.f32 %v2058_v16, %v2058_v16 }
 0x10a   :  { %v308_v13 = vsel %vm237_vm1, %v292_v7, 0.0  ;;  %v309_v14 = vsel %vm237_vm1, %v293_v8, 0.0  ;;  %v311_v18 = vsel %vm237_vm1, %v294_v10, 0.0  ;;  %v313_v23 = vsel %vm237_vm1, %v295_v12, 0.0 }
 0x10b   :  { %v310_v15 = vadd.f32 %v309_v14, %v308_v13  ;;  %v315_v27 = vsel %vm237_vm1, %v296_v17, 0.0  ;;  %v2076_v29 = vsub.f32 %v2000_v40, %v275_v2  ;;  %v299_v25 = vmul.f32 %v2064_v21, %v2064_v21 }
 0x10c   :  { %v317_v30 = vsel %vm237_vm1, %v297_v22, 0.0  ;;  %v286_v33 = vsub.f32 %v1988_v31, %v275_v2  ;;  %v300_v34 = vmul.f32 %v2070_v26, %v2070_v26  ;;  %v319_v35 = vsel %vm237_vm1, %v298_v19, 0.0  ;;  %v22_v22 = vld [vmem:[%s2410_s4] sm:$0x1] }
 0x10d   :  { %v312_v20 = vadd.f32 %v311_v18, %v310_v15  ;;  %v287_v38 = vsub.f32 %v1996_v37, %v275_v2  ;;  %v301_v39 = vmul.f32 %v2076_v29, %v2076_v29  ;;  %v321_v40 = vsel %vm237_vm1, %v299_v25, 0.0 }
 0x10e   :  { %v288_v42 = vsub.f32 %v2008_v46, %v275_v2  ;;  %v302_v44 = vmul.f32 %v286_v33, %v286_v33  ;;  %v323_v45 = vsel %vm237_vm1, %v300_v34, 0.0  ;;  %v289_v47 = vsub.f32 %v225_v53, %v275_v2  ;;  %v2117_v34 = vld [vmem:[%s2410_s4 + $0x1] ss:$0 sm:$0xff] }
 0x10f   :  { %v314_v24 = vadd.f32 %v313_v23, %v312_v20  ;;  %v303_v49 = vmul.f32 %v287_v38, %v287_v38  ;;  %v325_v51 = vsel %vm237_vm1, %v301_v39, 0.0  ;;  %v290_v54 = vsub.f32 %v2004_v43, %v275_v2 }
 0x110   :  { %v304_v37 = vmul.f32 %v288_v42, %v288_v42  ;;  %v327_v55 = vsel %vm237_vm1, %v302_v44, 0.0  ;;  %v291_v57 = vsub.f32 %v2022_v50, %v275_v2  ;;  %v305_v58 = vmul.f32 %v289_v47, %v289_v47 }
 0x111   :  { %v316_v28 = vadd.f32 %v315_v27, %v314_v24  ;;  %v329_v46 = vsel %vm237_vm1, %v303_v49, 0.0  ;;  %v306_v60 = vmul.f32 %v290_v54, %v290_v54  ;;  %v349_v18 = vlaneseq }
 0x112   :  { %v331_v61 = vsel %vm237_vm1, %v304_v37, 0.0  ;;  %v307_v62 = vmul.f32 %v291_v57, %v291_v57  ;;  %v333_v63 = vsel %vm237_vm1, %v305_v58, 0.0 }
 0x113   :  { %v318_v32 = vadd.f32 %v317_v30, %v316_v28  ;;  %v335_v43 = vsel %vm237_vm1, %v306_v60, 0.0  ;;  %v2100_v20 = vshrl.u32 %v349_v18, 7 }
 0x114   :  { %v337_v7 = vsel %vm237_vm1, %v307_v62, 0.0 }
 0x115   :  { %v320_v36 = vadd.f32 %v319_v35, %v318_v32  ;;  %v351_v23 = vsub.s32 0, %v2100_v20 }
 0x117   :  { %v322_v41 = vadd.f32 %v321_v40, %v320_v36 }
 0x119   :  { %v324_v31 = vadd.f32 %v323_v45, %v322_v41 }
 0x11b   :  { %v326_v52 = vadd.f32 %v325_v51, %v324_v31 }
 0x11d   :  { %v328_v56 = vadd.f32 %v327_v55, %v326_v52 }
 0x11f   :  { %v330_v59 = vadd.f32 %v329_v46, %v328_v56 }
 0x121   :  { %v332_v53 = vadd.f32 %v331_v61, %v330_v59 }
 0x123   :  { %v334_v0 = vadd.f32 %v333_v63, %v332_v53 }
 0x125   :  { %v336_v1 = vadd.f32 %v335_v43, %v334_v0 }
 0x127   :  { %v338_v8 = vadd.f32 %v337_v7, %v336_v1 }
 0x129   :  { %v339_v10 = vrot.slane %v338_v8, 4 }
 0x12b   :  { %v340_v50 = vadd.f32 %v339_v10, %v338_v8 }
 0x12d   :  { %v341_v2 = vrot.slane %v340_v50, 2 }
 0x12f   :  { %v342_v12 = vadd.f32 %v341_v2, %v340_v50 }
 0x131   :  { %v343_v13 = vrot.slane %v342_v12, 1 }
 0x133   :  { %v344_v14 = vadd.f32 %v343_v13, %v342_v12 }
 0x135   :  { %v345_v15 = vmul.f32 0.0078125, %v344_v14 }
 0x137   :  { %v346_v17 = vadd.f32 1e-05, %v345_v15 }
 0x139   :  { %1853 = vrsqrt.f32 %v346_v17 }
 0x146   :  { %v1854_v24 = vpop.eup %1853 }
 0x147   :  { %v348_v19 = vmul.f32 %v1854_v24, %v22_v22 }
 0x149   :  { %v352_v27 = vrot.slane %v348_v19, %v351_v23 }
 0x14b   :  { %v2109_v28 = vmul.f32 %v352_v27, %v2032_v3  ;;  %v354_v25 = vmul.f32 %v352_v27, %v2035_v4  ;;  %v355_v30 = vmul.f32 %v352_v27, %v2038_v5  ;;  %v356_v32 = vmul.f32 %v352_v27, %v2041_v6 }
 0x14c   :  { %v357_v35 = vmul.f32 %v352_v27, %v2047_v9  ;;  %v358_v36 = vmul.f32 %v352_v27, %v2051_v11  ;;  %v359_v39 = vmul.f32 %v352_v27, %v2058_v16  ;;  %v360_v3 = vmul.f32 %v352_v27, %v2064_v21 }
 0x14d   :  { %v361_v40 = vmul.f32 %v352_v27, %v2070_v26  ;;  %v362_v4 = vmul.f32 %v352_v27, %v2076_v29  ;;  %v363_v5 = vmul.f32 %v352_v27, %v286_v33  ;;  %v364_v41 = vmul.f32 %v352_v27, %v287_v38 }
 0x14e   :  { %v365_v6 = vmul.f32 %v352_v27, %v288_v42  ;;  %v366_v44 = vmul.f32 %v352_v27, %v289_v47  ;;  %v367_v45 = vmul.f32 %v352_v27, %v290_v54  ;;  %v368_v31 = vmul.f32 %v352_v27, %v291_v57 }
 0x14f   :  { %v376_v49 = vadd.f32 %v2117_v34, %v356_v32  ;;  %v377_v9 = vadd.f32 %v2117_v34, %v357_v35  ;;  %v378_v11 = vadd.f32 %v2117_v34, %v358_v36  ;;  %v379_v16 = vadd.f32 %v2117_v34, %v359_v39 }
 0x150   :  { %v380_v21 = vadd.f32 %v2117_v34, %v360_v3  ;;  %v381_v26 = vadd.f32 %v2117_v34, %v361_v40  ;;  %v382_v29 = vadd.f32 %v2117_v34, %v362_v4  ;;  %v383_v33 = vadd.f32 %v2117_v34, %v363_v5 }
 0x151   :  { %v384_v38 = vadd.f32 %v2117_v34, %v364_v41  ;;  %v385_v42 = vadd.f32 %v2117_v34, %v365_v6  ;;  %v386_v47 = vadd.f32 %v2117_v34, %v366_v44  ;;  %v387_v51 = vadd.f32 %v2117_v34, %v367_v45 }
 0x152   :  { %v388_v52 = vadd.f32 %v2117_v34, %v368_v31  ;;  %v393_v54 = vmul.f32 0.2, %v377_v9  ;;  %v394_v37 = vmul.f32 0.2, %v378_v11  ;;  %v395_v55 = vmul.f32 0.2, %v379_v16 }
 0x153   :  { %v396_v56 = vmul.f32 0.2, %v380_v21  ;;  %v397_v57 = vmul.f32 0.2, %v381_v26  ;;  %v398_v58 = vmul.f32 0.2, %v382_v29  ;;  %v375_v46 = vadd.f32 %v2117_v34, %v355_v30 }
 0x154   :  { %v399_v59 = vmul.f32 0.2, %v383_v33  ;;  %v400_v60 = vmul.f32 0.2, %v384_v38  ;;  %v401_v61 = vmul.f32 0.2, %v385_v42  ;;  %v410_v53 = vmax.f32 %v378_v11, %v394_v37 }
 0x155   :  { %v402_v62 = vmul.f32 0.2, %v386_v47  ;;  %v403_v63 = vmul.f32 0.2, %v387_v51  ;;  %v404_v0 = vmul.f32 0.2, %v388_v52  ;;  %v411_v43 = vmax.f32 %v379_v16, %v395_v55 }
 0x156   :  { %v412_v1 = vmax.f32 %v380_v21, %v396_v56  ;;  %v413_v7 = vmax.f32 %v381_v26, %v397_v57  ;;  %v414_v8 = vmax.f32 %v382_v29, %v398_v58  ;;  %v415_v10 = vmax.f32 %v383_v33, %v399_v59  ;;  %426 = vst.msk [vmem:[#allocation2 + $0x28] sm:$0xff] %vm237_vm1, %v410_v53 }
 0x157   :  { %v416_v50 = vmax.f32 %v384_v38, %v400_v60  ;;  %v417_v2 = vmax.f32 %v385_v42, %v401_v61  ;;  %v418_v12 = vmax.f32 %v386_v47, %v402_v62  ;;  %v419_v13 = vmax.f32 %v387_v51, %v403_v63  ;;  %427 = vst.msk [vmem:[#allocation2 + $0x30] sm:$0xff] %vm237_vm1, %v411_v43 }
 0x158   :  { %v420_v14 = vmax.f32 %v388_v52, %v404_v0  ;;  %428 = vst.msk [vmem:[#allocation2 + $0x38] sm:$0xff] %vm237_vm1, %v412_v1  ;;  %429 = vst.msk [vmem:[#allocation2 + $0x40] sm:$0xff] %vm237_vm1, %v413_v7  ;;  %v391_v15 = vmul.f32 0.2, %v375_v46  ;;  %v374_v17 = vadd.f32 %v2117_v34, %v354_v25  ;;  %v392_v18 = vmul.f32 0.2, %v376_v49 }
 0x159   :  { %430 = vst.msk [vmem:[#allocation2 + $0x48] sm:$0xff] %vm237_vm1, %v414_v8  ;;  %431 = vst.msk [vmem:[#allocation2 + $0x50] sm:$0xff] %vm237_vm1, %v415_v10  ;;  %v409_v22 = vmax.f32 %v377_v9, %v393_v54  ;;  %v373_v24 = vadd.f32 %v2117_v34, %v2109_v28 }
 0x15a   :  { %432 = vst.msk [vmem:[#allocation2 + $0x58] sm:$0xff] %vm237_vm1, %v416_v50  ;;  %433 = vst.msk [vmem:[#allocation2 + $0x60] sm:$0xff] %vm237_vm1, %v417_v2  ;;  %v407_v19 = vmax.f32 %v375_v46, %v391_v15  ;;  %v390_v27 = vmul.f32 0.2, %v374_v17  ;;  %v408_v30 = vmax.f32 %v376_v49, %v392_v18 }
 0x15b   :  { %434 = vst.msk [vmem:[#allocation2 + $0x68] sm:$0xff] %vm237_vm1, %v418_v12  ;;  %435 = vst.msk [vmem:[#allocation2 + $0x70] sm:$0xff] %vm237_vm1, %v419_v13  ;;  %v389_v25 = vmul.f32 0.2, %v373_v24 }
 0x15c   :  { %436 = vst.msk [vmem:[#allocation2 + $0x78] sm:$0xff] %vm237_vm1, %v420_v14  ;;  %425 = vst.msk [vmem:[#allocation2 + $0x20] sm:$0xff] %vm237_vm1, %v409_v22  ;;  %v406_v32 = vmax.f32 %v374_v17, %v390_v27 }
 0x15d   :  { %423 = vst.msk [vmem:[#allocation2 + $0x10] sm:$0xff] %vm237_vm1, %v407_v19  ;;  %424 = vst.msk [vmem:[#allocation2 + $0x18] sm:$0xff] %vm237_vm1, %v408_v30  ;;  %v405_v35 = vmax.f32 %v373_v24, %v389_v25  ;;  %v516_v36 = vld [vmem:[#allocation2 + $0x29] ss:$2 sm:$0xf] }
 0x15e   :  { %422 = vst.msk [vmem:[#allocation2 + $0x8] sm:$0xff] %vm237_vm1, %v406_v32  ;;  %v520_v3 = vld [vmem:[#allocation2 + $0x28] ss:$2 sm:$0xf] }
 0x15f   :  { %518 = vst.msk [vmem:[#allocation3 + $0x19] sm:$0xf] %vm466_vm3, %v516_v36  ;;  %v541_v45 = vld [vmem:[#allocation2 + $0x39] ss:$2 sm:$0xf] }
 0x160   :  { %421 = vst.msk [vmem:[#allocation2] sm:$0xff] %vm237_vm1, %v405_v35  ;;  %v567_v5 = vld [vmem:[#allocation2 + $0x49] ss:$2 sm:$0xf]  ;;  %vm1154_vm1 = vcmask 123904  }
 0x161   :  { %v571_v41 = vld [vmem:[#allocation2 + $0x48] ss:$2 sm:$0xf]  ;;  %569 = vst.msk [vmem:[#allocation3 + $0x31] sm:$0xf] %vm466_vm3, %v567_v5 }
 0x162   :  { %v617_v6 = vld [vmem:[#allocation2 + $0x69] ss:$2 sm:$0xf]  ;;  %v592_v44 = vld [vmem:[#allocation2 + $0x59] ss:$2 sm:$0xf] }
 0x163   :  { %619 = vst.msk [vmem:[#allocation3 + $0x41] sm:$0xf] %vm466_vm3, %v617_v6  ;;  %v527_v31 = vld [vmem:[#allocation2 + $0x31] ss:$2 sm:$0xf] }
 0x164   :  { %v477_v28 = vld [vmem:[#allocation2 + $0x11] ss:$2 sm:$0xf]  ;;  %v495_v39 = vld [vmem:[#allocation2 + $0x18] ss:$2 sm:$0xf] }
 0x165   :  { %479 = vrot.lane.b32.xlu1 %v477_v28, %s1884_s19  ;;  %v469_v34 = vld [vmem:[#allocation2 + $0x8] ss:$2 sm:$0xf]  ;;  %v464_v40 = vld [vmem:[#allocation2 + $0x9] ss:$2 sm:$0xf] }
 0x166   :  { %471 = vrot.lane.b32.xlu0 %v469_v34, %s1885_s20  ;;  %467 = vst.msk [vmem:[#allocation3 + $0x9] sm:$0xf] %vm466_vm3, %v464_v40  ;;  %v491_v4 = vld [vmem:[#allocation2 + $0x19] ss:$2 sm:$0xf] }
 0x167   :  { %493 = vst.msk [vmem:[#allocation3 + $0x11] sm:$0xf] %vm466_vm3, %v491_v4  ;;  %594 = vst.msk [vmem:[#allocation3 + $0x39] sm:$0xf] %vm466_vm3, %v592_v44 }
 0x168   :  { %543 = vst.msk [vmem:[#allocation3 + $0x21] sm:$0xf] %vm466_vm3, %v541_v45  ;;  %v642_v49 = vld [vmem:[#allocation2 + $0x79] ss:$2 sm:$0xf] }
 0x169   :  { %497 = vrot.lane.b32.xlu1 %v495_v39, %s1885_s20  ;;  %644 = vst.msk [vmem:[#allocation3 + $0x49] sm:$0xf] %vm466_vm3, %v642_v49  ;;  %v484_v9 = vld [vmem:[#allocation2 + $0x10] ss:$2 sm:$0xf]  ;;  %vm1142_vm3 = vcmask 386304  }
 0x16a   :  { %522 = vrot.lane.b32.xlu0 %v520_v3, %s1885_s20  ;;  %v621_v11 = vld [vmem:[#allocation2 + $0x68] ss:$2 sm:$0xf]  ;;  %v534_v16 = vld [vmem:[#allocation2 + $0x30] ss:$2 sm:$0xf] }
 0x16b   :  { %v502_v21 = vld [vmem:[#allocation2 + $0x21] ss:$2 sm:$0xf]  ;;  %v596_v26 = vld [vmem:[#allocation2 + $0x58] ss:$2 sm:$0xf] }
 0x16c   :  { %v578_v29 = vld [vmem:[#allocation2 + $0x51] ss:$2 sm:$0xf]  ;;  %v449_v33 = vld [vmem:[#allocation2 + $0x1] ss:$2 sm:$0xf] }
 0x16d   :  { %573 = vrot.lane.b32.xlu1 %v571_v41, %s1885_s20  ;;  %v628_v38 = vld [vmem:[#allocation2 + $0x71] ss:$2 sm:$0xf]  ;;  %v545_v42 = vld [vmem:[#allocation2 + $0x38] ss:$2 sm:$0xf] }
 0x16e   :  { %529 = vrot.lane.b32.xlu0 %v527_v31, %s1884_s19  ;;  %v509_v47 = vld [vmem:[#allocation2 + $0x20] ss:$2 sm:$0xf]  ;;  %v603_v51 = vld [vmem:[#allocation2 + $0x61] ss:$2 sm:$0xf] }
 0x16f   :  { %v585_v52 = vld [vmem:[#allocation2 + $0x50] ss:$2 sm:$0xf]  ;;  %v456_v54 = vld [vmem:[#allocation2] ss:$2 sm:$0xf] }
 0x170   :  { %v635_v37 = vld [vmem:[#allocation2 + $0x70] ss:$2 sm:$0xf]  ;;  %v610_v55 = vld [vmem:[#allocation2 + $0x60] ss:$2 sm:$0xf] }
 0x171   :  { %486 = vrot.lane.b32.xlu1 %v484_v9, %s1886_s21  ;;  %v552_v56 = vld [vmem:[#allocation2 + $0x41] ss:$2 sm:$0xf]  ;;  %v560_v57 = vld [vmem:[#allocation2 + $0x40] ss:$2 sm:$0xf] }
 0x172   :  { %623 = vrot.lane.b32.xlu0 %v621_v11, %s1885_s20  ;;  %v646_v58 = vld [vmem:[#allocation2 + $0x78] ss:$2 sm:$0xf] }
 0x175   :  { %536 = vrot.lane.b32.xlu1 %v534_v16, %s1886_s21 }
 0x176   :  { %504 = vrot.lane.b32.xlu0 %v502_v21, %s1884_s19 }
 0x179   :  { %598 = vrot.lane.b32.xlu1 %v596_v26, %s1885_s20 }
 0x17a   :  { %580 = vrot.lane.b32.xlu0 %v578_v29, %s1884_s19 }
 0x17d   :  { %451 = vrot.lane.b32.xlu1 %v449_v33, %s1884_s19 }
 0x17e   :  { %630 = vrot.lane.b32.xlu0 %v628_v38, %s1884_s19 }
 0x181   :  { %547 = vrot.lane.b32.xlu1 %v545_v42, %s1885_s20 }
 0x182   :  { %511 = vrot.lane.b32.xlu0 %v509_v47, %s1886_s21 }
 0x185   :  { %605 = vrot.lane.b32.xlu1 %v603_v51, %s1884_s19 }
 0x186   :  { %587 = vrot.lane.b32.xlu0 %v585_v52, %s1886_s21 }
 0x189   :  { %458 = vrot.lane.b32.xlu1 %v456_v54, %s1886_s21 }
 0x18a   :  { %637 = vrot.lane.b32.xlu0 %v635_v37, %s1886_s21 }
 0x18d   :  { %612 = vrot.lane.b32.xlu1 %v610_v55, %s1886_s21 }
 0x18e   :  { %554 = vrot.lane.b32.xlu0 %v552_v56, %s1884_s19 }
 0x191   :  { %562 = vrot.lane.b32.xlu1 %v560_v57, %s1886_s21 }
 0x192   :  { %648 = vrot.lane.b32.xlu0 %v646_v58, %s1885_s20 }
 0x1d7   :  { %v480_v46 = vpop.permute.xlu1 %479 }
 0x1d8   :  { %v472_v59 = vpop.permute.xlu0 %471 }
 0x1d9   :  { %475 = vst.msk [vmem:[#allocation3 + $0x8] sm:$0xf] %vm474_vm4, %v472_v59 }
 0x1da   :  { %482 = vst.msk [vmem:[#allocation3 + $0x9] sm:$0xf] %vm454_vm5, %v480_v46 }
 0x1db   :  { %v498_v60 = vpop.permute.xlu1 %497 }
 0x1dc   :  { %500 = vst.msk [vmem:[#allocation3 + $0x10] sm:$0xf] %vm474_vm4, %v498_v60  ;;  %v523_v61 = vpop.permute.xlu0 %522 }
 0x1dd   :  { %525 = vst.msk [vmem:[#allocation3 + $0x18] sm:$0xf] %vm474_vm4, %v523_v61 }
 0x1df   :  { %v574_v53 = vpop.permute.xlu1 %573 }
 0x1e0   :  { %576 = vst.msk [vmem:[#allocation3 + $0x30] sm:$0xf] %vm474_vm4, %v574_v53  ;;  %v530_v62 = vpop.permute.xlu0 %529  ;;  %v1825_v53 = vld [vmem:[%s2408_s2 + $0x38] sm:$0xff]  }
 0x1e1   :  { %532 = vst.msk [vmem:[#allocation3 + $0x19] sm:$0xf] %vm454_vm5, %v530_v62  ;;  %1784 = vmatprep.subr.bf16.mxu1 %v1825_v53 }
 0x1e2   :  { %1785 = vmatpush3.bf16.msra.mxu1 %v1825_v53 }
 0x1e3   :  { %v487_v63 = vpop.permute.xlu1 %486 }
 0x1e4   :  { %489 = vst.msk [vmem:[#allocation3 + $0x8] sm:$0xf] %vm461_vm6, %v487_v63  ;;  %v624_v0 = vpop.permute.xlu0 %623 }
 0x1e5   :  { %626 = vst.msk [vmem:[#allocation3 + $0x40] sm:$0xf] %vm474_vm4, %v624_v0 }
 0x1e7   :  { %v537_v43 = vpop.permute.xlu1 %536 }
 0x1e8   :  { %539 = vst.msk [vmem:[#allocation3 + $0x18] sm:$0xf] %vm461_vm6, %v537_v43  ;;  %v505_v1 = vpop.permute.xlu0 %504 }
 0x1e9   :  { %507 = vst.msk [vmem:[#allocation3 + $0x11] sm:$0xf] %vm454_vm5, %v505_v1 }
 0x1eb   :  { %v599_v7 = vpop.permute.xlu1 %598  ;;  %v656_v8 = vld [vmem:[#allocation3 + $0x8] sm:$0xf] }
 0x1ec   :  { %601 = vst.msk [vmem:[#allocation3 + $0x38] sm:$0xf] %vm474_vm4, %v599_v7  ;;  %v581_v10 = vpop.permute.xlu0 %580  ;;  %v1674_v50 = vpack.c.bf16 %v656_v8, %v656_v8  ;;  %v708_v57 = vld [vmem:[#allocation3 + $0x9] sm:$0xf]  ;;  %v1826_v7 = vld [vmem:[%s2408_s2 + $0x30] sm:$0xff]  }
 0x1ed   :  { %583 = vst.msk [vmem:[#allocation3 + $0x31] sm:$0xf] %vm454_vm5, %v581_v10  ;;  %v1679_v59 = vpack.c.bf16 %v708_v57, %v708_v57  ;;  %v776_v60 = vld [vmem:[#allocation3 + $0x8] sm:$0xf]  ;;  %1786 = vmatprep.subr.bf16.mxu1 %v1826_v7 }
 0x1ee   :  { %v661_v12 = vrot.slane %v1674_v50, 6  ;;  %v1686_v63 = vpack.c.bf16 %v776_v60, %v776_v60  ;;  %1787 = vmatpush3.bf16.msra.mxu1 %v1826_v7 }
 0x1ef   :  { %v452_v2 = vpop.permute.xlu1 %451  ;;  %v668_v13 = vld [vmem:[#allocation3 + $0x18] sm:$0xf]  ;;  %v713_v62 = vrot.slane %v1679_v59, 6 }
 0x1f0   :  { %455 = vst.msk [vmem:[#allocation3 + $0x1] sm:$0xf] %vm454_vm5, %v452_v2  ;;  %v631_v14 = vpop.permute.xlu0 %630  ;;  %v1675_v15 = vpack.c.bf16 %v668_v13, %v668_v13  ;;  %v728_v61 = vld [vmem:[#allocation3 + $0x19] sm:$0xf]  ;;  %v1827_v13 = vld [vmem:[%s2408_s2 + $0x28] sm:$0xff]  }
 0x1f1   :  { %633 = vst.msk [vmem:[#allocation3 + $0x41] sm:$0xf] %vm454_vm5, %v631_v14  ;;  %v1681_v0 = vpack.c.bf16 %v728_v61, %v728_v61  ;;  %v797_v43 = vld [vmem:[#allocation3 + $0x18] sm:$0xf]  ;;  %1788 = vmatprep.subr.bf16.mxu1 %v1827_v13 }
 0x1f2   :  { %664 = vst.msk [vmem:[#allocation4] sm:$0xc] %vm663_vm7, %v661_v12  ;;  %v673_v18 = vrot.slane %v1675_v15, 6  ;;  %v1688_v10 = vpack.c.bf16 %v797_v43, %v797_v43  ;;  %1789 = vmatpush3.bf16.msra.mxu1 %v1827_v13 }
 0x1f3   :  { %v548_v17 = vpop.permute.xlu1 %547  ;;  %v733_v8 = vrot.slane %v1681_v0, 6 }
 0x1f4   :  { %550 = vst.msk [vmem:[#allocation3 + $0x20] sm:$0xf] %vm474_vm4, %v548_v17  ;;  %v512_v22 = vpop.permute.xlu0 %511 }
 0x1f5   :  { %675 = vst.msk [vmem:[#allocation4 + $0x4] sm:$0xc] %vm663_vm7, %v673_v18 }
 0x1f6   :  { %514 = vst.msk [vmem:[#allocation3 + $0x10] sm:$0xf] %vm461_vm6, %v512_v22 }
 0x1f7   :  { %v606_v24 = vpop.permute.xlu1 %605 }
 0x1f8   :  { %608 = vst.msk [vmem:[#allocation3 + $0x39] sm:$0xf] %vm454_vm5, %v606_v24  ;;  %v588_v19 = vpop.permute.xlu0 %587  ;;  %v1828_v24 = vld [vmem:[%s2408_s2 + $0x20] sm:$0xff]  }
 0x1f9   :  { %590 = vst.msk [vmem:[#allocation3 + $0x30] sm:$0xf] %vm461_vm6, %v588_v19  ;;  %1790 = vmatprep.subr.bf16.mxu1 %v1828_v24 }
 0x1fa   :  { %1791 = vmatpush3.bf16.msra.mxu1 %v1828_v24 }
 0x1fb   :  { %v459_v27 = vpop.permute.xlu1 %458  ;;  %v806_v30 = vld [vmem:[#allocation3 + $0x20] sm:$0xf] }
 0x1fc   :  { %462 = vst.msk [vmem:[#allocation3] sm:$0xf] %vm461_vm6, %v459_v27  ;;  %v1689_v25 = vpack.c.bf16 %v806_v30, %v806_v30  ;;  %v638_v32 = vpop.permute.xlu0 %637  ;;  %v884_v51 = vld [vmem:[#allocation3 + $0x21] sm:$0xf] }
 0x1fd   :  { %640 = vst.msk [vmem:[#allocation3 + $0x40] sm:$0xf] %vm461_vm6, %v638_v32  ;;  %v665_v36 = vld [vmem:[#allocation3 + $0x10] sm:$0xf]  ;;  %v1697_v55 = vpack.c.bf16 %v884_v51, %v884_v51 }
 0x1fe   :  { %v811_v35 = vrot.slane %v1689_v25, 6  ;;  %v666_v34 = vpack.c.bf16 %v665_v36, %v665_v36  ;;  %v719_v47 = vld [vmem:[#allocation3 + $0x11] sm:$0xf]  ;;  %v854_v25 = vld [vmem:[#allocation3 + $0x9] sm:$0xf] }
 0x1ff   :  { %v613_v28 = vpop.permute.xlu1 %612  ;;  %v1680_v37 = vpack.c.bf16 %v719_v47, %v719_v47  ;;  %v889_v58 = vrot.slane %v1697_v55, 6  ;;  %v786_v22 = vld [vmem:[#allocation3 + $0x10] sm:$0xf] }
 0x200   :  { %615 = vst.msk [vmem:[#allocation3 + $0x38] sm:$0xf] %vm461_vm6, %v613_v28  ;;  %812 = vrot.lane.b32.xlu1 %v811_v35, %s1887_s22  ;;  %v555_v39 = vpop.permute.xlu0 %554  ;;  %v679_v3 = vld [vmem:[#allocation3 + $0x30] sm:$0xf]  ;;  %v1687_v30 = vpack.c.bf16 %v786_v22, %v786_v22  ;;  %v1829_v35 = vld [vmem:[%s2408_s2 + $0x18] sm:$0xff]   ;;  %v1694_v28 = vpack.c.bf16 %v854_v25, %v854_v25 }
 0x201   :  { %667 = vst.msk [vmem:[#allocation4 + $0x4] sm:$0x3] %vm654_vm8, %v666_v34  ;;  %v1676_v41 = vpack.c.bf16 %v679_v3, %v679_v3  ;;  %v747_v1 = vld [vmem:[#allocation3 + $0x31] sm:$0xf]  ;;  %1792 = vmatprep.subr.bf16.mxu1 %v1829_v35 }
 0x202   :  { %558 = vst.msk [vmem:[#allocation3 + $0x29] sm:$0xf] %vm454_vm5, %v555_v39  ;;  %v1683_v50 = vpack.c.bf16 %v747_v1, %v747_v1  ;;  %v816_v2 = vld [vmem:[#allocation3 + $0x30] sm:$0xf]  ;;  %v791_v36 = vrot.slane %v1687_v30, 6  ;;  %1793 = vmatpush3.bf16.msra.mxu1 %v1829_v35  ;;  %vm1242_vm5 = vcmask 516096  }
 0x203   :  { %v563_v40 = vpop.permute.xlu1 %562  ;;  %v698_v4 = vld [vmem:[#allocation3 + $0x1] sm:$0xf]  ;;  %v684_v31 = vrot.slane %v1676_v41, 6  ;;  %v1690_v15 = vpack.c.bf16 %v816_v2, %v816_v2  ;;  %v875_v39 = vld [vmem:[#allocation3 + $0x19] sm:$0xf] }
 0x204   :  { %v652_v5 = vld [vmem:[#allocation3] sm:$0xf]  ;;  %565 = vst.msk [vmem:[#allocation3 + $0x28] sm:$0xf] %vm461_vm6, %v563_v40  ;;  %v1678_v6 = vpack.c.bf16 %v698_v4, %v698_v4  ;;  %v649_v45 = vpop.permute.xlu0 %648  ;;  %v752_v14 = vrot.slane %v1683_v50, 6  ;;  %v1830_v40 = vld [vmem:[%s2408_s2 + $0x10] sm:$0xff]  }
 0x205   :  { %v653_v44 = vpack.c.bf16 %v652_v5, %v652_v5  ;;  %651 = vst.msk [vmem:[#allocation3 + $0x48] sm:$0xf] %vm474_vm4, %v649_v45  ;;  %v690_v49 = vld [vmem:[#allocation3 + $0x40] sm:$0xf]  ;;  %v864_v3 = vld [vmem:[#allocation3 + $0x11] sm:$0xf]  ;;  %1794 = vmatprep.subr.bf16.mxu1 %v1830_v40  ;;  %v1696_v5 = vpack.c.bf16 %v875_v39, %v875_v39 }
 0x206   :  { %703 = vrot.lane.b32.xlu0 %v1678_v6, %s1888_s23  ;;  %v1677_v9 = vpack.c.bf16 %v690_v49, %v690_v49  ;;  %686 = vst.msk [vmem:[#allocation4 + $0x8] sm:$0xc] %vm663_vm7, %v684_v31  ;;  %v766_v12 = vld [vmem:[#allocation3 + $0x41] sm:$0xf]  ;;  %v1695_v41 = vpack.c.bf16 %v864_v3, %v864_v3  ;;  %v894_v6 = vld [vmem:[#allocation3 + $0x31] sm:$0xf]  ;;  %1795 = vmatpush3.bf16.msra.mxu1 %v1830_v40 }
 0x207   :  { %655 = vst.msk [vmem:[#allocation4] sm:$0x3] %vm654_vm8, %v653_v44  ;;  %v687_v11 = vld [vmem:[#allocation3 + $0x38] sm:$0xf]  ;;  %v1685_v17 = vpack.c.bf16 %v766_v12, %v766_v12  ;;  %v835_v18 = vld [vmem:[#allocation3 + $0x40] sm:$0xf] }
 0x208   :  { %v688_v16 = vpack.c.bf16 %v687_v11, %v687_v11  ;;  %v695_v21 = vrot.slane %v1677_v9, 6  ;;  %v757_v56 = vld [vmem:[#allocation3 + $0x39] sm:$0xf]  ;;  %v1692_v27 = vpack.c.bf16 %v835_v18, %v835_v18  ;;  %v1831_v45 = vld [vmem:[%s2408_s2 + $0x8] sm:$0xff]   ;;  %v1833_v31 = vld [vmem:[%s2408_s2] sm:$0xff]   ;;  %v869_v49 = vrot.slane %v1695_v41, 6 }
 0x209   :  { %v1684_v46 = vpack.c.bf16 %v757_v56, %v757_v56  ;;  %v771_v19 = vrot.slane %v1685_v17, 6  ;;  %v825_v32 = vld [vmem:[#allocation3 + $0x38] sm:$0xf]  ;;  %1796 = vmatprep.subr.bf16.mxu1 %v1831_v45  ;;  %v1698_v9 = vpack.c.bf16 %v894_v6, %v894_v6  ;;  %vm1149_vm4 = vcmask 517504  }
 0x20a   :  { %689 = vst.msk [vmem:[#allocation4 + $0xc] sm:$0x3] %vm654_vm8, %v688_v16  ;;  %v1691_v34 = vpack.c.bf16 %v825_v32, %v825_v32  ;;  %v903_v44 = vld [vmem:[#allocation3 + $0x39] sm:$0xf]  ;;  %v913_v16 = vld [vmem:[#allocation3 + $0x41] sm:$0xf]  ;;  %1797 = vmatpush3.bf16.msra.mxu1 %v1831_v45 }
 0x20b   :  { %v738_v26 = vld [vmem:[#allocation3 + $0x29] sm:$0xf]  ;;  %697 = vst.msk [vmem:[#allocation4 + $0xc] sm:$0xc] %vm663_vm7, %v695_v21  ;;  %v1699_v11 = vpack.c.bf16 %v903_v44, %v903_v44  ;;  %1798 = vmatprep.subr.bf16.mxu1 %v1833_v31  ;;  %vm1251_vm6 = vcmask 517121   ;;  %vm1260_vm7 = vcmask 518146  }
 0x20c   :  { %v676_v29 = vld [vmem:[#allocation3 + $0x28] sm:$0xf]  ;;  %v1682_v33 = vpack.c.bf16 %v738_v26, %v738_v26  ;;  %v830_v4 = vrot.slane %v1691_v34, 6 }
 0x20d   :  { %v677_v38 = vpack.c.bf16 %v676_v29, %v676_v29  ;;  %v844_v42 = vld [vmem:[#allocation3 + $0x48] sm:$0xf]  ;;  %v908_v26 = vrot.slane %v1699_v11, 6  ;;  %v1700_v29 = vpack.c.bf16 %v913_v16, %v913_v16 }
 0x20e   :  { %743 = vrot.lane.b32.xlu0 %v1682_v33, %s1888_s23  ;;  %v1693_v52 = vpack.c.bf16 %v844_v42, %v844_v42  ;;  %v922_v21 = vld [vmem:[#allocation3 + $0x49] sm:$0xf]  ;;  %1799 = vmatpush3.bf16.msra.mxu1 %v1833_v31 }
 0x20f   :  { %678 = vst.msk [vmem:[#allocation4 + $0x8] sm:$0x3] %vm654_vm8, %v677_v38  ;;  %v1701_v33 = vpack.c.bf16 %v922_v21, %v922_v21  ;;  %vm1269_vm8 = vcmask 519171  }
 0x210   :  { %v849_v54 = vrot.slane %v1693_v52, 6 }
 0x211   :  { %v927_v38 = vrot.slane %v1701_v33, 6 }
 0x212   :  { %850 = vrot.lane.b32.xlu1 %v849_v54, %s1887_s22  ;;  %724 = vrot.lane.b32.xlu0 %v1680_v37, %s1888_s23 }
 0x216   :  { %890 = vrot.lane.b32.xlu1 %v889_v58, %s1889_s26  ;;  %762 = vrot.lane.b32.xlu0 %v1684_v46, %s1888_s23 }
 0x21a   :  { %714 = vrot.lane.b32.xlu1 %v713_v62, %s1888_s23  ;;  %781 = vrot.lane.b32.xlu0 %v1686_v63, %s1887_s22 }
 0x21e   :  { %734 = vrot.lane.b32.xlu1 %v733_v8, %s1888_s23  ;;  %802 = vrot.lane.b32.xlu0 %v1688_v10, %s1887_s22 }
 0x222   :  { %753 = vrot.lane.b32.xlu1 %v752_v14, %s1888_s23  ;;  %821 = vrot.lane.b32.xlu0 %v1690_v15, %s1887_s22 }
 0x226   :  { %772 = vrot.lane.b32.xlu1 %v771_v19, %s1888_s23  ;;  %840 = vrot.lane.b32.xlu0 %v1692_v27, %s1887_s22 }
 0x22a   :  { %792 = vrot.lane.b32.xlu1 %v791_v36, %s1887_s22  ;;  %859 = vrot.lane.b32.xlu0 %v1694_v28, %s1889_s26 }
 0x22e   :  { %831 = vrot.lane.b32.xlu1 %v830_v4, %s1887_s22  ;;  %880 = vrot.lane.b32.xlu0 %v1696_v5, %s1889_s26 }
 0x232   :  { %870 = vrot.lane.b32.xlu1 %v869_v49, %s1889_s26  ;;  %899 = vrot.lane.b32.xlu0 %v1698_v9, %s1889_s26 }
 0x236   :  { %909 = vrot.lane.b32.xlu1 %v908_v26, %s1889_s26  ;;  %918 = vrot.lane.b32.xlu0 %v1700_v29, %s1889_s26 }
 0x23a   :  { %928 = vrot.lane.b32.xlu1 %v927_v38, %s1889_s26 }
 0x272   :  { %v813_v47 = vpop.permute.xlu1 %812 }
 0x278   :  { %v704_v42 = vpop.permute.xlu0 %703 }
 0x279   :  { %707 = vst.msk [vmem:[#allocation4] sm:$0x3] %vm706_vm9, %v704_v42 }
 0x280   :  { %v744_v51 = vpop.permute.xlu0 %743 }
 0x281   :  { %746 = vst.msk [vmem:[#allocation4 + $0x8] sm:$0x3] %vm706_vm9, %v744_v51 }
 0x284   :  { %v851_v52 = vpop.permute.xlu1 %850  ;;  %v725_v54 = vpop.permute.xlu0 %724 }
 0x285   :  { %727 = vst.msk [vmem:[#allocation4 + $0x4] sm:$0x3] %vm706_vm9, %v725_v54 }
 0x288   :  { %v891_v37 = vpop.permute.xlu1 %890  ;;  %v763_v55 = vpop.permute.xlu0 %762 }
 0x289   :  { %765 = vst.msk [vmem:[#allocation4 + $0xc] sm:$0x3] %vm706_vm9, %v763_v55  ;;  %vm1290_vm9 = vcmask 1041921  }
 0x28c   :  { %v715_v56 = vpop.permute.xlu1 %714  ;;  %v782_v57 = vpop.permute.xlu0 %781 }
 0x28d   :  { %718 = vst.msk [vmem:[#allocation4] sm:$0xc] %vm717_vm10, %v715_v56 }
 0x28e   :  { %785 = vst.msk [vmem:[#allocation4] sm:$0x3] %vm784_vm11, %v782_v57 }
 0x290   :  { %v735_v58 = vpop.permute.xlu1 %734  ;;  %v803_v46 = vpop.permute.xlu0 %802 }
 0x291   :  { %737 = vst.msk [vmem:[#allocation4 + $0x4] sm:$0xc] %vm717_vm10, %v735_v58  ;;  %v1640_v58 = vld [vmem:[%s2410_s4 + $0x3] ss:$0 sm:$0xff] }
 0x292   :  { %805 = vst.msk [vmem:[#allocation4 + $0x4] sm:$0x3] %vm784_vm11, %v803_v46 }
 0x293   :  { %815 = vst.msk [vmem:[#allocation4 + $0x4] sm:$0xc] %vm795_vm12, %v813_v47 }
 0x294   :  { %893 = vst.msk [vmem:[#allocation4 + $0x4] sm:$0xc] %vm873_vm13, %v891_v37  ;;  %v754_v59 = vpop.permute.xlu1 %753  ;;  %v822_v60 = vpop.permute.xlu0 %821  ;;  %v24_v37 = vld [vmem:[%s2410_s4 + $0x2] sm:$0x1] }
 0x295   :  { %756 = vst.msk [vmem:[#allocation4 + $0x8] sm:$0xc] %vm717_vm10, %v754_v59 }
 0x296   :  { %824 = vst.msk [vmem:[#allocation4 + $0x8] sm:$0x3] %vm784_vm11, %v822_v60 }
 0x298   :  { %v773_v61 = vpop.permute.xlu1 %772  ;;  %v841_v53 = vpop.permute.xlu0 %840 }
 0x299   :  { %775 = vst.msk [vmem:[#allocation4 + $0xc] sm:$0xc] %vm717_vm10, %v773_v61  ;;  %vm1279_vm10 = vcmask 1040896  }
 0x29a   :  { %843 = vst.msk [vmem:[#allocation4 + $0xc] sm:$0x3] %vm784_vm11, %v841_v53  ;;  %vm1312_vm11 = vcmask 1043971  }
 0x29b   :  { %853 = vst.msk [vmem:[#allocation4 + $0xc] sm:$0xc] %vm795_vm12, %v851_v52 }
 0x29c   :  { %v793_v62 = vpop.permute.xlu1 %792  ;;  %v860_v63 = vpop.permute.xlu0 %859 }
 0x29d   :  { %796 = vst.msk [vmem:[#allocation4] sm:$0xc] %vm795_vm12, %v793_v62 }
 0x29e   :  { %863 = vst.msk [vmem:[#allocation4] sm:$0x3] %vm862_vm14, %v860_v63 }
 0x2a0   :  { %v832_v0 = vpop.permute.xlu1 %831  ;;  %v881_v43 = vpop.permute.xlu0 %880 }
 0x2a1   :  { %834 = vst.msk [vmem:[#allocation4 + $0x8] sm:$0xc] %vm795_vm12, %v832_v0  ;;  %vm1301_vm12 = vcmask 1042946  }
 0x2a2   :  { %883 = vst.msk [vmem:[#allocation4 + $0x4] sm:$0x3] %vm862_vm14, %v881_v43 }
 0x2a4   :  { %v871_v1 = vpop.permute.xlu1 %870  ;;  %v900_v7 = vpop.permute.xlu0 %899 }
 0x2a5   :  { %874 = vst.msk [vmem:[#allocation4] sm:$0xc] %vm873_vm13, %v871_v1 }
 0x2a6   :  { %902 = vst.msk [vmem:[#allocation4 + $0x8] sm:$0x3] %vm862_vm14, %v900_v7 }
 0x2a8   :  { %v910_v8 = vpop.permute.xlu1 %909  ;;  %v919_v10 = vpop.permute.xlu0 %918 }
 0x2a9   :  { %912 = vst.msk [vmem:[#allocation4 + $0x8] sm:$0xc] %vm873_vm13, %v910_v8 }
 0x2aa   :  { %921 = vst.msk [vmem:[#allocation4 + $0xc] sm:$0x3] %vm862_vm14, %v919_v10 }
 0x2ac   :  { %v929_v50 = vpop.permute.xlu1 %928  ;;  %v1832_v2 = vld [vmem:[#allocation4] sm:$0xff]  }
 0x2ad   :  { %931 = vst.msk [vmem:[#allocation4 + $0xc] sm:$0xc] %vm873_vm13, %v929_v50  ;;  %1800 = vmatprep.mubr.bf16.mxu1 %v1832_v2 }
 0x2b4   :  { %v1834_v12 = vld [vmem:[#allocation4 + $0x8] sm:$0xff]  }
 0x2b5   :  { %1801 = vmatmul.mubr.bf16.vlgmr.msra.gmra.mxu1 %v1834_v12 }
 0x375   :  { %v1802_v13 = vpop.f32.mrf.mxu1 }
 0x376   :  { %v1065_v19 = vsel %vm1061_vm0, %v1802_v13, 0.0 }
 0x377   :  { %v1046_v14 = vpop.f32.mrf.mxu1 }
 0x378   :  { %v1062_v18 = vsel %vm1061_vm0, %v1046_v14, 0.0 }
 0x379   :  { %v1803_v15 = vpop.f32.mrf.mxu1 }
 0x37a   :  { %v1067_v30 = vsel %vm1061_vm0, %v1803_v15, 0.0 }
 0x37b   :  { %v1049_v17 = vpop.f32.mrf.mxu1 }
 0x37c   :  { %v1063_v22 = vsel %vm1061_vm0, %v1049_v17, 0.0 }
 0x37d   :  { %v1064_v24 = vadd.f32 %v1063_v22, %v1062_v18 }
 0x37f   :  { %v1066_v27 = vadd.f32 %v1065_v19, %v1064_v24 }
 0x381   :  { %v1068_v25 = vadd.f32 %v1067_v30, %v1066_v27 }
 0x383   :  { %v1069_v32 = vrot.slane %v1068_v25, 4 }
 0x385   :  { %v1070_v35 = vadd.f32 %v1069_v32, %v1068_v25 }
 0x387   :  { %v1071_v36 = vrot.slane %v1070_v35, 2 }
 0x389   :  { %v1072_v48 = vadd.f32 %v1071_v36, %v1070_v35 }
 0x38b   :  { %v1073_v28 = vrot.slane %v1072_v48, 1 }
 0x38d   :  { %v1074_v34 = vadd.f32 %v1073_v28, %v1072_v48  ;;  %v1835_v48 = vld [vmem:[%s2409_s3 + $0x78] sm:$0xff]  }
 0x38e   :  { %v1836_v28 = vld [vmem:[%s2409_s3 + $0x38] sm:$0xff]   ;;  %1738 = vmatprep.subr.bf16.mxu0 %v1835_v48 }
 0x38f   :  { %v1075_v39 = vmul.f32 0.03125, %v1074_v34  ;;  %1739 = vmatpush3.bf16.msra.mxu0 %v1836_v28 }
 0x391   :  { %v1076_v3 = vsub.f32 %v1046_v14, %v1075_v39  ;;  %v1077_v40 = vsub.f32 %v1049_v17, %v1075_v39  ;;  %v1078_v4 = vsub.f32 %v1802_v13, %v1075_v39  ;;  %v1079_v5 = vsub.f32 %v1803_v15, %v1075_v39 }
 0x393   :  { %v1080_v41 = vmul.f32 %v1076_v3, %v1076_v3  ;;  %v1081_v6 = vmul.f32 %v1077_v40, %v1077_v40  ;;  %v1082_v44 = vmul.f32 %v1078_v4, %v1078_v4  ;;  %v1083_v45 = vmul.f32 %v1079_v5, %v1079_v5 }
 0x395   :  { %v1084_v31 = vsel %vm1061_vm0, %v1080_v41, 0.0  ;;  %v1085_v49 = vsel %vm1061_vm0, %v1081_v6, 0.0  ;;  %v1087_v11 = vsel %vm1061_vm0, %v1082_v44, 0.0  ;;  %v1089_v21 = vsel %vm1061_vm0, %v1083_v45, 0.0  ;;  %v1837_v44 = vld [vmem:[%s2409_s3 + $0x70] sm:$0xff]  }
 0x396   :  { %v1086_v9 = vadd.f32 %v1085_v49, %v1084_v31  ;;  %v1838_v45 = vld [vmem:[%s2409_s3 + $0x30] sm:$0xff]   ;;  %1740 = vmatprep.subr.bf16.mxu0 %v1837_v44 }
 0x397   :  { %1741 = vmatpush3.bf16.msra.mxu0 %v1838_v45 }
 0x398   :  { %v1088_v16 = vadd.f32 %v1087_v11, %v1086_v9 }
 0x39a   :  { %v1090_v26 = vadd.f32 %v1089_v21, %v1088_v16  ;;  %v1839_v16 = vld [vmem:[%s2409_s3 + $0x68] sm:$0xff]  }
 0x39b   :  { %v1840_v21 = vld [vmem:[%s2409_s3 + $0x28] sm:$0xff]   ;;  %1742 = vmatprep.subr.bf16.mxu0 %v1839_v16 }
 0x39c   :  { %v1091_v29 = vrot.slane %v1090_v26, 4  ;;  %1743 = vmatpush3.bf16.msra.mxu0 %v1840_v21 }
 0x39e   :  { %v1092_v33 = vadd.f32 %v1091_v29, %v1090_v26 }
 0x3a0   :  { %v1093_v38 = vrot.slane %v1092_v33, 2 }
 0x3a2   :  { %v1094_v42 = vadd.f32 %v1093_v38, %v1092_v33 }
 0x3a4   :  { %v1095_v47 = vrot.slane %v1094_v42, 1 }
 0x3a6   :  { %v1096_v51 = vadd.f32 %v1095_v47, %v1094_v42 }
 0x3a8   :  { %v1097_v52 = vmul.f32 0.03125, %v1096_v51 }
 0x3aa   :  { %v1098_v54 = vadd.f32 1e-05, %v1097_v52 }
 0x3ac   :  { %1855 = vrsqrt.f32 %v1098_v54 }
 0x3b9   :  { %v1856_v55 = vpop.eup %1855 }
 0x3ba   :  { %v1100_v56 = vmul.f32 %v1856_v55, %v24_v37  ;;  %v1841_v55 = vld [vmem:[%s2409_s3 + $0x60] sm:$0xff]  }
 0x3bb   :  { %1744 = vmatprep.subr.bf16.mxu0 %v1841_v55 }
 0x3bc   :  { %v1104_v57 = vrot.slane %v1100_v56, %v351_v23  ;;  %v1842_v56 = vld [vmem:[%s2409_s3 + $0x20] sm:$0xff]  }
 0x3bd   :  { %1745 = vmatpush3.bf16.msra.mxu0 %v1842_v56 }
 0x3be   :  { %v1105_v46 = vmul.f32 %v1104_v57, %v1076_v3  ;;  %v1106_v59 = vmul.f32 %v1104_v57, %v1077_v40  ;;  %v1107_v60 = vmul.f32 %v1104_v57, %v1078_v4  ;;  %v1108_v61 = vmul.f32 %v1104_v57, %v1079_v5 }
 0x3c0   :  { %v1113_v53 = vadd.f32 %v1640_v58, %v1105_v46  ;;  %v1114_v62 = vadd.f32 %v1640_v58, %v1106_v59  ;;  %v1115_v63 = vadd.f32 %v1640_v58, %v1107_v60  ;;  %v1116_v0 = vadd.f32 %v1640_v58, %v1108_v61 }
 0x3c2   :  { %v1117_v43 = vmul.f32 0.2, %v1113_v53  ;;  %v1118_v1 = vmul.f32 0.2, %v1114_v62  ;;  %v1119_v7 = vmul.f32 0.2, %v1115_v63 }
 0x3c3   :  { %v1120_v8 = vmul.f32 0.2, %v1116_v0 }
 0x3c4   :  { %v1121_v10 = vmax.f32 %v1113_v53, %v1117_v43  ;;  %v1122_v50 = vmax.f32 %v1114_v62, %v1118_v1  ;;  %v1123_v20 = vmax.f32 %v1115_v63, %v1119_v7  ;;  %v1843_v63 = vld [vmem:[%s2409_s3 + $0x58] sm:$0xff]  }
 0x3c5   :  { %v1124_v23 = vmax.f32 %v1116_v0, %v1120_v8  ;;  %v1844_v7 = vld [vmem:[%s2409_s3 + $0x18] sm:$0xff]   ;;  %1746 = vmatprep.subr.bf16.mxu0 %v1843_v63 }
 0x3c6   :  { %1125 = vst.msk [vmem:[#allocation5] sm:$0xff] %vm1061_vm0, %v1121_v10  ;;  %1126 = vst.msk [vmem:[#allocation5 + $0x8] sm:$0xff] %vm1061_vm0, %v1122_v50  ;;  %1747 = vmatpush3.bf16.msra.mxu0 %v1844_v7 }
 0x3c7   :  { %1127 = vst.msk [vmem:[#allocation5 + $0x10] sm:$0xff] %vm1061_vm0, %v1123_v20  ;;  %1128 = vst.msk [vmem:[#allocation5 + $0x18] sm:$0xff] %vm1061_vm0, %v1124_v23  ;;  %v1845_v20 = vld [vmem:[%s2409_s3 + $0x50] sm:$0xff]  }
 0x3c8   :  { %1748 = vmatprep.subr.bf16.mxu0 %v1845_v20 }
 0x3cd   :  { %v1157_v12 = vld [vmem:[#allocation5 + $0x4] ss:$2 sm:$0x3]  ;;  %v1165_v14 = vld [vmem:[#allocation5 + $0x9] ss:$2 sm:$0x3] }
 0x3ce   :  { %v1209_v2 = vld [vmem:[#allocation5 + $0x14] ss:$2 sm:$0x3]  ;;  %1159 = vrot.lane.b32.xlu0 %v1157_v12, %s1884_s19  ;;  %v1190_v13 = vld [vmem:[#allocation5 + $0x11] ss:$2 sm:$0x3] }
 0x3cf   :  { %1211 = vrot.lane.b32.xlu1 %v1209_v2, %s1884_s19  ;;  %v1205_v15 = vld [vmem:[#allocation5 + $0x15] ss:$2 sm:$0x3]  ;;  %v1152_v17 = vld [vmem:[#allocation5 + $0x5] ss:$2 sm:$0x3] }
 0x3d0   :  { %1207 = vst.msk [vmem:[#allocation6 + $0x11] sm:$0x3] %vm1154_vm1, %v1205_v15  ;;  %1155 = vst.msk [vmem:[#allocation6 + $0x5] sm:$0x3] %vm1154_vm1, %v1152_v17 }
 0x3d1   :  { %v1179_v18 = vld [vmem:[#allocation5 + $0xd] ss:$2 sm:$0x3]  ;;  %v1230_v22 = vld [vmem:[#allocation5 + $0x1d] ss:$2 sm:$0x3] }
 0x3d2   :  { %1167 = vrot.lane.b32.xlu0 %v1165_v14, %s1888_s23  ;;  %v1172_v24 = vld [vmem:[#allocation5 + $0x8] ss:$2 sm:$0x3]  ;;  %v1216_v19 = vld [vmem:[#allocation5 + $0x19] ss:$2 sm:$0x3] }
 0x3d3   :  { %1192 = vrot.lane.b32.xlu1 %v1190_v13, %s1888_s23  ;;  %1181 = vst.msk [vmem:[#allocation6 + $0x9] sm:$0x3] %vm1154_vm1, %v1179_v18  ;;  %1232 = vst.msk [vmem:[#allocation6 + $0x15] sm:$0x3] %vm1154_vm1, %v1230_v22  ;;  %v1846_v14 = vld [vmem:[%s2409_s3 + $0x10] sm:$0xff]  }
 0x3d4   :  { %v1198_v27 = vld [vmem:[#allocation5 + $0x10] ss:$2 sm:$0x3]  ;;  %v1183_v30 = vld [vmem:[#allocation5 + $0xc] ss:$2 sm:$0x3]  ;;  %1749 = vmatpush3.bf16.msra.mxu0 %v1846_v14 }
 0x3d5   :  { %v1234_v25 = vld [vmem:[#allocation5 + $0x1c] ss:$2 sm:$0x3]  ;;  %v1223_v32 = vld [vmem:[#allocation5 + $0x18] ss:$2 sm:$0x3] }
 0x3d6   :  { %1218 = vrot.lane.b32.xlu0 %v1216_v19, %s1888_s23  ;;  %v1144_v35 = vld [vmem:[#allocation5] ss:$2 sm:$0x3]  ;;  %v1137_v36 = vld [vmem:[#allocation5 + $0x1] ss:$2 sm:$0x3] }
 0x3d7   :  { %1174 = vrot.lane.b32.xlu1 %v1172_v24, %s1890_s17 }
 0x3da   :  { %1185 = vrot.lane.b32.xlu0 %v1183_v30, %s1884_s19 }
 0x3db   :  { %1200 = vrot.lane.b32.xlu1 %v1198_v27, %s1890_s17 }
 0x3de   :  { %1225 = vrot.lane.b32.xlu0 %v1223_v32, %s1890_s17  ;;  %v1847_v32 = vld [vmem:[%s2409_s3 + $0x48] sm:$0xff]  }
 0x3df   :  { %1236 = vrot.lane.b32.xlu1 %v1234_v25, %s1884_s19  ;;  %1750 = vmatprep.subr.bf16.mxu0 %v1847_v32 }
 0x3e2   :  { %1139 = vrot.lane.b32.xlu0 %v1137_v36, %s1888_s23  ;;  %v1849_v36 = vld [vmem:[%s2409_s3 + $0x40] sm:$0xff]   ;;  %s1891_s23 = smov [#allocation8]  }
 0x3e3   :  { %1146 = vrot.lane.b32.xlu1 %v1144_v35, %s1890_s17  ;;  %v1848_v35 = vld [vmem:[%s2409_s3 + $0x8] sm:$0xff]   ;;  %s1573_s25 = sshll.u32 %s1891_s23, 4  ;;  %s1574_s25 = int_to_ptr.vmem [resolvable:$true] %s1573_s25 }
 0x3e4   :  { %1751 = vmatpush3.bf16.msra.mxu0 %v1848_v35  ;;  %s1861_s26 = scalar_lea.vmem %s1574_s25, 128  ;;  %p1866_p1 = scmp.lt.s32.totalorder %s1574_s25, %s1574_s25 }
 0x3e5   :  { %1752 = vmatprep.subr.bf16.mxu0 %v1849_v36  ;;  %p1862_p0 = scmp.ne.s32.totalorder %s1574_s25, %s1861_s26  ;;  %p1867_p2 = scmp.lt.s32.totalorder %s1861_s26, %s1861_s26 }
 0x3e7   :  { %p1868_p3 = por %p1867_p2, %p1866_p1 }
 0x3e9   :  { %p1869_p4 = pnand %p1868_p3, %p1862_p0 }
 0x440   :  { %v1160_v39 = vpop.permute.xlu0 %1159 }
 0x441   :  { %v1212_v34 = vpop.permute.xlu1 %1211  ;;  %1163 = vst.msk [vmem:[#allocation6 + $0x4] sm:$0x3] %vm1162_vm2, %v1160_v39 }
 0x442   :  { %1214 = vst.msk [vmem:[#allocation6 + $0x10] sm:$0x3] %vm1162_vm2, %v1212_v34 }
 0x444   :  { %v1168_v40 = vpop.permute.xlu0 %1167 }
 0x445   :  { %v1193_v3 = vpop.permute.xlu1 %1192  ;;  %1170 = vst.msk [vmem:[#allocation6 + $0x5] sm:$0x3] %vm1142_vm3, %v1168_v40 }
 0x446   :  { %1196 = vst.msk [vmem:[#allocation6 + $0xd] sm:$0x3] %vm1142_vm3, %v1193_v3  ;;  %v1850_v3 = vld [vmem:[%s2409_s3] sm:$0xff]  }
 0x447   :  { %1753 = vmatpush3.bf16.msra.mxu0 %v1850_v3 }
 0x448   :  { %v1219_v5 = vpop.permute.xlu0 %1218 }
 0x449   :  { %v1175_v4 = vpop.permute.xlu1 %1174  ;;  %1221 = vst.msk [vmem:[#allocation6 + $0x11] sm:$0x3] %vm1142_vm3, %v1219_v5 }
 0x44a   :  { %1177 = vst.msk [vmem:[#allocation6 + $0x4] sm:$0x3] %vm1149_vm4, %v1175_v4 }
 0x44c   :  { %v1186_v6 = vpop.permute.xlu0 %1185 }
 0x44d   :  { %v1201_v41 = vpop.permute.xlu1 %1200  ;;  %1188 = vst.msk [vmem:[#allocation6 + $0x8] sm:$0x3] %vm1162_vm2, %v1186_v6 }
 0x44e   :  { %1203 = vst.msk [vmem:[#allocation6 + $0xc] sm:$0x3] %vm1149_vm4, %v1201_v41 }
 0x450   :  { %v1226_v49 = vpop.permute.xlu0 %1225 }
 0x451   :  { %v1237_v31 = vpop.permute.xlu1 %1236  ;;  %v1244_v9 = vld [vmem:[#allocation6 + $0x4] sm:$0x3]  ;;  %1228 = vst.msk [vmem:[#allocation6 + $0x10] sm:$0x3] %vm1149_vm4, %v1226_v49 }
 0x452   :  { %1239 = vst.msk [vmem:[#allocation6 + $0x14] sm:$0x3] %vm1162_vm2, %v1237_v31  ;;  %v1702_v11 = vpack.c.bf16 %v1244_v9, %v1244_v9  ;;  %v1314_v26 = vld [vmem:[#allocation6 + $0x4] sm:$0x3] }
 0x453   :  { %v1315_v29 = vpack.c.bf16 %v1314_v26, %v1314_v26  ;;  %v1281_v51 = vld [vmem:[#allocation6 + $0x5] sm:$0x3] }
 0x454   :  { %v1249_v33 = vrot.slane %v1702_v11, 7  ;;  %v1140_v42 = vpop.permute.xlu0 %1139  ;;  %v1350_v47 = vld [vmem:[#allocation6 + $0x9] sm:$0x3]  ;;  %v1706_v59 = vpack.c.bf16 %v1281_v51, %v1281_v51  ;;  %v1341_v27 = vld [vmem:[#allocation6 + $0x5] sm:$0x3] }
 0x455   :  { %v1147_v38 = vpop.permute.xlu1 %1146  ;;  %v1317_v52 = vld [vmem:[#allocation6 + $0x8] sm:$0x3]  ;;  %1316 = vst.msk [vmem:[#allocation7 + $0x4] sm:$0x1] %vm1242_vm5, %v1315_v29  ;;  %v1713_v54 = vpack.c.bf16 %v1350_v47, %v1350_v47  ;;  %v1253_v57 = vld [vmem:[#allocation6 + $0xc] sm:$0x3]  ;;  %v1712_v48 = vpack.c.bf16 %v1341_v27, %v1341_v27 }
 0x456   :  { %1143 = vst.msk [vmem:[#allocation6 + $0x1] sm:$0x3] %vm1142_vm3, %v1140_v42  ;;  %v1709_v37 = vpack.c.bf16 %v1317_v52, %v1317_v52  ;;  %v1703_v58 = vpack.c.bf16 %v1253_v57, %v1253_v57  ;;  %v1286_v10 = vrot.slane %v1706_v59, 7  ;;  %v1292_v25 = vld [vmem:[#allocation6 + $0xd] sm:$0x3] }
 0x457   :  { %1252 = vst.msk [vmem:[#allocation7] sm:$0x2] %vm1251_vm6, %v1249_v33  ;;  %v1355_v46 = vrot.slane %v1713_v54, 7  ;;  %v1707_v28 = vpack.c.bf16 %v1292_v25, %v1292_v25  ;;  %v1655_v33 = vld [vmem:[%s2410_s4 + $0x4] ss:$0 sm:$0xff] }
 0x458   :  { %1150 = vst.msk [vmem:[#allocation6] sm:$0x3] %vm1149_vm4, %v1147_v38  ;;  %v1322_v60 = vrot.slane %v1709_v37, 7  ;;  %v1303_v61 = vld [vmem:[#allocation6 + $0x11] sm:$0x3]  ;;  %v1258_v0 = vrot.slane %v1703_v58, 6 }
 0x459   :  { %1356 = vrot.lane.b32.xlu1 %v1355_v46, %s1887_s22  ;;  %v1262_v53 = vld [vmem:[#allocation6 + $0x10] sm:$0x3]  ;;  %v1333_v62 = vld [vmem:[#allocation6 + $0x14] sm:$0x3]  ;;  %v1708_v50 = vpack.c.bf16 %v1303_v61, %v1303_v61  ;;  %v1297_v40 = vrot.slane %v1707_v28, 6 }
 0x45a   :  { %1324 = vst.msk [vmem:[#allocation7 + $0x4] sm:$0x2] %vm1251_vm6, %v1322_v60  ;;  %v1704_v43 = vpack.c.bf16 %v1262_v53, %v1262_v53  ;;  %v1711_v1 = vpack.c.bf16 %v1333_v62, %v1333_v62  ;;  %v1325_v8 = vld [vmem:[#allocation6 + $0x10] sm:$0x3]  ;;  %v1370_v2 = vld [vmem:[#allocation6 + $0x15] sm:$0x3] }
 0x45b   :  { %1261 = vst.msk [vmem:[#allocation7] sm:$0x4] %vm1260_vm7, %v1258_v0  ;;  %v1710_v23 = vpack.c.bf16 %v1325_v8, %v1325_v8  ;;  %v1308_v19 = vrot.slane %v1708_v50, 5  ;;  %v1715_v30 = vpack.c.bf16 %v1370_v2, %v1370_v2  ;;  %v1360_v39 = vld [vmem:[#allocation6 + $0x11] sm:$0x3] }
 0x45c   :  { %v1267_v12 = vrot.slane %v1704_v43, 5  ;;  %v1338_v13 = vrot.slane %v1711_v1, 5  ;;  %v1714_v4 = vpack.c.bf16 %v1360_v39, %v1360_v39 }
 0x45d   :  { %1287 = vrot.lane.b32.xlu1 %v1286_v10, %s1887_s22  ;;  %v1330_v18 = vrot.slane %v1710_v23, 6  ;;  %v1375_v34 = vrot.slane %v1715_v30, 5 }
 0x45e   :  { %1270 = vst.msk [vmem:[#allocation7] sm:$0x8] %vm1269_vm8, %v1267_v12  ;;  %1340 = vst.msk [vmem:[#allocation7 + $0x4] sm:$0x8] %vm1269_vm8, %v1338_v13  ;;  %v1365_v5 = vrot.slane %v1714_v4, 6 }
 0x45f   :  { %v1271_v15 = vld [vmem:[#allocation6 + $0x1] sm:$0x3]  ;;  %1332 = vst.msk [vmem:[#allocation7 + $0x4] sm:$0x4] %vm1260_vm7, %v1330_v18 }
 0x460   :  { %v1240_v17 = vld [vmem:[#allocation6] sm:$0x3]  ;;  %v1705_v22 = vpack.c.bf16 %v1271_v15, %v1271_v15 }
 0x461   :  { %v1241_v24 = vpack.c.bf16 %v1240_v17, %v1240_v17  ;;  %1309 = vrot.lane.b32.xlu1 %v1308_v19, %s1887_s22 }
 0x462   :  { %1276 = vrot.lane.b32.xlu0 %v1705_v22, %s1887_s22 }
 0x463   :  { %1243 = vst.msk [vmem:[#allocation7] sm:$0x1] %vm1242_vm5, %v1241_v24 }
 0x465   :  { %1376 = vrot.lane.b32.xlu1 %v1375_v34, %s1887_s22 }
 0x466   :  { %1346 = vrot.lane.b32.xlu0 %v1712_v48, %s1887_s22 }
 0x46a   :  { %1298 = vrot.lane.b32.xlu0 %v1297_v40, %s1887_s22 }
 0x46e   :  { %1366 = vrot.lane.b32.xlu0 %v1365_v5, %s1887_s22 }
 0x4cb   :  { %v1357_v41 = vpop.permute.xlu1 %1356 }
 0x4cc   :  { %1359 = vst.msk [vmem:[#allocation7 + $0x4] sm:$0x2] %vm1290_vm9, %v1357_v41 }
 0x4cf   :  { %v1288_v6 = vpop.permute.xlu1 %1287 }
 0x4d0   :  { %1291 = vst.msk [vmem:[#allocation7] sm:$0x2] %vm1290_vm9, %v1288_v6 }
 0x4d3   :  { %v1310_v45 = vpop.permute.xlu1 %1309 }
 0x4d4   :  { %v1277_v44 = vpop.permute.xlu0 %1276  ;;  %1313 = vst.msk [vmem:[#allocation7] sm:$0x8] %vm1312_vm11, %v1310_v45 }
 0x4d5   :  { %1280 = vst.msk [vmem:[#allocation7] sm:$0x1] %vm1279_vm10, %v1277_v44 }
 0x4d7   :  { %v1377_v49 = vpop.permute.xlu1 %1376 }
 0x4d8   :  { %v1347_v31 = vpop.permute.xlu0 %1346  ;;  %1379 = vst.msk [vmem:[#allocation7 + $0x4] sm:$0x8] %vm1312_vm11, %v1377_v49 }
 0x4d9   :  { %1349 = vst.msk [vmem:[#allocation7 + $0x4] sm:$0x1] %vm1279_vm10, %v1347_v31 }
 0x4dc   :  { %v1299_v9 = vpop.permute.xlu0 %1298 }
 0x4dd   :  { %1302 = vst.msk [vmem:[#allocation7] sm:$0x4] %vm1301_vm12, %v1299_v9 }
 0x4e0   :  { %v1367_v11 = vpop.permute.xlu0 %1366 }
 0x4e1   :  { %1369 = vst.msk [vmem:[#allocation7 + $0x4] sm:$0x4] %vm1301_vm12, %v1367_v11 }
 0x4e8   :  { %v1380_v16 = vld [vmem:[#allocation7] sm:$0xff] }
 0x4e9   :  { %v1656_v21 = vcombine.low %v1380_v16, %v1380_v16  ;;  %v1657_v26 = vcombine.high %v1380_v16, %v1380_v16 }
 0x4eb   :  { %1552 = vmatprep.mubr.bf16.mxu0 %v1657_v26 }
 0x4ec   :  { %1553 = vmatmul.mubr.bf16.vlgmr.msra.gmra.mxu0 %v1656_v21 }
 0x5ac   :  { %v1754_v29 = vpop.f32.mrf.mxu0 }
 0x5ae   :  { %v1755_v38 = vpop.f32.mrf.mxu0 }
 0x5af   :  { %v1756_v42 = vadd.f32 %v1755_v38, %v1754_v29 }
 0x5b0   :  { %v1757_v47 = vpop.f32.mrf.mxu0 }
 0x5b1   :  { %v1555_v51 = vadd.f32 %v1756_v42, %v1655_v33 }
 0x5b2   :  { %v1758_v52 = vpop.f32.mrf.mxu0 }
 0x5b3   :  { %v1560_v54 = vsub.f32 0.0, %v1555_v51 }
 0x5b5   :  { %v1561_v37 = vmul.f32 1.442695, %v1560_v54 }
 0x5b7   :  { %1857 = vpow2.f32 %v1561_v37 }
 0x5c4   :  { %v1858_v55 = vpop.eup %1857 }
 0x5c5   :  { %v1563_v56 = vadd.f32 1.0, %v1858_v55 }
 0x5c7   :  { %1859 = vrcp.f32 %v1563_v56 }
 0x5d4   :  { %v1860_v57 = vpop.eup %1859 }
 0x5d5   :  { %1566 = vst [vmem:[#allocation8] sm:$0xff] %v1860_v57 }
 0x5d6   :  { %1872 = shalt.err (!%p1869_p4)
}
 0x5d7   :  { %1576 = dma.vmem_to_hbm [thread:$0]  %s1574_s25, 128, %s2411_s5, [#allocation9]  }
 0x5d8   :  { %1881 = dma.done.wait [#allocation9], 128  }
 0x5d9   :  { %1882 = vsyncadd [#allocation9], 4294967168 }
 0x5da   :  { %1580 = vsyncpa [#allocation9], 1 }

</bundles_post_ra>
